<compile_context>
chip_gen: v5e
topology: v5e:2x2
jax: 0.10.0
libtpu: 0.0.40
codegen_flags: <defaults>
</compile_context>

<pallas_src>
import jax
import jax.numpy as jnp
from jax import lax
from jax.experimental import pallas as pl
from jax.experimental.pallas import tpu as pltpu

EPS = 1e-5


# ---------------------------------------------------------------------------
# Fused Bottleneck kernel: conv1+bn1+relu -> conv2(3x3)+bn2+relu -> conv3+bn3
#                          -> +residual -> relu, all inside one grid step.
# ---------------------------------------------------------------------------
def _bottleneck_kernel(x_ref, w1_ref, b1_ref, w2_ref, b2_ref, w3_ref, b3_ref,
                       o_ref, o1_pad, col_ref):
    Nb, H, W, Cin = x_ref.shape
    planes = w1_ref.shape[1]
    Cout = w3_ref.shape[1]
    M = Nb * H * W

    # ---- conv1 (1x1) + bn1 (scale folded into w1) + relu, f32 accumulate ----
    x2d = x_ref[...].reshape(M, Cin)
    a1 = jnp.dot(x2d, w1_ref[...], preferred_element_type=jnp.float32)
    o1 = jnp.maximum(a1 + b1_ref[...], 0.0)                  # (M, planes) f32

    # ---- zero ONLY the 1-wide pad border (interior fully overwritten) -------
    # Unconditional every step: cheap, and correct when the batch grid is
    # sharded across TensorCores (never gate this on program_id == 0).
    zrow = jnp.zeros((Nb, 1, W + 2, planes), o1_pad.dtype)
    o1_pad[:, 0:1, :, :] = zrow
    o1_pad[:, H + 1:H + 2, :, :] = zrow
    zcol = jnp.zeros((Nb, H + 2, 1, planes), o1_pad.dtype)
    o1_pad[:, :, 0:1, :] = zcol
    o1_pad[:, :, W + 1:W + 2, :] = zcol

    # ---- interior store, single cast to compute dtype -----------------------
    o1_pad[:, 1:H + 1, 1:W + 1, :] = (
        o1.reshape(Nb, H, W, planes).astype(o1_pad.dtype))

    # ---- build im2col scratch (M, 9*planes): 9 shifted slab copies ----------
    for k in range(9):                                        # fully unrolled
        dy, dx = divmod(k, 3)
        col_ref[:, k * planes:(k + 1) * planes] = (
            o1_pad[:, dy:dy + H, dx:dx + W, :].reshape(M, planes))

    # ---- conv2 (3x3, stride 1, pad 1) as ONE K=9*planes matmul + bn2 + relu -
    a2 = jnp.dot(col_ref[...], w2_ref[...], preferred_element_type=jnp.float32)
    o2 = jnp.maximum(a2 + b2_ref[...], 0.0)                  # (M, planes) f32

    # ---- conv3 (1x1) + bn3 + residual add + relu ----------------------------
    a3 = jnp.dot(o2.astype(w3_ref.dtype), w3_ref[...],
                 preferred_element_type=jnp.float32)
    # NOTE: residual comes from the compute-dtype input block (bf16 in the fast
    # path); this is a tiny systematic precision loss vs. adding f32 x.
    out = jnp.maximum(a3 + b3_ref[...] + x2d.astype(jnp.float32), 0.0)
    o_ref[...] = out.reshape(Nb, H, W, Cout).astype(o_ref.dtype)


def _pick_images_per_step(n, h, w, target_rows=256):
    """Smallest divisor of n such that Nb*H*W >= target_rows (MXU M-util)."""
    nb = 1
    for cand in range(1, n + 1):
        if n % cand:
            continue
        nb = cand
        if cand * h * w >= target_rows:
            break
    return nb


def bottleneck_forward(x_nhwc, p, compute_dtype=jnp.bfloat16, out_dtype=None,
                       images_per_step=None):
    """Fused Bottleneck forward.  x_nhwc: (N, H, W, Cin) f32.  Output NHWC."""
    N, H, W, Cin = x_nhwc.shape
    planes = p["w1_mat"].shape[1]
    Cout = p["w3_mat"].shape[1]
    assert Cin == Cout, "identity residual requires inplanes == planes * 4"
    if out_dtype is None:
        out_dtype = compute_dtype
    Nb = images_per_step or _pick_images_per_step(N, H, W)
    assert N % Nb == 0

    x = x_nhwc.astype(compute_dtype)
    w1 = p["w1_mat"].astype(compute_dtype)                    # (Cin, planes)
    w2 = p["w2_mat"].astype(compute_dtype)                    # (9*planes, planes)
    w3 = p["w3_mat"].astype(compute_dtype)                    # (planes, Cout)
    b1 = p["b1"].reshape(1, planes).astype(jnp.float32)
    b2 = p["b2"].reshape(1, planes).astype(jnp.float32)
    b3 = p["b3"].reshape(1, Cout).astype(jnp.float32)

    csz = jnp.dtype(compute_dtype).itemsize
    osz = jnp.dtype(out_dtype).itemsize
    M_total = N * H * W
    M_step = Nb * H * W
    flops = 2 * M_total * (Cin * planes + 9 * planes * planes + planes * Cout)
    bytes_accessed = (x.size * csz + M_total * Cout * osz
                      + (w1.size + w2.size + w3.size) * csz
                      + (b1.size + b2.size + b3.size) * 4)

    # Actual per-step VMEM requirement (double-buffered input/output blocks,
    # weights, both scratch buffers, f32 intermediates) + headroom, capped at
    # 48 MiB so we never request the full 64 MiB physical VMEM of a v7x TC.
    # (On 128 MiB v5e/v6e parts this cap could be raised with a larger Nb.)
    weight_bytes = ((w1.size + w2.size + w3.size) * csz
                    + (b1.size + b2.size + b3.size) * 4)
    vmem_need = (2 * M_step * Cin * csz                       # input blocks
                 + 2 * M_step * Cout * osz                    # output blocks
                 + 2 * weight_bytes                           # weight blocks
                 + Nb * (H + 2) * (W + 2) * planes * csz      # padded scratch
                 + M_step * 9 * planes * csz                  # im2col scratch
                 + 3 * M_step * max(planes, Cout) * 4)        # f32 intermediates
    vmem_limit = int(min(max(vmem_need + (4 << 20), 16 << 20), 48 << 20))

    return pl.pallas_call(
        _bottleneck_kernel,
        grid=(N // Nb,),
        in_specs=[
            pl.BlockSpec((Nb, H, W, Cin), lambda n: (n, 0, 0, 0)),
            pl.BlockSpec((Cin, planes), lambda n: (0, 0)),
            pl.BlockSpec((1, planes), lambda n: (0, 0)),
            pl.BlockSpec((9 * planes, planes), lambda n: (0, 0)),
            pl.BlockSpec((1, planes), lambda n: (0, 0)),
            pl.BlockSpec((planes, Cout), lambda n: (0, 0)),
            pl.BlockSpec((1, Cout), lambda n: (0, 0)),
        ],
        out_specs=pl.BlockSpec((Nb, H, W, Cout), lambda n: (n, 0, 0, 0)),
        out_shape=jax.ShapeDtypeStruct((N, H, W, Cout), out_dtype),
        scratch_shapes=[
            pltpu.VMEM((Nb, H + 2, W + 2, planes), compute_dtype),  # padded o1
            pltpu.VMEM((Nb * H * W, 9 * planes), compute_dtype),    # im2col
        ],
        compiler_params=pltpu.CompilerParams(
            dimension_semantics=("parallel",),
            vmem_limit_bytes=vmem_limit,
        ),
        cost_estimate=pl.CostEstimate(flops=flops, transcendentals=0,
                                      bytes_accessed=bytes_accessed),
    )(x, w1, b1, w2, b2, w3, b3)


# ---------------------------------------------------------------------------
# Parameter prep: fold BN (eval mode) into per-channel scale/bias; fold the
# scale directly into the conv weight matrices.
# ---------------------------------------------------------------------------
def fold_bn(gamma, beta, mean, var):
    scale = gamma / jnp.sqrt(var + EPS)
    bias = beta - mean * scale
    return scale, bias


def make_params(key, inplanes, planes):
    ks = jax.random.split(key, 16)
    expansion = 4

    def normal(k, shape, s=0.1):
        return jax.random.normal(k, shape, jnp.float32) * s

    raw = {
        # conv weights, torch OIHW layout
        "w1": normal(ks[0], (planes, inplanes, 1, 1)),
        "w2": normal(ks[1], (planes, planes, 3, 3)),
        "w3": normal(ks[2], (planes * expansion, planes, 1, 1)),
        # bn1
        "g1": jax.random.uniform(ks[3], (planes,), jnp.float32, 0.5, 1.5),
        "be1": normal(ks[4], (planes,)),
        "m1": normal(ks[5], (planes,)),
        "v1": jax.random.uniform(ks[6], (planes,), jnp.float32, 0.5, 1.5),
        # bn2
        "g2": jax.random.uniform(ks[7], (planes,), jnp.float32, 0.5, 1.5),
        "be2": normal(ks[8], (planes,)),
        "m2": normal(ks[9], (planes,)),
        "v2": jax.random.uniform(ks[10], (planes,), jnp.float32, 0.5, 1.5),
        # bn3
        "g3": jax.random.uniform(ks[11], (planes * expansion,), jnp.float32, 0.5, 1.5),
        "be3": normal(ks[12], (planes * expansion,)),
        "m3": normal(ks[13], (planes * expansion,)),
        "v3": jax.random.uniform(ks[14], (planes * expansion,), jnp.float32, 0.5, 1.5),
    }

    s1, b1 = fold_bn(raw["g1"], raw["be1"], raw["m1"], raw["v1"])
    s2, b2 = fold_bn(raw["g2"], raw["be2"], raw["m2"], raw["v2"])
    s3, b3 = fold_bn(raw["g3"], raw["be3"], raw["m3"], raw["v3"])

    kernel_params = {
        # 1x1 conv -> (Cin, Cout) matrix, BN scale folded into output columns
        "w1_mat": jnp.transpose(raw["w1"][:, :, 0, 0], (1, 0)) * s1[None, :],
        # 3x3 conv -> (9*planes, planes): row index = (dy*3+dx)*planes + c_in,
        # matching the im2col column layout; BN scale folded into columns.
        "w2_mat": (jnp.transpose(raw["w2"], (2, 3, 1, 0))
                   .reshape(9 * planes, planes) * s2[None, :]),
        "w3_mat": jnp.transpose(raw["w3"][:, :, 0, 0], (1, 0)) * s3[None, :],
        "b1": b1, "b2": b2, "b3": b3,
    }
    return raw, kernel_params


# ---------------------------------------------------------------------------
# Pure-JAX reference (lax.conv) for verification
# ---------------------------------------------------------------------------
def reference_forward(x_nhwc, raw):
    dn = ("NHWC", "HWIO", "NHWC")

    def conv(x, w_oihw, pad):
        w_hwio = jnp.transpose(w_oihw, (2, 3, 1, 0))
        return lax.conv_general_dilated(x, w_hwio, (1, 1), pad, dimension_numbers=dn)

    def bn(x, g, b, m, v):
        return (x - m) / jnp.sqrt(v + EPS) * g + b

    out = jax.nn.relu(bn(conv(x_nhwc, raw["w1"], "VALID"),
                         raw["g1"], raw["be1"], raw["m1"], raw["v1"]))
    out = jax.nn.relu(bn(conv(out, raw["w2"], "SAME"),
                         raw["g2"], raw["be2"], raw["m2"], raw["v2"]))
    out = bn(conv(out, raw["w3"], "VALID"),
             raw["g3"], raw["be3"], raw["m3"], raw["v3"])
    return jax.nn.relu(out + x_nhwc)


if __name__ == "__main__":
    N, H, W = 2, 16, 16
    planes = 4
    inplanes = planes * 4  # identity residual (downsample=None) needs this

    key = jax.random.PRNGKey(0)
    k_x, k_p = jax.random.split(key)

    # PyTorch-style NCHW input, transposed to NHWC for the kernel path.
    x_nchw = jax.random.normal(k_x, (N, inplanes, H, W), jnp.float32)
    x_nhwc = jnp.transpose(x_nchw, (0, 2, 3, 1))

    raw, params = make_params(k_p, inplanes, planes)
    ref_nhwc = jax.block_until_ready(reference_forward(x_nhwc, raw))

    # Exact-precision check: f32 operands and f32 output end-to-end.
    out_f32 = jax.block_until_ready(
        bottleneck_forward(x_nhwc, params, compute_dtype=jnp.float32))
    assert out_f32.shape == (N, H, W, planes * 4)
    assert out_f32.dtype == jnp.float32
    assert jnp.allclose(out_f32, ref_nhwc, atol=1e-4, rtol=1e-4), "f32 mismatch"

    # Fast path: bf16 operands AND bf16 output, f32 MXU accumulation (loose tol).
    out_bf16 = jax.block_until_ready(
        bottleneck_forward(x_nhwc, params, compute_dtype=jnp.bfloat16))
    assert out_bf16.dtype == jnp.bfloat16
    assert jnp.allclose(out_bf16.astype(jnp.float32), ref_nhwc,
                        atol=7.5e-2, rtol=7.5e-2), "bf16 mismatch"

    # back to NCHW to match the PyTorch output convention
    out_nchw = jnp.transpose(out_bf16, (0, 3, 1, 2))
    jax.block_until_ready(out_nchw)
    print("KERNEL_OK")
</pallas_src>

<mosaic_0001>
module attributes {stable_mosaic.version = 11 : i64} {
  func.func @_bottleneck_kernel(%arg0: i32, %arg1: memref<1x16x16x16xf32, #tpu.memory_space<vmem>>, %arg2: memref<16x4xf32, #tpu.memory_space<vmem>>, %arg3: memref<1x4xf32, #tpu.memory_space<vmem>>, %arg4: memref<36x4xf32, #tpu.memory_space<vmem>>, %arg5: memref<1x4xf32, #tpu.memory_space<vmem>>, %arg6: memref<4x16xf32, #tpu.memory_space<vmem>>, %arg7: memref<1x16xf32, #tpu.memory_space<vmem>>, %arg8: memref<1x16x16x16xf32, #tpu.memory_space<vmem>>, %arg9: memref<1x18x18x4xf32, #tpu.memory_space<vmem>>, %arg10: memref<256x36xf32, #tpu.memory_space<vmem>>) attributes {dimension_semantics = [#tpu.dimension_semantics<parallel>], iteration_bounds = array<i64: 2>, scalar_prefetch = 0 : i64, scratch_operands = 2 : i64, tpu.core_type = #tpu.core_type<tc>, window_params = [{transform_indices = @transform_0, window_bounds = array<i64: 1, 16, 16, 16>}, {pipeline_mode = #tpu.pipeline_mode<synchronous>, transform_indices = @transform_1, window_bounds = array<i64: 16, 4>}, {pipeline_mode = #tpu.pipeline_mode<synchronous>, transform_indices = @transform_2, window_bounds = array<i64: 1, 4>}, {pipeline_mode = #tpu.pipeline_mode<synchronous>, transform_indices = @transform_3, window_bounds = array<i64: 36, 4>}, {pipeline_mode = #tpu.pipeline_mode<synchronous>, transform_indices = @transform_4, window_bounds = array<i64: 1, 4>}, {pipeline_mode = #tpu.pipeline_mode<synchronous>, transform_indices = @transform_5, window_bounds = array<i64: 4, 16>}, {pipeline_mode = #tpu.pipeline_mode<synchronous>, transform_indices = @transform_6, window_bounds = array<i64: 1, 16>}, {transform_indices = @transform_7, window_bounds = array<i64: 1, 16, 16, 16>}]} {
    %c0 = arith.constant 0 : index
    %c0_0 = arith.constant 0 : index
    %c0_1 = arith.constant 0 : index
    %c0_2 = arith.constant 0 : index
    %0 = vector.load %arg1[%c0, %c0_0, %c0_1, %c0_2] : memref<1x16x16x16xf32, #tpu.memory_space<vmem>>, vector<1x16x16x16xf32>
    %1 = vector.shape_cast %0 : vector<1x16x16x16xf32> to vector<256x16xf32>
    %c0_3 = arith.constant 0 : index
    %c0_4 = arith.constant 0 : index
    %2 = vector.load %arg2[%c0_3, %c0_4] : memref<16x4xf32, #tpu.memory_space<vmem>>, vector<16x4xf32>
    %cst = arith.constant dense<0.000000e+00> : vector<256x4xf32>
    %3 = tpu.matmul %1, %2, %cst {dimension_numbers = #tpu.dot_dimension_numbers<[1], [0], [0], [1], [0, 0, 1, 1], [], []>} : vector<256x16xf32>, vector<16x4xf32>, vector<256x4xf32> -> vector<256x4xf32>
    %c0_5 = arith.constant 0 : index
    %c0_6 = arith.constant 0 : index
    %4 = vector.load %arg3[%c0_5, %c0_6] : memref<1x4xf32, #tpu.memory_space<vmem>>, vector<1x4xf32>
    %5 = vector.broadcast %4 : vector<1x4xf32> to vector<256x4xf32>
    %6 = arith.addf %3, %5 : vector<256x4xf32>
    %cst_7 = arith.constant 0.000000e+00 : f32
    %7 = vector.broadcast %cst_7 : f32 to vector<256x4xf32>
    %8 = arith.maximumf %6, %7 : vector<256x4xf32>
    %cst_8 = arith.constant 0.000000e+00 : f32
    %9 = vector.broadcast %cst_8 : f32 to vector<1x1x18x4xf32>
    %c0_9 = arith.constant 0 : index
    %c0_10 = arith.constant 0 : index
    %c0_11 = arith.constant 0 : index
    %c0_12 = arith.constant 0 : index
    %10 = vector.load %arg9[%c0_9, %c0_10, %c0_11, %c0_12] : memref<1x18x18x4xf32, #tpu.memory_space<vmem>>, vector<1x1x18x4xf32>
    tpu.vector_store %arg9[%c0_9, %c0_10, %c0_11, %c0_12], %9 {strides = array<i32>} : memref<1x18x18x4xf32, #tpu.memory_space<vmem>>, vector<1x1x18x4xf32>,
    %c0_13 = arith.constant 0 : index
    %c17 = arith.constant 17 : index
    %c0_14 = arith.constant 0 : index
    %c0_15 = arith.constant 0 : index
    %11 = vector.load %arg9[%c0_13, %c17, %c0_14, %c0_15] : memref<1x18x18x4xf32, #tpu.memory_space<vmem>>, vector<1x1x18x4xf32>
    tpu.vector_store %arg9[%c0_13, %c17, %c0_14, %c0_15], %9 {strides = array<i32>} : memref<1x18x18x4xf32, #tpu.memory_space<vmem>>, vector<1x1x18x4xf32>,
    %cst_16 = arith.constant 0.000000e+00 : f32
    %12 = vector.broadcast %cst_16 : f32 to vector<1x18x1x4xf32>
    %c0_17 = arith.constant 0 : index
    %c0_18 = arith.constant 0 : index
    %c0_19 = arith.constant 0 : index
    %c0_20 = arith.constant 0 : index
    %13 = vector.load %arg9[%c0_17, %c0_18, %c0_19, %c0_20] : memref<1x18x18x4xf32, #tpu.memory_space<vmem>>, vector<1x18x1x4xf32>
    tpu.vector_store %arg9[%c0_17, %c0_18, %c0_19, %c0_20], %12 {strides = array<i32>} : memref<1x18x18x4xf32, #tpu.memory_space<vmem>>, vector<1x18x1x4xf32>,
    %c0_21 = arith.constant 0 : index
    %c0_22 = arith.constant 0 : index
    %c17_23 = arith.constant 17 : index
    %c0_24 = arith.constant 0 : index
    %14 = vector.load %arg9[%c0_21, %c0_22, %c17_23, %c0_24] : memref<1x18x18x4xf32, #tpu.memory_space<vmem>>, vector<1x18x1x4xf32>
    tpu.vector_store %arg9[%c0_21, %c0_22, %c17_23, %c0_24], %12 {strides = array<i32>} : memref<1x18x18x4xf32, #tpu.memory_space<vmem>>, vector<1x18x1x4xf32>,
    %15 = vector.shape_cast %8 : vector<256x4xf32> to vector<1x16x16x4xf32>
    %c0_25 = arith.constant 0 : index
    %c1 = arith.constant 1 : index
    %c1_26 = arith.constant 1 : index
    %c0_27 = arith.constant 0 : index
    %16 = vector.load %arg9[%c0_25, %c1, %c1_26, %c0_27] : memref<1x18x18x4xf32, #tpu.memory_space<vmem>>, vector<1x16x16x4xf32>
    tpu.vector_store %arg9[%c0_25, %c1, %c1_26, %c0_27], %15 {strides = array<i32>} : memref<1x18x18x4xf32, #tpu.memory_space<vmem>>, vector<1x16x16x4xf32>,
    %c0_28 = arith.constant 0 : index
    %c0_29 = arith.constant 0 : index
    %c0_30 = arith.constant 0 : index
    %c0_31 = arith.constant 0 : index
    %17 = vector.load %arg9[%c0_28, %c0_29, %c0_30, %c0_31] : memref<1x18x18x4xf32, #tpu.memory_space<vmem>>, vector<1x16x16x4xf32>
    %18 = vector.shape_cast %17 : vector<1x16x16x4xf32> to vector<256x4xf32>
    %c0_32 = arith.constant 0 : index
    %c0_33 = arith.constant 0 : index
    %19 = vector.load %arg10[%c0_32, %c0_33] : memref<256x36xf32, #tpu.memory_space<vmem>>, vector<256x4xf32>
    tpu.vector_store %arg10[%c0_32, %c0_33], %18 {strides = array<i32>} : memref<256x36xf32, #tpu.memory_space<vmem>>, vector<256x4xf32>,
    %c0_34 = arith.constant 0 : index
    %c0_35 = arith.constant 0 : index
    %c1_36 = arith.constant 1 : index
    %c0_37 = arith.constant 0 : index
    %20 = vector.load %arg9[%c0_34, %c0_35, %c1_36, %c0_37] : memref<1x18x18x4xf32, #tpu.memory_space<vmem>>, vector<1x16x16x4xf32>
    %21 = vector.shape_cast %20 : vector<1x16x16x4xf32> to vector<256x4xf32>
    %c0_38 = arith.constant 0 : index
    %c4 = arith.constant 4 : index
    %22 = vector.load %arg10[%c0_38, %c4] : memref<256x36xf32, #tpu.memory_space<vmem>>, vector<256x4xf32>
    tpu.vector_store %arg10[%c0_38, %c4], %21 {strides = array<i32>} : memref<256x36xf32, #tpu.memory_space<vmem>>, vector<256x4xf32>,
    %c0_39 = arith.constant 0 : index
    %c0_40 = arith.constant 0 : index
    %c2 = arith.constant 2 : index
    %c0_41 = arith.constant 0 : index
    %23 = vector.load %arg9[%c0_39, %c0_40, %c2, %c0_41] : memref<1x18x18x4xf32, #tpu.memory_space<vmem>>, vector<1x16x16x4xf32>
    %24 = vector.shape_cast %23 : vector<1x16x16x4xf32> to vector<256x4xf32>
    %c0_42 = arith.constant 0 : index
    %c8 = arith.constant 8 : index
    %25 = vector.load %arg10[%c0_42, %c8] : memref<256x36xf32, #tpu.memory_space<vmem>>, vector<256x4xf32>
    tpu.vector_store %arg10[%c0_42, %c8], %24 {strides = array<i32>} : memref<256x36xf32, #tpu.memory_space<vmem>>, vector<256x4xf32>,
    %c0_43 = arith.constant 0 : index
    %c1_44 = arith.constant 1 : index
    %c0_45 = arith.constant 0 : index
    %c0_46 = arith.constant 0 : index
    %26 = vector.load %arg9[%c0_43, %c1_44, %c0_45, %c0_46] : memref<1x18x18x4xf32, #tpu.memory_space<vmem>>, vector<1x16x16x4xf32>
    %27 = vector.shape_cast %26 : vector<1x16x16x4xf32> to vector<256x4xf32>
    %c0_47 = arith.constant 0 : index
    %c12 = arith.constant 12 : index
    %28 = vector.load %arg10[%c0_47, %c12] : memref<256x36xf32, #tpu.memory_space<vmem>>, vector<256x4xf32>
    tpu.vector_store %arg10[%c0_47, %c12], %27 {strides = array<i32>} : memref<256x36xf32, #tpu.memory_space<vmem>>, vector<256x4xf32>,
    %c0_48 = arith.constant 0 : index
    %c1_49 = arith.constant 1 : index
    %c1_50 = arith.constant 1 : index
    %c0_51 = arith.constant 0 : index
    %29 = vector.load %arg9[%c0_48, %c1_49, %c1_50, %c0_51] : memref<1x18x18x4xf32, #tpu.memory_space<vmem>>, vector<1x16x16x4xf32>
    %30 = vector.shape_cast %29 : vector<1x16x16x4xf32> to vector<256x4xf32>
    %c0_52 = arith.constant 0 : index
    %c16 = arith.constant 16 : index
    %31 = vector.load %arg10[%c0_52, %c16] : memref<256x36xf32, #tpu.memory_space<vmem>>, vector<256x4xf32>
    tpu.vector_store %arg10[%c0_52, %c16], %30 {strides = array<i32>} : memref<256x36xf32, #tpu.memory_space<vmem>>, vector<256x4xf32>,
    %c0_53 = arith.constant 0 : index
    %c1_54 = arith.constant 1 : index
    %c2_55 = arith.constant 2 : index
    %c0_56 = arith.constant 0 : index
    %32 = vector.load %arg9[%c0_53, %c1_54, %c2_55, %c0_56] : memref<1x18x18x4xf32, #tpu.memory_space<vmem>>, vector<1x16x16x4xf32>
    %33 = vector.shape_cast %32 : vector<1x16x16x4xf32> to vector<256x4xf32>
    %c0_57 = arith.constant 0 : index
    %c20 = arith.constant 20 : index
    %34 = vector.load %arg10[%c0_57, %c20] : memref<256x36xf32, #tpu.memory_space<vmem>>, vector<256x4xf32>
    tpu.vector_store %arg10[%c0_57, %c20], %33 {strides = array<i32>} : memref<256x36xf32, #tpu.memory_space<vmem>>, vector<256x4xf32>,
    %c0_58 = arith.constant 0 : index
    %c2_59 = arith.constant 2 : index
    %c0_60 = arith.constant 0 : index
    %c0_61 = arith.constant 0 : index
    %35 = vector.load %arg9[%c0_58, %c2_59, %c0_60, %c0_61] : memref<1x18x18x4xf32, #tpu.memory_space<vmem>>, vector<1x16x16x4xf32>
    %36 = vector.shape_cast %35 : vector<1x16x16x4xf32> to vector<256x4xf32>
    %c0_62 = arith.constant 0 : index
    %c24 = arith.constant 24 : index
    %37 = vector.load %arg10[%c0_62, %c24] : memref<256x36xf32, #tpu.memory_space<vmem>>, vector<256x4xf32>
    tpu.vector_store %arg10[%c0_62, %c24], %36 {strides = array<i32>} : memref<256x36xf32, #tpu.memory_space<vmem>>, vector<256x4xf32>,
    %c0_63 = arith.constant 0 : index
    %c2_64 = arith.constant 2 : index
    %c1_65 = arith.constant 1 : index
    %c0_66 = arith.constant 0 : index
    %38 = vector.load %arg9[%c0_63, %c2_64, %c1_65, %c0_66] : memref<1x18x18x4xf32, #tpu.memory_space<vmem>>, vector<1x16x16x4xf32>
    %39 = vector.shape_cast %38 : vector<1x16x16x4xf32> to vector<256x4xf32>
    %c0_67 = arith.constant 0 : index
    %c28 = arith.constant 28 : index
    %40 = vector.load %arg10[%c0_67, %c28] : memref<256x36xf32, #tpu.memory_space<vmem>>, vector<256x4xf32>
    tpu.vector_store %arg10[%c0_67, %c28], %39 {strides = array<i32>} : memref<256x36xf32, #tpu.memory_space<vmem>>, vector<256x4xf32>,
    %c0_68 = arith.constant 0 : index
    %c2_69 = arith.constant 2 : index
    %c2_70 = arith.constant 2 : index
    %c0_71 = arith.constant 0 : index
    %41 = vector.load %arg9[%c0_68, %c2_69, %c2_70, %c0_71] : memref<1x18x18x4xf32, #tpu.memory_space<vmem>>, vector<1x16x16x4xf32>
    %42 = vector.shape_cast %41 : vector<1x16x16x4xf32> to vector<256x4xf32>
    %c0_72 = arith.constant 0 : index
    %c32 = arith.constant 32 : index
    %43 = vector.load %arg10[%c0_72, %c32] : memref<256x36xf32, #tpu.memory_space<vmem>>, vector<256x4xf32>
    tpu.vector_store %arg10[%c0_72, %c32], %42 {strides = array<i32>} : memref<256x36xf32, #tpu.memory_space<vmem>>, vector<256x4xf32>,
    %c0_73 = arith.constant 0 : index
    %c0_74 = arith.constant 0 : index
    %44 = vector.load %arg10[%c0_73, %c0_74] : memref<256x36xf32, #tpu.memory_space<vmem>>, vector<256x36xf32>
    %c0_75 = arith.constant 0 : index
    %c0_76 = arith.constant 0 : index
    %45 = vector.load %arg4[%c0_75, %c0_76] : memref<36x4xf32, #tpu.memory_space<vmem>>, vector<36x4xf32>
    %cst_77 = arith.constant dense<0.000000e+00> : vector<256x4xf32>
    %46 = tpu.matmul %44, %45, %cst_77 {dimension_numbers = #tpu.dot_dimension_numbers<[1], [0], [0], [1], [0, 0, 1, 1], [], []>} : vector<256x36xf32>, vector<36x4xf32>, vector<256x4xf32> -> vector<256x4xf32>
    %c0_78 = arith.constant 0 : index
    %c0_79 = arith.constant 0 : index
    %47 = vector.load %arg5[%c0_78, %c0_79] : memref<1x4xf32, #tpu.memory_space<vmem>>, vector<1x4xf32>
    %48 = vector.broadcast %47 : vector<1x4xf32> to vector<256x4xf32>
    %49 = arith.addf %46, %48 : vector<256x4xf32>
    %cst_80 = arith.constant 0.000000e+00 : f32
    %50 = vector.broadcast %cst_80 : f32 to vector<256x4xf32>
    %51 = arith.maximumf %49, %50 : vector<256x4xf32>
    %c0_81 = arith.constant 0 : index
    %c0_82 = arith.constant 0 : index
    %52 = vector.load %arg6[%c0_81, %c0_82] : memref<4x16xf32, #tpu.memory_space<vmem>>, vector<4x16xf32>
    %cst_83 = arith.constant dense<0.000000e+00> : vector<256x16xf32>
    %53 = tpu.matmul %51, %52, %cst_83 {dimension_numbers = #tpu.dot_dimension_numbers<[1], [0], [0], [1], [0, 0, 1, 1], [], []>} : vector<256x4xf32>, vector<4x16xf32>, vector<256x16xf32> -> vector<256x16xf32>
    %c0_84 = arith.constant 0 : index
    %c0_85 = arith.constant 0 : index
    %54 = vector.load %arg7[%c0_84, %c0_85] : memref<1x16xf32, #tpu.memory_space<vmem>>, vector<1x16xf32>
    %55 = vector.broadcast %54 : vector<1x16xf32> to vector<256x16xf32>
    %56 = arith.addf %53, %55 : vector<256x16xf32>
    %57 = arith.addf %56, %1 : vector<256x16xf32>
    %cst_86 = arith.constant 0.000000e+00 : f32
    %58 = vector.broadcast %cst_86 : f32 to vector<256x16xf32>
    %59 = arith.maximumf %57, %58 : vector<256x16xf32>
    %60 = vector.shape_cast %59 : vector<256x16xf32> to vector<1x16x16x16xf32>
    %c0_87 = arith.constant 0 : index
    %c0_88 = arith.constant 0 : index
    %c0_89 = arith.constant 0 : index
    %c0_90 = arith.constant 0 : index
    %61 = vector.load %arg8[%c0_87, %c0_88, %c0_89, %c0_90] : memref<1x16x16x16xf32, #tpu.memory_space<vmem>>, vector<1x16x16x16xf32>
    tpu.vector_store %arg8[%c0_87, %c0_88, %c0_89, %c0_90], %60 {strides = array<i32>} : memref<1x16x16x16xf32, #tpu.memory_space<vmem>>, vector<1x16x16x16xf32>,
    return
  }
  func.func @transform_0(%arg0: i32) -> (i32, i32, i32, i32) {
    %c0_i32 = arith.constant 0 : i32
    %c0_i32_0 = arith.constant 0 : i32
    %c0_i32_1 = arith.constant 0 : i32
    %c0_i32_2 = arith.constant 0 : i32
    return %arg0, %c0_i32, %c0_i32_0, %c0_i32_1 : i32, i32, i32, i32
  }
  func.func @transform_1(%arg0: i32) -> (i32, i32) {
    %c0_i32 = arith.constant 0 : i32
    %c0_i32_0 = arith.constant 0 : i32
    %c0_i32_1 = arith.constant 0 : i32
    return %c0_i32, %c0_i32_0 : i32, i32
  }
  func.func @transform_2(%arg0: i32) -> (i32, i32) {
    %c0_i32 = arith.constant 0 : i32
    %c0_i32_0 = arith.constant 0 : i32
    %c0_i32_1 = arith.constant 0 : i32
    return %c0_i32, %c0_i32_0 : i32, i32
  }
  func.func @transform_3(%arg0: i32) -> (i32, i32) {
    %c0_i32 = arith.constant 0 : i32
    %c0_i32_0 = arith.constant 0 : i32
    %c0_i32_1 = arith.constant 0 : i32
    return %c0_i32, %c0_i32_0 : i32, i32
  }
  func.func @transform_4(%arg0: i32) -> (i32, i32) {
    %c0_i32 = arith.constant 0 : i32
    %c0_i32_0 = arith.constant 0 : i32
    %c0_i32_1 = arith.constant 0 : i32
    return %c0_i32, %c0_i32_0 : i32, i32
  }
  func.func @transform_5(%arg0: i32) -> (i32, i32) {
    %c0_i32 = arith.constant 0 : i32
    %c0_i32_0 = arith.constant 0 : i32
    %c0_i32_1 = arith.constant 0 : i32
    return %c0_i32, %c0_i32_0 : i32, i32
  }
  func.func @transform_6(%arg0: i32) -> (i32, i32) {
    %c0_i32 = arith.constant 0 : i32
    %c0_i32_0 = arith.constant 0 : i32
    %c0_i32_1 = arith.constant 0 : i32
    return %c0_i32, %c0_i32_0 : i32, i32
  }
  func.func @transform_7(%arg0: i32) -> (i32, i32, i32, i32) {
    %c0_i32 = arith.constant 0 : i32
    %c0_i32_0 = arith.constant 0 : i32
    %c0_i32_1 = arith.constant 0 : i32
    %c0_i32_2 = arith.constant 0 : i32
    return %arg0, %c0_i32, %c0_i32_0, %c0_i32_1 : i32, i32, i32, i32
  }
}

</mosaic_0001>

<bundles_post_ra>
// kernel: tpu_custom_call.1
= control target key start
LH: loop header
LB: loop body
LE: loop exit
PB: predicated region body
PF: predicated region fallthrough
CT: control target
= control target key end

     0   :  { %12 = vsyncpa [#allocation5], 0  ;;  %s4823_s0 = inlined_call_operand.hbm [shape: f32[2,16,16,16], index: 0, kind: input, shape index: {}]   ;;  %s4824_s1 = inlined_call_operand.vmem [shape: f32[16,4], index: 1, kind: input, shape index: {}]   ;;  %s4825_s2 = inlined_call_operand.vmem [shape: f32[1,4], index: 2, kind: input, shape index: {}]   ;;  %s4826_s3 = inlined_call_operand.vmem [shape: f32[36,4], index: 3, kind: input, shape index: {}]   ;;  %s4827_s4 = inlined_call_operand.vmem [shape: f32[1,4], index: 4, kind: input, shape index: {}]   ;;  %s4828_s5 = inlined_call_operand.vmem [shape: f32[4,16], index: 5, kind: input, shape index: {}]   ;;  %s4829_s6 = inlined_call_operand.vmem [shape: f32[1,16], index: 6, kind: input, shape index: {}]   ;;  %s4830_s7 = inlined_call_operand.hbm [shape: f32[2,16,16,16], index: 7, kind: output, shape index: {}]  }
   0x1   :  { %14 = vsyncpa [#allocation5 + $0x1], 0 }
   0x2   :  { %15 = vsyncpa [#allocation6], 0 }
   0x3   :  { %17 = vsyncpa [#allocation6 + $0x1], 0  ;;  %s3324_s24 = smov 0   ;;  %s3326_s25 = smov 0  }
   0x4   :  { %s3328_s26 = smov 0   ;;  %s3330_s27 = smov 0  }
   0x5 LB: > { %s3345_s28 = sadd.s32 4294967295, %s3270_s27   ;;  %s2956_s29 = sadd.s32 4294967294, %s3270_s27   ;;  %s3270_s27 = sphi %s3330_s27, %s4842_s27   ;;  %s3266_s26 = sphi %s3328_s26, %s4841_s26   ;;  %s3262_s25 = sphi %s3326_s25, %s4840_s25   ;;  %s3258_s24 = sphi %s3324_s24, %s4839_s24  }
   0x6   : > { %s3349_s30 = sadd.s32 1, %s3270_s27   ;;  %s30_s8 = sadd.s32 1, %s3266_s26 }
   0x7   : > { %s27_s9 = ssub.s32 %s3270_s27, %s3349_s30  ;;  %p37_p0 = scmp.ne.s32.totalorder %s3266_s26, %s3262_s25 }
   0x8   : > { %p28_p1 = scmp.eq.s32.totalorder %s27_s9, 0  ;;  %p38_p2 = scmp.eq.s32.totalorder %s3270_s27, 0 }
   0x9   : > { %p43_p3 = scmp.ne.s32.totalorder %s3262_s25, %s3258_s24  ;;  %p44_p4 = scmp.eq.s32.totalorder %s3345_s28, 0 }
   0xa   : > { %s3361_s10 = scalar_select %p28_p1, %s3266_s26, %s30_s8  }
   0xb   : > { %p3363_p5 = por %p38_p2, %p37_p0  ;;  %p3367_p6 = por %p44_p4, %p43_p3 }
   0xc   : > { %4831 = sst [smem:[#allocation10_spill]] %s3361_s10  ;;  %p193_p7 = scmp.eq.s32.totalorder %s3345_s28, 1 }
   0xd   : > { %p199_p8 = scmp.eq.s32.totalorder %s2956_s29, 1  ;;  %p3090_p10 = scmp.lt.s32.totalorder %s3270_s27, 2 }
   0xe   : > { %p3374_p11 = por %p193_p7, %p37_p0  ;;  %s237_s15 = sand.u32 1, %s3266_s26  }
   0xf   : > { %p3378_p12 = por %p199_p8, %p43_p3  ;;  %s3068_s16 = sshll.u32 %s3270_s27, 8 }
  0x10   : > { %s2959_s17 = sshll.u32 %s237_s15, 8  ;;  %s246_s20 = scalar_lea.hbm %s4823_s0, %s3068_s16 }
  0x11   : > { %s247_s21 = sshll.u32 %s246_s20, 4  ;;  %s241_s22 = scalar_lea.vmem [#allocation4], %s2959_s17  ;;  %s248_s21 = int_to_ptr.hbm [resolvable:$true] %s247_s21 }
  0x12   : > { %s249_s23 = sshll.u32 %s241_s22, 4  ;;  %p3389_p13 = pnand %p3090_p10, %p3363_p5  ;;  %s250_s23 = int_to_ptr.vmem [resolvable:$true] %s249_s23 }
  0x13   : > { %p2962_p0 = scmp.ge.s32.totalorder %s3270_s27, 1  ;;  %p257_p1 = scmp.lt.s32.totalorder %s3270_s27, 3 }
  0x14   : > { %s238_s8 = scalar_lea.sflag [#allocation5], %s237_s15  ;;  %s3174_s9 = sshra.s32 %s248_s21, 4  ;;  %s3175_s9 = int_to_ptr.hbm [resolvable:$true] %s3174_s9 }
  0x15   : > { %s3176_s10 = scalar_lea.hbm %s3175_s9, 256  ;;  %p3178_p3 = pneg %p3389_p13 }
  0x16   : > { %p3177_p2 = scmp.ne.s32.totalorder %s3175_s9, %s3176_s10  ;;  %s3181_s11 = scalar_lea.hbm %s4823_s0, 512 }
  0x17   : > { %p3182_p5 = scmp.lt.s32.totalorder %s3175_s9, %s4823_s0  ;;  %p3183_p8 = scmp.lt.s32.totalorder %s3181_s11, %s3176_s10 }
  0x18   : > { %p3179_p4 = pnand %p3178_p3, %p3177_p2 }
  0x19   : > { %p3184_p10 = por %p3183_p8, %p3182_p5 }
  0x1a   : > { %p3180_p7 = pneg %p3179_p4 }
  0x1c   : > { %p3185_p9 = pnand %p3184_p10, %p3180_p7 }
  0x1e   : > { %3188 = shalt.err (!%p3185_p9)
}
  0x1f   : > { %s3272_s15 = smov 128   ;;  %s3273_s20 = smov 8  }
  0x20   : > { %3085 = dma.hbm_to_vmem [thread:$0]  (!%p3389_p13), %s248_s21, 4096, %s250_s23, %s238_s8, %s3272_s15, %s3272_s15, %s3273_s20  }
  0x21   : > { %p258_p2 = pnand %p2962_p0, %p257_p1 }
  0x22   : > { %s3410_s22 = sand.u32 (!%p258_p2), 1, %s3262_s25  }
  0x23   : > { %261 = sbr.rel (%p258_p2) target bundleno = 1259 (0x4eb), region = 48  ;;  %s2963_s10 = sshll.u32 (!%p258_p2), %s3410_s22, 8 }
  0x24   : > { %s264_s9 = scalar_lea.sflag (!%p258_p2), [#allocation5], %s3410_s22  ;;  %s3416_s16 = scalar_lea.vmem (!%p258_p2), [#allocation4], %s2963_s10 }
  0x28   : > { %3249 = dma.done.wait (%p3367_p6), %s264_s9, 4096  }
  0x29   : > { %3251 = vsyncadd (%p3367_p6), %s264_s9, 4294963200  ;;  %v332_v0 = vld [vmem:[%s4824_s1 + $0x8] sm:$0xff]  ;;  %v331_v1 = vld [vmem:[%s4824_s1] sm:$0xff]  ;;  %vm337_vm0 = vcmask 130048   ;;  %vm579_vm1 = vcmask 31744   ;;  %v3274_v18 = vmov 0.0  }
  0x2a   : > { %448 = vmatpush.msra.mxu0 %v332_v0  ;;  %3070 = vmatpush.msra.mxu3 %v332_v0  ;;  %v299_v2 = vld [vmem:[%s3416_s16] sm:$0xff]  ;;  %v324_v3 = vld [vmem:[%s3416_s16 + $0xc8] sm:$0xff]  ;;  %v325_v5 = vld [vmem:[%s3416_s16 + $0xd0] sm:$0xff]  ;;  %580 = vst.msk [vmem:[#allocation2] sm:$0xff] %vm579_vm1, %v3274_v18  ;;  %vm588_vm2 = vcmask 24576   ;;  %s3275_s12 = smov 4  }
  0x2b   : > { %v300_v4 = vld [vmem:[%s3416_s16 + $0x8] sm:$0xff]  ;;  %v301_v6 = vld [vmem:[%s3416_s16 + $0x10] sm:$0xff]  ;;  %v326_v7 = vld [vmem:[%s3416_s16 + $0xd8] sm:$0xff]  ;;  %581 = vst.msk [vmem:[#allocation2 + $0x8] sm:$0xff] %vm579_vm1, %v3274_v18  ;;  %s3276_s17 = smov 8   ;;  %vm582_vm3 = vcmask 25600  }
  0x2c   : > { %449 = vmatpush.msra.mxu0 %v331_v1  ;;  %3071 = vmatpush.msra.mxu3 %v331_v1  ;;  %v302_v8 = vld [vmem:[%s3416_s16 + $0x18] sm:$0xff]  ;;  %v303_v9 = vld [vmem:[%s3416_s16 + $0x20] sm:$0xff]  ;;  %v304_v10 = vld [vmem:[%s3416_s16 + $0x28] sm:$0xff]  ;;  %589 = vst.msk [vmem:[#allocation2] sm:$0x1] %vm588_vm2, %v3274_v18  ;;  %s3277_s19 = smov 16  }
  0x2d   : > { %2965 = vmatmul.msk.f32.vlgmr.msra.gmra.mxu0 %vm337_vm0, %v299_v2  ;;  %2990 = vmatmul.msk.f32.vlgmr.msra.gmra.mxu3 %vm337_vm0, %v324_v3  ;;  %v327_v11 = vld [vmem:[%s3416_s16 + $0xe0] sm:$0xff]  ;;  %v305_v12 = vld [vmem:[%s3416_s16 + $0x30] sm:$0xff]  ;;  %v328_v13 = vld [vmem:[%s3416_s16 + $0xe8] sm:$0xff]  ;;  %585 = vst.msk [vmem:[#allocation2 + $0x198] sm:$0xff] %vm579_vm1, %v3274_v18  ;;  %s3278_s15 = smov 12   ;;  %s3279_s20 = smov 20  }
  0x2e   : > { %v306_v14 = vld [vmem:[%s3416_s16 + $0x38] sm:$0xff]  ;;  %v307_v15 = vld [vmem:[%s3416_s16 + $0x40] sm:$0xff]  ;;  %v308_v16 = vld [vmem:[%s3416_s16 + $0x48] sm:$0xff]  ;;  %586 = vst.msk [vmem:[#allocation2 + $0x1a0] sm:$0xff] %vm579_vm1, %v3274_v18  ;;  %s3280_s9 = smov 28   ;;  %s3281_s21 = smov 24  }
  0x2f   : > { %v309_v17 = vld [vmem:[%s3416_s16 + $0x50] sm:$0xff]  ;;  %v310_v19 = vld [vmem:[%s3416_s16 + $0x58] sm:$0xff]  ;;  %590 = vst.msk [vmem:[#allocation2 + $0x18] sm:$0x1] %vm588_vm2, %v3274_v18  ;;  %v311_v21 = vld [vmem:[%s3416_s16 + $0x60] sm:$0xff]  ;;  %s3282_s23 = smov 32  }
  0x30   : > { %591 = vst.msk [vmem:[#allocation2 + $0x30] sm:$0x1] %vm588_vm2, %v3274_v18  ;;  %v312_v23 = vld [vmem:[%s3416_s16 + $0x68] sm:$0xff]  ;;  %v313_v24 = vld [vmem:[%s3416_s16 + $0x70] sm:$0xff]  ;;  %v314_v25 = vld [vmem:[%s3416_s16 + $0x78] sm:$0xff]  ;;  %vm882_vm4 = vcmask 64544  }
  0x31   : > { %592 = vst.msk [vmem:[#allocation2 + $0x48] sm:$0x1] %vm588_vm2, %v3274_v18  ;;  %v3515_v26 = vld [vmem:[%s4825_s2] ss:$0 sm:$0xff]  ;;  %v315_v29 = vld [vmem:[%s3416_s16 + $0x80] sm:$0xff]  ;;  %v316_v36 = vld [vmem:[%s3416_s16 + $0x88] sm:$0xff] }
  0x32   : > { %v722_v20 = vld [vmem:[#allocation2 + $0x1] sm:$0xff]  ;;  %593 = vst.msk [vmem:[#allocation2 + $0x60] sm:$0x1] %vm588_vm2, %v3274_v18  ;;  %v319_v1 = vld [vmem:[%s3416_s16 + $0xa0] sm:$0xff]  ;;  %vm1075_vm5 = vcmask 97344   ;;  %vm1268_vm6 = vcmask 130144  }
  0x33   : > { %786 = vrot.lane.b32.xlu0 %v722_v20, %s3275_s12  ;;  %594 = vst.msk [vmem:[#allocation2 + $0x78] sm:$0x1] %vm588_vm2, %v3274_v18  ;;  %v915_v22 = vld [vmem:[#allocation2 + $0x2] sm:$0xff]  ;;  %vm1461_vm7 = vcmask 162944   ;;  %vm1654_vm8 = vcmask 195744   ;;  %vm2405_vm9 = vcmask 1043456  }
  0x34   : > { %595 = vst.msk [vmem:[#allocation2 + $0x90] sm:$0x1] %vm588_vm2, %v3274_v18  ;;  %979 = vrot.lane.b32.xlu2 %v915_v22, %s3276_s17  ;;  %v317_v45 = vld [vmem:[%s3416_s16 + $0x90] sm:$0xff]  ;;  %v318_v55 = vld [vmem:[%s3416_s16 + $0x98] sm:$0xff]  ;;  %vm1848_vm10 = vcmask 228544   ;;  %vm2041_vm11 = vcmask 261344  }
  0x35   : > { %2966 = vmatmul.msk.f32.gmra.mxu0 %vm337_vm0, %v300_v4  ;;  %2991 = vmatmul.msk.f32.gmra.mxu3 %vm337_vm0, %v325_v5  ;;  %596 = vst.msk [vmem:[#allocation2 + $0xa8] sm:$0x1] %vm588_vm2, %v3274_v18  ;;  %vm2234_vm12 = vcmask 294144   ;;  %vm2308_vm13 = vcmask 293888   ;;  %s4245_s18 = scalar_lea.vmem [#allocation7], %s2963_s10 }
  0x36   : > { %597 = vst.msk [vmem:[#allocation2 + $0xc0] sm:$0x1] %vm588_vm2, %v3274_v18  ;;  %s2880_s11 = sshll.u32 %s4245_s18, 4  ;;  %s2881_s11 = int_to_ptr.vmem [resolvable:$true] %s2880_s11 }
  0x37   : > { %598 = vst.msk [vmem:[#allocation2 + $0xd8] sm:$0x1] %vm588_vm2, %v3274_v18 }
  0x38   : > { %599 = vst.msk [vmem:[#allocation2 + $0xf0] sm:$0x1] %vm588_vm2, %v3274_v18 }
  0x39   : > { %600 = vst.msk [vmem:[#allocation2 + $0x108] sm:$0x1] %vm588_vm2, %v3274_v18 }
  0x3a   : > { %601 = vst.msk [vmem:[#allocation2 + $0x120] sm:$0x1] %vm588_vm2, %v3274_v18 }
  0x3b   : > { %602 = vst.msk [vmem:[#allocation2 + $0x138] sm:$0x1] %vm588_vm2, %v3274_v18 }
  0x3c   : > { %603 = vst.msk [vmem:[#allocation2 + $0x150] sm:$0x1] %vm588_vm2, %v3274_v18 }
  0x3d   : > { %2967 = vmatmul.msk.f32.gmra.mxu0 %vm337_vm0, %v301_v6  ;;  %2992 = vmatmul.msk.f32.gmra.mxu3 %vm337_vm0, %v326_v7  ;;  %604 = vst.msk [vmem:[#allocation2 + $0x168] sm:$0x1] %vm588_vm2, %v3274_v18  ;;  %v320_v7 = vld [vmem:[%s3416_s16 + $0xa8] sm:$0xff] }
  0x3e   : > { %605 = vst.msk [vmem:[#allocation2 + $0x180] sm:$0x1] %vm588_vm2, %v3274_v18 }
  0x3f   : > { %608 = vst.msk [vmem:[#allocation2 + $0x29] sm:$0x1] %vm588_vm2, %v3274_v18 }
  0x40   : > { %609 = vst.msk [vmem:[#allocation2 + $0x41] sm:$0x1] %vm588_vm2, %v3274_v18 }
  0x41   : > { %610 = vst.msk [vmem:[#allocation2 + $0x59] sm:$0x1] %vm588_vm2, %v3274_v18 }
  0x42   : > { %611 = vst.msk [vmem:[#allocation2 + $0x71] sm:$0x1] %vm588_vm2, %v3274_v18 }
  0x43   : > { %612 = vst.msk [vmem:[#allocation2 + $0x89] sm:$0x1] %vm588_vm2, %v3274_v18 }
  0x44   : > { %613 = vst.msk [vmem:[#allocation2 + $0xa1] sm:$0x1] %vm588_vm2, %v3274_v18 }
  0x45   : > { %2968 = vmatmul.msk.f32.gmra.mxu0 %vm337_vm0, %v302_v8  ;;  %2993 = vmatmul.msk.f32.gmra.mxu3 %vm337_vm0, %v327_v11  ;;  %614 = vst.msk [vmem:[#allocation2 + $0xb9] sm:$0x1] %vm588_vm2, %v3274_v18 }
  0x46   : > { %615 = vst.msk [vmem:[#allocation2 + $0xd1] sm:$0x1] %vm588_vm2, %v3274_v18 }
  0x47   : > { %616 = vst.msk [vmem:[#allocation2 + $0xe9] sm:$0x1] %vm588_vm2, %v3274_v18 }
  0x48   : > { %617 = vst.msk [vmem:[#allocation2 + $0x101] sm:$0x1] %vm588_vm2, %v3274_v18 }
  0x49   : > { %618 = vst.msk [vmem:[#allocation2 + $0x119] sm:$0x1] %vm588_vm2, %v3274_v18 }
  0x4a   : > { %619 = vst.msk [vmem:[#allocation2 + $0x131] sm:$0x1] %vm588_vm2, %v3274_v18 }
  0x4b   : > { %620 = vst.msk [vmem:[#allocation2 + $0x149] sm:$0x1] %vm588_vm2, %v3274_v18 }
  0x4c   : > { %621 = vst.msk [vmem:[#allocation2 + $0x161] sm:$0x1] %vm588_vm2, %v3274_v18 }
  0x4d   : > { %2969 = vmatmul.msk.f32.gmra.mxu0 %vm337_vm0, %v303_v9  ;;  %2994 = vmatmul.msk.f32.gmra.mxu3 %vm337_vm0, %v328_v13  ;;  %622 = vst.msk [vmem:[#allocation2 + $0x179] sm:$0x1] %vm588_vm2, %v3274_v18 }
  0x4e   : > { %623 = vst.msk [vmem:[#allocation2 + $0x191] sm:$0x1] %vm588_vm2, %v3274_v18 }
  0x4f   : > { %606 = vst.msk [vmem:[#allocation2 + $0x198] sm:$0x1] %vm588_vm2, %v3274_v18 }
  0x50   : > { %583 = vst.msk [vmem:[#allocation2 + $0x10] sm:$0x3] %vm582_vm3, %v3274_v18 }
  0x51   : > { %587 = vst.msk [vmem:[#allocation2 + $0x1a8] sm:$0x3] %vm582_vm3, %v3274_v18 }
  0x52   : > { %607 = vst.msk [vmem:[#allocation2 + $0x11] sm:$0x1] %vm588_vm2, %v3274_v18 }
  0x53   : > { %624 = vst.msk [vmem:[#allocation2 + $0x1a9] sm:$0x1] %vm588_vm2, %v3274_v18 }
  0x55   : > { %2970 = vmatmul.msk.f32.gmra.mxu0 %vm337_vm0, %v304_v10 }
  0x57   : > { %v723_v28 = vld [vmem:[#allocation2 + $0x9] sm:$0xff] }
  0x58   : > { %788 = vrot.lane.b32.xlu0 %v723_v28, %s3275_s12 }
  0x59   : > { %v916_v33 = vld [vmem:[#allocation2 + $0xa] sm:$0xff] }
  0x5d   : > { %2971 = vmatmul.msk.f32.gmra.mxu0 %vm337_vm0, %v305_v12 }
  0x60   : > { %981 = vrot.lane.b32.xlu0 %v916_v33, %s3276_s17 }
  0x65   : > { %2972 = vmatmul.msk.f32.gmra.mxu0 %vm337_vm0, %v306_v14  ;;  %v321_v14 = vld [vmem:[%s3416_s16 + $0xb0] sm:$0xff] }
  0x6d   : > { %2973 = vmatmul.msk.f32.gmra.mxu0 %vm337_vm0, %v307_v15 }
  0x75   : > { %2974 = vmatmul.msk.f32.gmra.mxu0 %vm337_vm0, %v308_v16 }
  0x7d   : > { %2975 = vmatmul.msk.f32.gmra.mxu0 %vm337_vm0, %v309_v17 }
  0x85   : > { %2976 = vmatmul.msk.f32.gmra.mxu0 %vm337_vm0, %v310_v19 }
  0x8d   : > { %2977 = vmatmul.msk.f32.gmra.mxu0 %vm337_vm0, %v311_v21  ;;  %v322_v21 = vld [vmem:[%s3416_s16 + $0xb8] sm:$0xff] }
  0x95   : > { %2978 = vmatmul.msk.f32.gmra.mxu0 %vm337_vm0, %v312_v23 }
  0x9d   : > { %2979 = vmatmul.msk.f32.gmra.mxu0 %vm337_vm0, %v313_v24 }
  0xa5   : > { %2980 = vmatmul.msk.f32.gmra.mxu0 %vm337_vm0, %v314_v25 }
  0xaa   : > { %v451_v27 = vpop.f32.mrf.mxu0 }
  0xab   : > { %v452_v30 = vadd.f32 %v3515_v26, %v451_v27 }
  0xad   : > { %v547_v31 = vmax.f32 %v452_v30, 0.0  ;;  %2981 = vmatmul.msk.f32.gmra.mxu0 %vm337_vm0, %v315_v29  ;;  %v323_v30 = vld [vmem:[%s3416_s16 + $0xc0] sm:$0xff] }
  0xaf   : > { %626 = vst.msk [vmem:[#allocation2 + $0x19] sm:$0xff] %vm579_vm1, %v547_v31 }
  0xb0   : > { %v526_v32 = vpop.f32.mrf.mxu3 }
  0xb1   : > { %v527_v34 = vadd.f32 %v3515_v26, %v526_v32 }
  0xb2   : > { %v454_v35 = vpop.f32.mrf.mxu0 }
  0xb3   : > { %v572_v37 = vmax.f32 %v527_v34, 0.0  ;;  %v455_v38 = vadd.f32 %v3515_v26, %v454_v35 }
  0xb5   : > { %651 = vst.msk [vmem:[#allocation2 + $0x141] sm:$0xff] %vm579_vm1, %v572_v37  ;;  %v548_v39 = vmax.f32 %v455_v38, 0.0  ;;  %2982 = vmatmul.msk.f32.gmra.mxu0 %vm337_vm0, %v316_v36 }
  0xb6   : > { %v1301_v40 = vld [vmem:[#allocation2 + $0x19] sm:$0xff] }
  0xb7   : > { %v1108_v41 = vld [vmem:[#allocation2 + $0x18] sm:$0xff]  ;;  %627 = vst.msk [vmem:[#allocation2 + $0x21] sm:$0xff] %vm579_vm1, %v548_v39  ;;  %1365 = vrot.lane.b32.xlu2 %v1301_v40, %s3277_s19  ;;  %790 = vrot.lane.b32.xlu1 %v1301_v40, %s3275_s12 }
  0xb8   : > { %v529_v42 = vpop.f32.mrf.mxu3  ;;  %692 = vst.msk [vmem:[#allocation3 + $0x10] sm:$0xff] %vm579_vm1, %v1108_v41 }
  0xb9   : > { %v530_v43 = vadd.f32 %v3515_v26, %v529_v42 }
  0xba   : > { %v457_v44 = vpop.f32.mrf.mxu0 }
  0xbb   : > { %v458_v46 = vadd.f32 %v3515_v26, %v457_v44  ;;  %v573_v47 = vmax.f32 %v530_v43, 0.0  ;;  %v658_v43 = vld [vmem:[#allocation2] sm:$0xff] }
  0xbc   : > { %v749_v48 = vld [vmem:[#allocation2 + $0x141] sm:$0xff]  ;;  %690 = vst.msk [vmem:[#allocation3] sm:$0xff] %vm579_vm1, %v658_v43  ;;  %v2301_v43 = vld [vmem:[%s4826_s3 + $0x10] sm:$0xff] }
  0xbd   : > { %v942_v49 = vld [vmem:[#allocation2 + $0x142] sm:$0xff]  ;;  %v549_v50 = vmax.f32 %v458_v46, 0.0  ;;  %840 = vrot.lane.b32.xlu0 %v749_v48, %s3275_s12  ;;  %2983 = vmatmul.msk.f32.gmra.mxu0 %vm337_vm0, %v317_v45  ;;  %652 = vst.msk [vmem:[#allocation2 + $0x151] sm:$0xff] %vm579_vm1, %v573_v47  ;;  %v787_v45 = vpop.permute.xlu0 %786 }
  0xbe   : > { %v1109_v51 = vld [vmem:[#allocation2 + $0x20] sm:$0xff]  ;;  %883 = vst.msk [vmem:[#allocation3] sm:$0xff] %vm882_vm4, %v787_v45  ;;  %v2300_v45 = vld [vmem:[%s4826_s3 + $0x8] sm:$0xff] }
  0xbf   : > { %628 = vst.msk [vmem:[#allocation2 + $0x31] sm:$0xff] %vm579_vm1, %v549_v50  ;;  %1033 = vrot.lane.b32.xlu2 %v942_v49, %s3276_s17  ;;  %1172 = vrot.lane.b32.xlu1 %v1108_v41, %s3278_s15  ;;  %v1494_v57 = vld [vmem:[#allocation2 + $0x1a] sm:$0xff]  ;;  %v918_v59 = vld [vmem:[#allocation2 + $0x22] sm:$0xff] }
  0xc0   : > { %v532_v52 = vpop.f32.mrf.mxu3  ;;  %693 = vst.msk [vmem:[#allocation3 + $0x18] sm:$0xff] %vm579_vm1, %v1109_v51  ;;  %v725_v60 = vld [vmem:[#allocation2 + $0x21] sm:$0xff] }
  0xc1   : > { %v533_v53 = vadd.f32 %v3515_v26, %v532_v52  ;;  %v659_v49 = vld [vmem:[#allocation2 + $0x8] sm:$0xff] }
  0xc2   : > { %v460_v54 = vpop.f32.mrf.mxu0  ;;  %691 = vst.msk [vmem:[#allocation3 + $0x8] sm:$0xff] %vm579_vm1, %v659_v49 }
  0xc3   : > { %v461_v56 = vadd.f32 %v3515_v26, %v460_v54  ;;  %v574_v58 = vmax.f32 %v533_v53, 0.0  ;;  %v980_v54 = vpop.permute.xlu2 %979 }
  0xc4   : > { %v686_v61 = vld [vmem:[#allocation2 + $0x150] sm:$0xff]  ;;  %1076 = vst.msk [vmem:[#allocation3] sm:$0xff] %vm1075_vm5, %v980_v54 }
  0xc5   : > { %v550_v62 = vmax.f32 %v461_v56, 0.0  ;;  %2984 = vmatmul.msk.f32.gmra.mxu0 %vm337_vm0, %v318_v55  ;;  %1558 = vrot.lane.b32.xlu0 %v1494_v57, %s3279_s20  ;;  %653 = vst.msk [vmem:[#allocation2 + $0x159] sm:$0xff] %vm579_vm1, %v574_v58  ;;  %v750_v18 = vld [vmem:[#allocation2 + $0x151] sm:$0xff] }
  0xc6   : > { %718 = vst.msk [vmem:[#allocation3 + $0xe0] sm:$0xff] %vm579_vm1, %v686_v61  ;;  %v1110_v63 = vld [vmem:[#allocation2 + $0x30] sm:$0xff] }
  0xc7   : > { %629 = vst.msk [vmem:[#allocation2 + $0x39] sm:$0xff] %vm579_vm1, %v550_v62  ;;  %985 = vrot.lane.b32.xlu2 %v918_v59, %s3276_s17  ;;  %792 = vrot.lane.b32.xlu1 %v725_v60, %s3275_s12  ;;  %v1303_v8 = vld [vmem:[#allocation2 + $0x31] sm:$0xff] }
  0xc8   : > { %694 = vst.msk [vmem:[#allocation3 + $0x20] sm:$0xff] %vm579_vm1, %v1110_v63  ;;  %v535_v11 = vpop.f32.mrf.mxu3 }
  0xc9   : > { %v536_v12 = vadd.f32 %v3515_v26, %v535_v11 }
  0xca   : > { %v463_v0 = vpop.f32.mrf.mxu0 }
  0xcb   : > { %v464_v2 = vadd.f32 %v3515_v26, %v463_v0  ;;  %v575_v17 = vmax.f32 %v536_v12, 0.0 }
  0xcc   : > { %v687_v4 = vld [vmem:[#allocation2 + $0x158] sm:$0xff] }
  0xcd   : > { %v551_v3 = vmax.f32 %v464_v2, 0.0  ;;  %2985 = vmatmul.msk.f32.gmra.mxu0 %vm337_vm0, %v319_v1  ;;  %1176 = vrot.lane.b32.xlu0 %v1110_v63, %s3278_s15  ;;  %719 = vst.msk [vmem:[#allocation3 + $0xe8] sm:$0xff] %vm579_vm1, %v687_v4  ;;  %v943_v15 = vld [vmem:[#allocation2 + $0x152] sm:$0xff]  ;;  %v944_v34 = vld [vmem:[#allocation2 + $0x15a] sm:$0xff] }
  0xce   : > { %v3557_v5 = vld [vmem:[#allocation2 + $0x38] sm:$0xff]  ;;  %654 = vst.msk [vmem:[#allocation2 + $0x169] sm:$0xff] %vm579_vm1, %v575_v17 }
  0xcf   : > { %630 = vst.msk [vmem:[#allocation2 + $0x49] sm:$0xff] %vm579_vm1, %v551_v3  ;;  %1174 = vrot.lane.b32.xlu2 %v1109_v51, %s3278_s15  ;;  %983 = vrot.lane.b32.xlu1 %v1494_v57, %s3276_s17  ;;  %v3583_v23 = vld [vmem:[#allocation2 + $0x32] sm:$0xff]  ;;  %v920_v42 = vld [vmem:[#allocation2 + $0x3a] sm:$0xff] }
  0xd0   : > { %695 = vst.msk [vmem:[#allocation3 + $0x28] sm:$0xff] %vm579_vm1, %v3557_v5  ;;  %v538_v25 = vpop.f32.mrf.mxu3  ;;  %v751_v33 = vld [vmem:[#allocation2 + $0x159] sm:$0xff] }
  0xd1   : > { %v539_v27 = vadd.f32 %v3515_v26, %v538_v25  ;;  %v727_v41 = vld [vmem:[#allocation2 + $0x39] sm:$0xff] }
  0xd2   : > { %v466_v6 = vpop.f32.mrf.mxu0 }
  0xd3   : > { %v467_v9 = vadd.f32 %v3515_v26, %v466_v6  ;;  %v576_v28 = vmax.f32 %v539_v27, 0.0 }
  0xd5   : > { %v552_v10 = vmax.f32 %v467_v9, 0.0  ;;  %2986 = vmatmul.msk.f32.gmra.mxu0 %vm337_vm0, %v320_v7  ;;  %1369 = vrot.lane.b32.xlu0 %v1303_v8, %s3277_s19  ;;  %655 = vst.msk [vmem:[#allocation2 + $0x171] sm:$0xff] %vm579_vm1, %v576_v28  ;;  %v688_v36 = vld [vmem:[#allocation2 + $0x168] sm:$0xff] }
  0xd6   : > { %v1112_v35 = vld [vmem:[#allocation2 + $0x48] sm:$0xff]  ;;  %720 = vst.msk [vmem:[#allocation3 + $0xf0] sm:$0xff] %vm579_vm1, %v688_v36 }
  0xd7   : > { %631 = vst.msk [vmem:[#allocation2 + $0x51] sm:$0xff] %vm579_vm1, %v552_v10  ;;  %1560 = vrot.lane.b32.xlu2 %v918_v59, %s3279_s20  ;;  %1367 = vrot.lane.b32.xlu1 %v725_v60, %s3277_s19  ;;  %v752_v51 = vld [vmem:[#allocation2 + $0x169] sm:$0xff] }
  0xd8   : > { %696 = vst.msk [vmem:[#allocation3 + $0x30] sm:$0xff] %vm579_vm1, %v1112_v35  ;;  %v728_v56 = vld [vmem:[#allocation2 + $0x49] sm:$0xff] }
  0xda   : > { %v469_v13 = vpop.f32.mrf.mxu0 }
  0xdb   : > { %v470_v16 = vadd.f32 %v3515_v26, %v469_v13 }
  0xdc   : > { %v689_v37 = vld [vmem:[#allocation2 + $0x170] sm:$0xff] }
  0xdd   : > { %v553_v19 = vmax.f32 %v470_v16, 0.0  ;;  %2987 = vmatmul.msk.f32.gmra.mxu0 %vm337_vm0, %v321_v14  ;;  %1035 = vrot.lane.b32.xlu0 %v943_v15, %s3276_s17  ;;  %721 = vst.msk [vmem:[#allocation3 + $0xf8] sm:$0xff] %vm579_vm1, %v689_v37  ;;  %v946_v1 = vld [vmem:[#allocation2 + $0x172] sm:$0xff]  ;;  %v945_v6 = vld [vmem:[#allocation2 + $0x16a] sm:$0xff]  ;;  %v2303_v37 = vld [vmem:[%s4826_s3 + $0x20] sm:$0xf] }
  0xde   : > { %v3610_v44 = vld [vmem:[#allocation2 + $0x50] sm:$0xff]  ;;  %2997 = vmatpush.msk.msra.mxu1 %vm2405_vm9, %v2303_v37  ;;  %3072 = vmatpush.msk.msrb.mxu3 %vm2405_vm9, %v2303_v37 }
  0xdf   : > { %632 = vst.msk [vmem:[#allocation2 + $0x61] sm:$0xff] %vm579_vm1, %v553_v19  ;;  %794 = vrot.lane.b32.xlu2 %v1303_v8, %s3275_s12  ;;  %842 = vrot.lane.b32.xlu1 %v750_v18, %s3275_s12  ;;  %v753_v3 = vld [vmem:[#allocation2 + $0x171] sm:$0xff] }
  0xe0   : > { %697 = vst.msk [vmem:[#allocation3 + $0x38] sm:$0xff] %vm579_vm1, %v3610_v44  ;;  %v922_v9 = vld [vmem:[#allocation2 + $0x52] sm:$0xff]  ;;  %v921_v14 = vld [vmem:[#allocation2 + $0x4a] sm:$0xff] }
  0xe1   : > { %v729_v11 = vld [vmem:[#allocation2 + $0x51] sm:$0xff] }
  0xe2   : > { %v472_v20 = vpop.f32.mrf.mxu0 }
  0xe3   : > { %v473_v22 = vadd.f32 %v3515_v26, %v472_v20 }
  0xe5   : > { %v554_v24 = vmax.f32 %v473_v22, 0.0  ;;  %2988 = vmatmul.msk.f32.gmra.mxu0 %vm337_vm0, %v322_v21  ;;  %987 = vrot.lane.b32.xlu0 %v3583_v23, %s3276_s17 }
  0xe6   : > { %v3654_v15 = vld [vmem:[#allocation2 + $0x60] sm:$0xff] }
  0xe7   : > { %633 = vst.msk [vmem:[#allocation2 + $0x69] sm:$0xff] %vm579_vm1, %v554_v24  ;;  %1945 = vrot.lane.b32.xlu2 %v1303_v8, %s3280_s9  ;;  %1752 = vrot.lane.b32.xlu1 %v1110_v63, %s3281_s21 }
  0xe8   : > { %698 = vst.msk [vmem:[#allocation3 + $0x40] sm:$0xff] %vm579_vm1, %v3654_v15 }
  0xea   : > { %v475_v29 = vpop.f32.mrf.mxu0 }
  0xeb   : > { %v476_v31 = vadd.f32 %v3515_v26, %v475_v29 }
  0xed   : > { %v555_v32 = vmax.f32 %v476_v31, 0.0  ;;  %2989 = vmatmul.msk.f32.gmra.mxu0 %vm337_vm0, %v323_v30  ;;  %2138 = vrot.lane.b32.xlu0 %v3583_v23, %s3282_s23 }
  0xee   : > { %v3656_v16 = vld [vmem:[#allocation2 + $0x68] sm:$0xff] }
  0xef   : > { %634 = vst.msk [vmem:[#allocation2 + $0x79] sm:$0xff] %vm579_vm1, %v555_v32  ;;  %844 = vrot.lane.b32.xlu2 %v751_v33, %s3275_s12  ;;  %1037 = vrot.lane.b32.xlu1 %v944_v34, %s3276_s17  ;;  %v730_v34 = vld [vmem:[#allocation2 + $0x61] sm:$0xff]  ;;  %v3729_v54 = vld [vmem:[#allocation2 + $0x6a] sm:$0xff] }
  0xf0   : > { %699 = vst.msk [vmem:[#allocation3 + $0x48] sm:$0xff] %vm579_vm1, %v3656_v16 }
  0xf2   : > { %v478_v38 = vpop.f32.mrf.mxu0 }
  0xf3   : > { %v479_v39 = vadd.f32 %v3515_v26, %v478_v38  ;;  %v2302_v38 = vld [vmem:[%s4826_s3 + $0x18] sm:$0xff] }
  0xf4   : > { %2421 = vmatpush.msra.mxu1 %v2302_v38  ;;  %3073 = vmatpush.msrb.mxu3 %v2302_v38 }
  0xf5   : > { %v556_v40 = vmax.f32 %v479_v39, 0.0  ;;  %1754 = vrot.lane.b32.xlu0 %v3557_v5, %s3281_s21 }
  0xf6   : > { %2422 = vmatpush.msra.mxu1 %v2301_v43  ;;  %3074 = vmatpush.msrb.mxu3 %v2301_v43 }
  0xf7   : > { %635 = vst.msk [vmem:[#allocation2 + $0x81] sm:$0xff] %vm579_vm1, %v556_v40  ;;  %796 = vrot.lane.b32.xlu2 %v727_v41, %s3275_s12  ;;  %989 = vrot.lane.b32.xlu1 %v920_v42, %s3276_s17 }
  0xf8   : > { %2423 = vmatpush.msra.mxu1 %v2300_v45  ;;  %3075 = vmatpush.msrb.mxu3 %v2300_v45 }
  0xfa   : > { %v481_v46 = vpop.f32.mrf.mxu0 }
  0xfb   : > { %v482_v47 = vadd.f32 %v3515_v26, %v481_v46  ;;  %v3712_v46 = vld [vmem:[#allocation2 + $0x78] sm:$0xff] }
  0xfc   : > { %700 = vst.msk [vmem:[#allocation3 + $0x50] sm:$0xff] %vm579_vm1, %v3712_v46 }
  0xfd   : > { %v557_v48 = vmax.f32 %v482_v47, 0.0  ;;  %1564 = vrot.lane.b32.xlu0 %v920_v42, %s3279_s20 }
  0xfe   : > { %v3828_v37 = vld [vmem:[#allocation2 + $0x82] sm:$0xff] }
  0xff   : > { %636 = vst.msk [vmem:[#allocation2 + $0x91] sm:$0xff] %vm579_vm1, %v557_v48  ;;  %2140 = vrot.lane.b32.xlu2 %v920_v42, %s3282_s23  ;;  %1178 = vrot.lane.b32.xlu1 %v3557_v5, %s3278_s15  ;;  %v789_v5 = vpop.permute.xlu0 %788  ;;  %v2299_v48 = vld [vmem:[%s4826_s3] sm:$0xff] }
 0x100   : > { %884 = vst.msk [vmem:[#allocation3 + $0x8] sm:$0xff] %vm882_vm4, %v789_v5  ;;  %2424 = vmatpush.msra.mxu1 %v2299_v48  ;;  %3076 = vmatpush.msrb.mxu3 %v2299_v48 }
 0x102   : > { %v484_v50 = vpop.f32.mrf.mxu0 }
 0x103   : > { %v485_v52 = vadd.f32 %v3515_v26, %v484_v50 }
 0x105   : > { %v558_v53 = vmax.f32 %v485_v52, 0.0  ;;  %846 = vrot.lane.b32.xlu0 %v752_v51, %s3275_s12  ;;  %v731_v52 = vld [vmem:[#allocation2 + $0x69] sm:$0xff] }
 0x107   : > { %637 = vst.msk [vmem:[#allocation2 + $0x99] sm:$0xff] %vm579_vm1, %v558_v53  ;;  %1371 = vrot.lane.b32.xlu2 %v727_v41, %s3277_s19  ;;  %1947 = vrot.lane.b32.xlu1 %v727_v41, %s3280_s9  ;;  %v982_v13 = vpop.permute.xlu0 %981 }
 0x108   : > { %1077 = vst.msk [vmem:[#allocation3 + $0x8] sm:$0xff] %vm1075_vm5, %v982_v13 }
 0x10a   : > { %v487_v55 = vpop.f32.mrf.mxu0 }
 0x10b   : > { %v488_v57 = vadd.f32 %v3515_v26, %v487_v55 }
 0x10d   : > { %v559_v58 = vmax.f32 %v488_v57, 0.0  ;;  %798 = vrot.lane.b32.xlu0 %v728_v56, %s3275_s12  ;;  %v3736_v57 = vld [vmem:[#allocation2 + $0x80] sm:$0xff] }
 0x10e   : > { %701 = vst.msk [vmem:[#allocation3 + $0x58] sm:$0xff] %vm579_vm1, %v3736_v57  ;;  %v3859_v45 = vld [vmem:[#allocation2 + $0x99] sm:$0xff] }
 0x10f   : > { %638 = vst.msk [vmem:[#allocation2 + $0xa9] sm:$0xff] %vm579_vm1, %v559_v58  ;;  %1180 = vrot.lane.b32.xlu2 %v1112_v35, %s3278_s15  ;;  %1562 = vrot.lane.b32.xlu1 %v3583_v23, %s3279_s20 }
 0x111   : > { %v1366_v59 = vpop.permute.xlu2 %1365 }
 0x112   : > { %v490_v60 = vpop.f32.mrf.mxu0 }
 0x113   : > { %v491_v61 = vadd.f32 %v3515_v26, %v490_v60 }
 0x115   : > { %v560_v62 = vmax.f32 %v491_v61, 0.0  ;;  %1949 = vrot.lane.b32.xlu0 %v728_v56, %s3280_s9 }
 0x117   : > { %639 = vst.msk [vmem:[#allocation2 + $0xb1] sm:$0xff] %vm579_vm1, %v560_v62  ;;  %1756 = vrot.lane.b32.xlu2 %v1112_v35, %s3281_s21  ;;  %1373 = vrot.lane.b32.xlu1 %v728_v56, %s3277_s19 }
 0x119   : > { %v3640_v63 = vpop.permute.xlu2 %1033 }
 0x11a   : > { %v493_v0 = vpop.f32.mrf.mxu0 }
 0x11b   : > { %v494_v2 = vadd.f32 %v3515_v26, %v493_v0  ;;  %v923_v0 = vld [vmem:[#allocation2 + $0x62] sm:$0xff] }
 0x11d   : > { %v561_v4 = vmax.f32 %v494_v2, 0.0  ;;  %1041 = vrot.lane.b32.xlu0 %v946_v1, %s3276_s17 }
 0x11f   : > { %640 = vst.msk [vmem:[#allocation2 + $0xc1] sm:$0xff] %vm579_vm1, %v561_v4  ;;  %1039 = vrot.lane.b32.xlu2 %v945_v6, %s3276_s17  ;;  %848 = vrot.lane.b32.xlu1 %v753_v3, %s3275_s12 }
 0x121   : > { %v986_v7 = vpop.permute.xlu2 %985 }
 0x122   : > { %v496_v8 = vpop.f32.mrf.mxu0 }
 0x123   : > { %v497_v10 = vadd.f32 %v3515_v26, %v496_v8 }
 0x125   : > { %v562_v12 = vmax.f32 %v497_v10, 0.0  ;;  %993 = vrot.lane.b32.xlu0 %v922_v9, %s3276_s17 }
 0x127   : > { %641 = vst.msk [vmem:[#allocation2 + $0xc9] sm:$0xff] %vm579_vm1, %v562_v12  ;;  %991 = vrot.lane.b32.xlu2 %v921_v14, %s3276_s17  ;;  %800 = vrot.lane.b32.xlu1 %v729_v11, %s3275_s12 }
 0x129   : > { %v1175_v17 = vpop.permute.xlu2 %1174  ;;  %v791_v18 = vpop.permute.xlu1 %790 }
 0x12a   : > { %1270 = vst.msk [vmem:[#allocation3 + $0x8] sm:$0xff] %vm1268_vm6, %v1175_v17  ;;  %v499_v19 = vpop.f32.mrf.mxu0 }
 0x12b   : > { %885 = vst.msk [vmem:[#allocation3 + $0x10] sm:$0xff] %vm882_vm4, %v791_v18  ;;  %v500_v20 = vadd.f32 %v3515_v26, %v499_v19  ;;  %v3774_v19 = vld [vmem:[#allocation2 + $0x98] sm:$0xff] }
 0x12c   : > { %703 = vst.msk [vmem:[#allocation3 + $0x68] sm:$0xff] %vm579_vm1, %v3774_v19 }
 0x12d   : > { %v563_v21 = vmax.f32 %v500_v20, 0.0  ;;  %1182 = vrot.lane.b32.xlu0 %v3610_v44, %s3278_s15 }
 0x12f   : > { %642 = vst.msk [vmem:[#allocation2 + $0xd9] sm:$0xff] %vm579_vm1, %v563_v21  ;;  %v3668_v22 = vpop.permute.xlu0 %840  ;;  %1951 = vrot.lane.b32.xlu2 %v729_v11, %s3280_s9  ;;  %2142 = vrot.lane.b32.xlu1 %v921_v14, %s3282_s23 }
 0x131   : > { %v3672_v23 = vpop.permute.xlu2 %1560  ;;  %v1173_v24 = vpop.permute.xlu1 %1172 }
 0x132   : > { %1269 = vst.msk [vmem:[#allocation3] sm:$0xff] %vm1268_vm6, %v1173_v24  ;;  %v502_v25 = vpop.f32.mrf.mxu0 }
 0x133   : > { %v503_v27 = vadd.f32 %v3515_v26, %v502_v25  ;;  %1462 = vst.msk [vmem:[#allocation3] sm:$0xff] %vm1461_vm7, %v1366_v59 }
 0x135   : > { %v564_v28 = vmax.f32 %v503_v27, 0.0  ;;  %2144 = vrot.lane.b32.xlu0 %v922_v9, %s3282_s23 }
 0x137   : > { %643 = vst.msk [vmem:[#allocation2 + $0xe1] sm:$0xff] %vm579_vm1, %v564_v28  ;;  %v1559_v29 = vpop.permute.xlu0 %1558  ;;  %1566 = vrot.lane.b32.xlu2 %v921_v14, %s3279_s20  ;;  %1758 = vrot.lane.b32.xlu1 %v3610_v44, %s3281_s21 }
 0x138   : > { %1655 = vst.msk [vmem:[#allocation3] sm:$0xff] %vm1654_vm8, %v1559_v29 }
 0x139   : > { %v795_v30 = vpop.permute.xlu2 %794  ;;  %v793_v31 = vpop.permute.xlu1 %792 }
 0x13a   : > { %887 = vst.msk [vmem:[#allocation3 + $0x20] sm:$0xff] %vm882_vm4, %v795_v30  ;;  %v505_v32 = vpop.f32.mrf.mxu0  ;;  %v3805_v30 = vld [vmem:[#allocation2 + $0xa8] sm:$0xff] }
 0x13b   : > { %886 = vst.msk [vmem:[#allocation3 + $0x18] sm:$0xff] %vm882_vm4, %v793_v31  ;;  %v506_v33 = vadd.f32 %v3515_v26, %v505_v32 }
 0x13c   : > { %1079 = vst.msk [vmem:[#allocation3 + $0x18] sm:$0xff] %vm1075_vm5, %v986_v7 }
 0x13d   : > { %v565_v35 = vmax.f32 %v506_v33, 0.0  ;;  %1375 = vrot.lane.b32.xlu0 %v729_v11, %s3277_s19  ;;  %704 = vst.msk [vmem:[#allocation3 + $0x70] sm:$0xff] %vm579_vm1, %v3805_v30  ;;  %v3813_v33 = vld [vmem:[#allocation2 + $0x91] sm:$0xff] }
 0x13f   : > { %644 = vst.msk [vmem:[#allocation2 + $0xf1] sm:$0xff] %vm579_vm1, %v565_v35  ;;  %v1177_v36 = vpop.permute.xlu0 %1176  ;;  %802 = vrot.lane.b32.xlu2 %v730_v34, %s3275_s12  ;;  %1568 = vrot.lane.b32.xlu1 %v922_v9, %s3279_s20  ;;  %v3822_v35 = vld [vmem:[#allocation2 + $0xc0] sm:$0xff] }
 0x140   : > { %706 = vst.msk [vmem:[#allocation3 + $0x80] sm:$0xff] %vm579_vm1, %v3822_v35 }
 0x141   : > { %v3699_v39 = vpop.permute.xlu2 %1945  ;;  %v984_v40 = vpop.permute.xlu1 %983 }
 0x142   : > { %1078 = vst.msk [vmem:[#allocation3 + $0x10] sm:$0xff] %vm1075_vm5, %v984_v40  ;;  %v508_v41 = vpop.f32.mrf.mxu0 }
 0x143   : > { %1271 = vst.msk [vmem:[#allocation3 + $0x10] sm:$0xff] %vm1268_vm6, %v1177_v36  ;;  %v509_v42 = vadd.f32 %v3515_v26, %v508_v41  ;;  %v3826_v36 = vld [vmem:[#allocation2 + $0x81] sm:$0xff] }
 0x144   : > { %v3842_v41 = vld [vmem:[#allocation2 + $0x9a] sm:$0xff] }
 0x145   : > { %v566_v44 = vmax.f32 %v509_v42, 0.0  ;;  %1760 = vrot.lane.b32.xlu0 %v3654_v15, %s3281_s21 }
 0x147   : > { %645 = vst.msk [vmem:[#allocation2 + $0xf9] sm:$0xff] %vm579_vm1, %v566_v44  ;;  %v1370_v47 = vpop.permute.xlu0 %1369  ;;  %1377 = vrot.lane.b32.xlu2 %v730_v34, %s3277_s19  ;;  %1184 = vrot.lane.b32.xlu1 %v3654_v15, %s3278_s15  ;;  %v3770_v15 = vld [vmem:[#allocation2 + $0x90] sm:$0xff] }
 0x148   : > { %1464 = vst.msk [vmem:[#allocation3 + $0x10] sm:$0xff] %vm1461_vm7, %v1370_v47 }
 0x149   : > { %v845_v49 = vpop.permute.xlu2 %844  ;;  %v1368_v50 = vpop.permute.xlu1 %1367  ;;  %702 = vst.msk [vmem:[#allocation3 + $0x60] sm:$0xff] %vm579_vm1, %v3770_v15 }
 0x14a   : > { %912 = vst.msk [vmem:[#allocation3 + $0xe8] sm:$0xff] %vm882_vm4, %v845_v49  ;;  %v511_v51 = vpop.f32.mrf.mxu0 }
 0x14b   : > { %1463 = vst.msk [vmem:[#allocation3 + $0x8] sm:$0xff] %vm1461_vm7, %v1368_v50  ;;  %v512_v53 = vadd.f32 %v3515_v26, %v511_v51  ;;  %v3870_v50 = vld [vmem:[#allocation2 + $0xb1] sm:$0xff]  ;;  %v3874_v51 = vld [vmem:[#allocation2 + $0xa9] sm:$0xff] }
 0x14c   : > { %1656 = vst.msk [vmem:[#allocation3 + $0x8] sm:$0xff] %vm1654_vm8, %v3672_v23  ;;  %v3783_v23 = vld [vmem:[#allocation2 + $0x79] sm:$0xff] }
 0x14d   : > { %v567_v55 = vmax.f32 %v512_v53, 0.0  ;;  %804 = vrot.lane.b32.xlu0 %v731_v52, %s3275_s12  ;;  %v3882_v53 = vld [vmem:[#allocation2 + $0xd8] sm:$0xff] }
 0x14e   : > { %708 = vst.msk [vmem:[#allocation3 + $0x90] sm:$0xff] %vm579_vm1, %v3882_v53 }
 0x14f   : > { %646 = vst.msk [vmem:[#allocation2 + $0x109] sm:$0xff] %vm579_vm1, %v567_v55  ;;  %v1036_v56 = vpop.permute.xlu0 %1035  ;;  %997 = vrot.lane.b32.xlu2 %v3729_v54, %s3276_s17  ;;  %1953 = vrot.lane.b32.xlu1 %v730_v34, %s3280_s9  ;;  %v3815_v34 = vld [vmem:[#allocation2 + $0xb0] sm:$0xff] }
 0x150   : > { %705 = vst.msk [vmem:[#allocation3 + $0x78] sm:$0xff] %vm579_vm1, %v3815_v34 }
 0x151   : > { %v797_v58 = vpop.permute.xlu2 %796  ;;  %v843_v59 = vpop.permute.xlu1 %842 }
 0x152   : > { %888 = vst.msk [vmem:[#allocation3 + $0x28] sm:$0xff] %vm882_vm4, %v797_v58  ;;  %v514_v60 = vpop.f32.mrf.mxu0  ;;  %v3893_v58 = vld [vmem:[#allocation2 + $0xb2] sm:$0xff] }
 0x153   : > { %911 = vst.msk [vmem:[#allocation3 + $0xe0] sm:$0xff] %vm882_vm4, %v843_v59  ;;  %v515_v61 = vadd.f32 %v3515_v26, %v514_v60  ;;  %v3897_v59 = vld [vmem:[#allocation2 + $0xaa] sm:$0xff] }
 0x154   : > { %1104 = vst.msk [vmem:[#allocation3 + $0xe0] sm:$0xff] %vm1075_vm5, %v1036_v56 }
 0x155   : > { %v568_v62 = vmax.f32 %v515_v61, 0.0  ;;  %1955 = vrot.lane.b32.xlu0 %v731_v52, %s3280_s9 }
 0x157   : > { %647 = vst.msk [vmem:[#allocation2 + $0x111] sm:$0xff] %vm579_vm1, %v568_v62  ;;  %v988_v1 = vpop.permute.xlu0 %987  ;;  %1186 = vrot.lane.b32.xlu2 %v3656_v16, %s3278_s15  ;;  %995 = vrot.lane.b32.xlu1 %v923_v0, %s3276_s17 }
 0x158   : > { %1080 = vst.msk [vmem:[#allocation3 + $0x20] sm:$0xff] %vm1075_vm5, %v988_v1  ;;  %v3907_v1 = vld [vmem:[#allocation2 + $0xc1] sm:$0xff] }
 0x159   : > { %v3750_v2 = vpop.permute.xlu2 %2140  ;;  %v1753_v3 = vpop.permute.xlu1 %1752 }
 0x15a   : > { %1849 = vst.msk [vmem:[#allocation3] sm:$0xff] %vm1848_vm10, %v1753_v3  ;;  %v517_v4 = vpop.f32.mrf.mxu0 }
 0x15b   : > { %v518_v5 = vadd.f32 %v3515_v26, %v517_v4  ;;  %2042 = vst.msk [vmem:[#allocation3] sm:$0xff] %vm2041_vm11, %v3699_v39 }
 0x15d   : > { %v569_v6 = vmax.f32 %v518_v5, 0.0  ;;  %1570 = vrot.lane.b32.xlu0 %v923_v0, %s3279_s20 }
 0x15f   : > { %648 = vst.msk [vmem:[#allocation2 + $0x121] sm:$0xff] %vm579_vm1, %v569_v6  ;;  %v2139_v7 = vpop.permute.xlu0 %2138  ;;  %2146 = vrot.lane.b32.xlu2 %v923_v0, %s3282_s23  ;;  %2148 = vrot.lane.b32.xlu1 %v3729_v54, %s3282_s23  ;;  %v3905_v0 = vld [vmem:[#allocation2 + $0xc2] sm:$0xff]  ;;  %v3917_v6 = vld [vmem:[#allocation2 + $0xd9] sm:$0xff] }
 0x160   : > { %2235 = vst.msk [vmem:[#allocation3] sm:$0xff] %vm2234_vm12, %v2139_v7  ;;  %v3921_v7 = vld [vmem:[#allocation2 + $0xc9] sm:$0xff] }
 0x161   : > { %v1372_v8 = vpop.permute.xlu2 %1371  ;;  %v1038_v9 = vpop.permute.xlu1 %1037 }
 0x162   : > { %1105 = vst.msk [vmem:[#allocation3 + $0xe8] sm:$0xff] %vm1075_vm5, %v1038_v9  ;;  %v520_v10 = vpop.f32.mrf.mxu0 }
 0x163   : > { %v521_v11 = vadd.f32 %v3515_v26, %v520_v10  ;;  %v3931_v10 = vld [vmem:[#allocation2 + $0xf0] sm:$0xff] }
 0x164   : > { %710 = vst.msk [vmem:[#allocation3 + $0xa0] sm:$0xff] %vm579_vm1, %v3931_v10 }
 0x165   : > { %v570_v12 = vmax.f32 %v521_v11, 0.0  ;;  %1188 = vrot.lane.b32.xlu0 %v3712_v46, %s3278_s15 }
 0x167   : > { %649 = vst.msk [vmem:[#allocation2 + $0x129] sm:$0xff] %vm579_vm1, %v570_v12  ;;  %v1755_v13 = vpop.permute.xlu0 %1754  ;;  %1762 = vrot.lane.b32.xlu2 %v3656_v16, %s3281_s21  ;;  %1379 = vrot.lane.b32.xlu1 %v731_v52, %s3277_s19  ;;  %v2267_v14 = vld [vmem:[#allocation3] sm:$0xff]  ;;  %v3779_v16 = vld [vmem:[#allocation2 + $0x7a] sm:$0xff] }
 0x168   : > { %1850 = vst.msk [vmem:[#allocation3 + $0x8] sm:$0xff] %vm1848_vm10, %v1755_v13  ;;  %2998 = vmatmul.msk.f32.vlgmr.msra.gmra.mxu1 %vm2308_vm13, %v2267_v14  ;;  %v3934_v13 = vld [vmem:[#allocation2 + $0xf8] sm:$0xff]  ;;  %v3939_v14 = vld [vmem:[#allocation2 + $0xe2] sm:$0xff] }
 0x169   : > { %v1181_v17 = vpop.permute.xlu2 %1180  ;;  %v990_v18 = vpop.permute.xlu1 %989  ;;  %711 = vst.msk [vmem:[#allocation3 + $0xa8] sm:$0xff] %vm579_vm1, %v3934_v13 }
 0x16a   : > { %1273 = vst.msk [vmem:[#allocation3 + $0x20] sm:$0xff] %vm1268_vm6, %v1181_v17  ;;  %v523_v20 = vpop.f32.mrf.mxu0 }
 0x16b   : > { %1081 = vst.msk [vmem:[#allocation3 + $0x28] sm:$0xff] %vm1075_vm5, %v990_v18  ;;  %v524_v21 = vadd.f32 %v3515_v26, %v523_v20  ;;  %v3943_v18 = vld [vmem:[#allocation2 + $0x108] sm:$0xff] }
 0x16c   : > { %712 = vst.msk [vmem:[#allocation3 + $0xb0] sm:$0xff] %vm579_vm1, %v3943_v18 }
 0x16d   : > { %v571_v24 = vmax.f32 %v524_v21, 0.0  ;;  %999 = vrot.lane.b32.xlu0 %v3779_v16, %s3276_s17 }
 0x16f   : > { %650 = vst.msk [vmem:[#allocation2 + $0x139] sm:$0xff] %vm579_vm1, %v571_v24  ;;  %v1565_v25 = vpop.permute.xlu0 %1564  ;;  %1572 = vrot.lane.b32.xlu2 %v3729_v54, %s3279_s20  ;;  %806 = vrot.lane.b32.xlu1 %v3783_v23, %s3275_s12  ;;  %v3884_v54 = vld [vmem:[#allocation2 + $0xe0] sm:$0xff] }
 0x170   : > { %709 = vst.msk [vmem:[#allocation3 + $0x98] sm:$0xff] %vm579_vm1, %v3884_v54 }
 0x171   : > { %v1757_v27 = vpop.permute.xlu2 %1756  ;;  %v1179_v26 = vpop.permute.xlu1 %1178 }
 0x172   : > { %1272 = vst.msk [vmem:[#allocation3 + $0x18] sm:$0xff] %vm1268_vm6, %v1179_v26 }
 0x173   : > { %1465 = vst.msk [vmem:[#allocation3 + $0x18] sm:$0xff] %vm1461_vm7, %v1372_v8  ;;  %v3923_v8 = vld [vmem:[#allocation2 + $0xca] sm:$0xff] }
 0x174   : > { %1658 = vst.msk [vmem:[#allocation3 + $0x18] sm:$0xff] %vm1654_vm8, %v1565_v25  ;;  %v3958_v25 = vld [vmem:[#allocation2 + $0xe1] sm:$0xff] }
 0x175   : > { %2150 = vrot.lane.b32.xlu0 %v3779_v16, %s3282_s23 }
 0x176   : > { %v3799_v28 = vld [vmem:[#allocation2 + $0x140] sm:$0xff] }
 0x177   : > { %v847_v29 = vpop.permute.xlu0 %846  ;;  %1957 = vrot.lane.b32.xlu2 %v3783_v23, %s3280_s9  ;;  %1764 = vrot.lane.b32.xlu1 %v3712_v46, %s3281_s21  ;;  %717 = vst.msk [vmem:[#allocation3 + $0xd8] sm:$0xff] %vm579_vm1, %v3799_v28  ;;  %v3863_v46 = vld [vmem:[#allocation2 + $0x92] sm:$0xff] }
 0x178   : > { %913 = vst.msk [vmem:[#allocation3 + $0xf0] sm:$0xff] %vm882_vm4, %v847_v29 }
 0x179   : > { %v1040_v31 = vpop.permute.xlu2 %1039  ;;  %v1948_v32 = vpop.permute.xlu1 %1947  ;;  %910 = vst.msk [vmem:[#allocation3 + $0xd8] sm:$0xff] %vm882_vm4, %v3668_v22 }
 0x17a   : > { %1106 = vst.msk [vmem:[#allocation3 + $0xf0] sm:$0xff] %vm1075_vm5, %v1040_v31 }
 0x17b   : > { %2043 = vst.msk [vmem:[#allocation3 + $0x8] sm:$0xff] %vm2041_vm11, %v1948_v32  ;;  %v3971_v32 = vld [vmem:[#allocation2 + $0x110] sm:$0xff] }
 0x17c   : > { %2236 = vst.msk [vmem:[#allocation3 + $0x8] sm:$0xff] %vm2234_vm12, %v3750_v2 }
 0x17d   : > { %810 = vrot.lane.b32.xlu0 %v3813_v33, %s3275_s12  ;;  %1103 = vst.msk [vmem:[#allocation3 + $0xd8] sm:$0xff] %vm1075_vm5, %v3640_v63  ;;  %v3853_v63 = vld [vmem:[#allocation2 + $0xc8] sm:$0xff] }
 0x17e   : > { %707 = vst.msk [vmem:[#allocation3 + $0x88] sm:$0xff] %vm579_vm1, %v3853_v63 }
 0x17f   : > { %v799_v38 = vpop.permute.xlu0 %798  ;;  %808 = vrot.lane.b32.xlu2 %v3826_v36, %s3275_s12  ;;  %1001 = vrot.lane.b32.xlu1 %v3828_v37, %s3276_s17  ;;  %713 = vst.msk [vmem:[#allocation3 + $0xb8] sm:$0xff] %vm579_vm1, %v3971_v32 }
 0x180   : > { %889 = vst.msk [vmem:[#allocation3 + $0x30] sm:$0xff] %vm882_vm4, %v799_v38  ;;  %v3975_v38 = vld [vmem:[#allocation2 + $0xf1] sm:$0xff] }
 0x181   : > { %v992_v39 = vpop.permute.xlu2 %991  ;;  %v1563_v40 = vpop.permute.xlu1 %1562 }
 0x182   : > { %1082 = vst.msk [vmem:[#allocation3 + $0x30] sm:$0xff] %vm1075_vm5, %v992_v39 }
 0x183   : > { %1657 = vst.msk [vmem:[#allocation3 + $0x10] sm:$0xff] %vm1654_vm8, %v1563_v40  ;;  %v2268_v42 = vld [vmem:[#allocation3 + $0x8] sm:$0xff]  ;;  %v2554_v40 = vld [vmem:[%s4828_s5] sm:$0xf] }
 0x184   : > { %1851 = vst.msk [vmem:[#allocation3 + $0x10] sm:$0xff] %vm1848_vm10, %v1757_v27  ;;  %2999 = vmatmul.msk.f32.gmra.mxu1 %vm2308_vm13, %v2268_v42  ;;  %v3962_v27 = vld [vmem:[#allocation2 + $0xda] sm:$0xff]  ;;  %3030 = vmatpush.msk.msra.mxu2 %vm2405_vm9, %v2554_v40 }
 0x185   : > { %1005 = vrot.lane.b32.xlu0 %v3842_v41, %s3276_s17  ;;  %3077 = vmatpush.msk.msra.mxu3 %vm2405_vm9, %v2554_v40 }
 0x187   : > { %v1950_v22 = vpop.permute.xlu0 %1949  ;;  %1192 = vrot.lane.b32.xlu2 %v3770_v15, %s3278_s15  ;;  %1190 = vrot.lane.b32.xlu1 %v3736_v57, %s3278_s15 }
 0x188   : > { %2044 = vst.msk [vmem:[#allocation3 + $0x10] sm:$0xff] %vm2041_vm11, %v1950_v22 }
 0x189   : > { %v1952_v43 = vpop.permute.xlu2 %1951  ;;  %v1374_v44 = vpop.permute.xlu1 %1373 }
 0x18a   : > { %1466 = vst.msk [vmem:[#allocation3 + $0x20] sm:$0xff] %vm1461_vm7, %v1374_v44  ;;  %v3995_v44 = vld [vmem:[#allocation2 + $0xfa] sm:$0xff] }
 0x18d   : > { %1194 = vrot.lane.b32.xlu0 %v3774_v19, %s3278_s15 }
 0x18f   : > { %v1042_v47 = vpop.permute.xlu0 %1041  ;;  %1003 = vrot.lane.b32.xlu2 %v3863_v46, %s3276_s17  ;;  %812 = vrot.lane.b32.xlu1 %v3859_v45, %s3275_s12 }
 0x191   : > { %v1567_v48 = vpop.permute.xlu2 %1566  ;;  %v849_v49 = vpop.permute.xlu1 %848 }
 0x192   : > { %1659 = vst.msk [vmem:[#allocation3 + $0x20] sm:$0xff] %vm1654_vm8, %v1567_v48  ;;  %v4003_v48 = vld [vmem:[#allocation2 + $0x120] sm:$0xff] }
 0x193   : > { %914 = vst.msk [vmem:[#allocation3 + $0xf8] sm:$0xff] %vm882_vm4, %v849_v49  ;;  %v4006_v49 = vld [vmem:[#allocation2 + $0x128] sm:$0xff] }
 0x194   : > { %1107 = vst.msk [vmem:[#allocation3 + $0xf8] sm:$0xff] %vm1075_vm5, %v1042_v47 }
 0x195   : > { %816 = vrot.lane.b32.xlu0 %v3870_v50, %s3275_s12  ;;  %714 = vst.msk [vmem:[#allocation3 + $0xc0] sm:$0xff] %vm579_vm1, %v4003_v48 }
 0x196   : > { %715 = vst.msk [vmem:[#allocation3 + $0xc8] sm:$0xff] %vm579_vm1, %v4006_v49 }
 0x197   : > { %v994_v52 = vpop.permute.xlu0 %993  ;;  %814 = vrot.lane.b32.xlu2 %v3874_v51, %s3275_s12  ;;  %1196 = vrot.lane.b32.xlu1 %v3805_v30, %s3278_s15 }
 0x199   : > { %v803_v55 = vpop.permute.xlu2 %802  ;;  %v801_v56 = vpop.permute.xlu1 %800 }
 0x19a   : > { %891 = vst.msk [vmem:[#allocation3 + $0x40] sm:$0xff] %vm882_vm4, %v803_v55 }
 0x19b   : > { %890 = vst.msk [vmem:[#allocation3 + $0x38] sm:$0xff] %vm882_vm4, %v801_v56  ;;  %v4015_v56 = vld [vmem:[#allocation2 + $0xf2] sm:$0xff] }
 0x19c   : > { %1083 = vst.msk [vmem:[#allocation3 + $0x38] sm:$0xff] %vm1075_vm5, %v994_v52 }
 0x19d   : > { %1200 = vrot.lane.b32.xlu0 %v3822_v35, %s3278_s15 }
 0x19f   : > { %v1183_v60 = vpop.permute.xlu0 %1182  ;;  %1009 = vrot.lane.b32.xlu2 %v3893_v58, %s3276_s17  ;;  %1007 = vrot.lane.b32.xlu1 %v3897_v59, %s3276_s17 }
 0x1a0   : > { %1274 = vst.msk [vmem:[#allocation3 + $0x28] sm:$0xff] %vm1268_vm6, %v1183_v60 }
 0x1a1   : > { %v1378_v61 = vpop.permute.xlu2 %1377  ;;  %v2143_v62 = vpop.permute.xlu1 %2142 }
 0x1a2   : > { %2237 = vst.msk [vmem:[#allocation3 + $0x10] sm:$0xff] %vm2234_vm12, %v2143_v62 }
 0x1a5   : > { %1011 = vrot.lane.b32.xlu0 %v3905_v0, %s3276_s17 }
 0x1a7   : > { %v2145_v2 = vpop.permute.xlu0 %2144  ;;  %1198 = vrot.lane.b32.xlu2 %v3815_v34, %s3278_s15  ;;  %818 = vrot.lane.b32.xlu1 %v3907_v1, %s3275_s12 }
 0x1a9   : > { %v998_v3 = vpop.permute.xlu2 %997  ;;  %v1759_v4 = vpop.permute.xlu1 %1758  ;;  %v2269_v5 = vld [vmem:[#allocation3 + $0x10] sm:$0xff] }
 0x1aa   : > { %1852 = vst.msk [vmem:[#allocation3 + $0x18] sm:$0xff] %vm1848_vm10, %v1759_v4  ;;  %3000 = vmatmul.msk.f32.gmra.mxu1 %vm2308_vm13, %v2269_v5  ;;  %v4028_v4 = vld [vmem:[#allocation2 + $0x109] sm:$0xff] }
 0x1ab   : > { %2045 = vst.msk [vmem:[#allocation3 + $0x18] sm:$0xff] %vm2041_vm11, %v1952_v43 }
 0x1ac   : > { %2238 = vst.msk [vmem:[#allocation3 + $0x18] sm:$0xff] %vm2234_vm12, %v2145_v2 }
 0x1ad   : > { %822 = vrot.lane.b32.xlu0 %v3917_v6, %s3275_s12 }
 0x1af   : > { %v1376_v9 = vpop.permute.xlu0 %1375  ;;  %820 = vrot.lane.b32.xlu2 %v3921_v7, %s3275_s12  ;;  %1013 = vrot.lane.b32.xlu1 %v3923_v8, %s3276_s17 }
 0x1b0   : > { %1467 = vst.msk [vmem:[#allocation3 + $0x28] sm:$0xff] %vm1461_vm7, %v1376_v9 }
 0x1b1   : > { %v1187_v11 = vpop.permute.xlu2 %1186  ;;  %v1569_v12 = vpop.permute.xlu1 %1568 }
 0x1b2   : > { %1276 = vst.msk [vmem:[#allocation3 + $0x38] sm:$0xff] %vm1268_vm6, %v1187_v11 }
 0x1b3   : > { %1660 = vst.msk [vmem:[#allocation3 + $0x28] sm:$0xff] %vm1654_vm8, %v1569_v12  ;;  %v2270_v17 = vld [vmem:[#allocation3 + $0x18] sm:$0xff] }
 0x1b4   : > { %3001 = vmatmul.msk.f32.gmra.mxu1 %vm2308_vm13, %v2270_v17  ;;  %v4037_v12 = vld [vmem:[#allocation2 + $0x121] sm:$0xff]  ;;  %v4042_v17 = vld [vmem:[%s4827_s4] ss:$0 sm:$0xff] }
 0x1b5   : > { %1017 = vrot.lane.b32.xlu0 %v3939_v14, %s3276_s17 }
 0x1b7   : > { %v1761_v20 = vpop.permute.xlu0 %1760  ;;  %1204 = vrot.lane.b32.xlu2 %v3882_v53, %s3278_s15  ;;  %1202 = vrot.lane.b32.xlu1 %v3853_v63, %s3278_s15 }
 0x1b8   : > { %1853 = vst.msk [vmem:[#allocation3 + $0x20] sm:$0xff] %vm1848_vm10, %v1761_v20  ;;  %v4046_v20 = vld [vmem:[#allocation2 + $0x111] sm:$0xff] }
 0x1b9   : > { %v2147_v21 = vpop.permute.xlu2 %2146  ;;  %v1185_v24 = vpop.permute.xlu1 %1184 }
 0x1ba   : > { %1275 = vst.msk [vmem:[#allocation3 + $0x30] sm:$0xff] %vm1268_vm6, %v1185_v24 }
 0x1bb   : > { %1468 = vst.msk [vmem:[#allocation3 + $0x30] sm:$0xff] %vm1461_vm7, %v1378_v61 }
 0x1bd   : > { %1206 = vrot.lane.b32.xlu0 %v3884_v54, %s3278_s15 }
 0x1bf   : > { %v805_v26 = vpop.permute.xlu0 %804  ;;  %1015 = vrot.lane.b32.xlu2 %v3962_v27, %s3276_s17  ;;  %824 = vrot.lane.b32.xlu1 %v3958_v25, %s3275_s12 }
 0x1c0   : > { %892 = vst.msk [vmem:[#allocation3 + $0x48] sm:$0xff] %vm882_vm4, %v805_v26 }
 0x1c1   : > { %1085 = vst.msk [vmem:[#allocation3 + $0x48] sm:$0xff] %vm1075_vm5, %v998_v3  ;;  %v1763_v29 = vpop.permute.xlu2 %1762  ;;  %v1954_v31 = vpop.permute.xlu1 %1953  ;;  %v4024_v3 = vld [vmem:[#allocation2 + $0x10a] sm:$0xff] }
 0x1c2   : > { %1854 = vst.msk [vmem:[#allocation3 + $0x28] sm:$0xff] %vm1848_vm10, %v1763_v29 }
 0x1c3   : > { %2046 = vst.msk [vmem:[#allocation3 + $0x20] sm:$0xff] %vm2041_vm11, %v1954_v31  ;;  %v4057_v31 = vld [vmem:[#allocation2 + $0x138] sm:$0xff] }
 0x1c4   : > { %2239 = vst.msk [vmem:[#allocation3 + $0x20] sm:$0xff] %vm2234_vm12, %v2147_v21  ;;  %v4048_v21 = vld [vmem:[#allocation2 + $0x112] sm:$0xff] }
 0x1c5   : > { %1766 = vrot.lane.b32.xlu0 %v3736_v57, %s3281_s21  ;;  %v3992_v57 = vld [vmem:[#allocation2 + $0xf9] sm:$0xff]  ;;  %716 = vst.msk [vmem:[#allocation3 + $0xd0] sm:$0xff] %vm579_vm1, %v4057_v31 }
 0x1c7   : > { %v1956_v39 = vpop.permute.xlu0 %1955  ;;  %826 = vrot.lane.b32.xlu2 %v3975_v38, %s3275_s12  ;;  %1959 = vrot.lane.b32.xlu1 %v3826_v36, %s3280_s9 }
 0x1c8   : > { %2047 = vst.msk [vmem:[#allocation3 + $0x28] sm:$0xff] %vm2041_vm11, %v1956_v39 }
 0x1c9   : > { %v1573_v42 = vpop.permute.xlu2 %1572  ;;  %v996_v22 = vpop.permute.xlu1 %995 }
 0x1ca   : > { %1084 = vst.msk [vmem:[#allocation3 + $0x40] sm:$0xff] %vm1075_vm5, %v996_v22  ;;  %v940_v22 = vld [vmem:[#allocation2 + $0x12a] sm:$0xff] }
 0x1cb   : > { %v2271_v43 = vld [vmem:[#allocation3 + $0x20] sm:$0xff] }
 0x1cc   : > { %3002 = vmatmul.msk.f32.gmra.mxu1 %vm2308_vm13, %v2271_v43  ;;  %v4065_v43 = vld [vmem:[#allocation2 + $0x122] sm:$0xff] }
 0x1cd   : > { %828 = vrot.lane.b32.xlu0 %v3992_v57, %s3275_s12 }
 0x1cf   : > { %v1571_v47 = vpop.permute.xlu0 %1570  ;;  %1021 = vrot.lane.b32.xlu2 %v3995_v44, %s3276_s17  ;;  %1208 = vrot.lane.b32.xlu1 %v3931_v10, %s3278_s15 }
 0x1d0   : > { %1661 = vst.msk [vmem:[#allocation3 + $0x30] sm:$0xff] %vm1654_vm8, %v1571_v47 }
 0x1d1   : > { %v1958_v52 = vpop.permute.xlu2 %1957  ;;  %v2149_v55 = vpop.permute.xlu1 %2148 }
 0x1d2   : > { %2240 = vst.msk [vmem:[#allocation3 + $0x28] sm:$0xff] %vm2234_vm12, %v2149_v55 }
 0x1d5   : > { %1212 = vrot.lane.b32.xlu0 %v3943_v18, %s3278_s15 }
 0x1d7   : > { %v1189_v60 = vpop.permute.xlu0 %1188  ;;  %1210 = vrot.lane.b32.xlu2 %v3934_v13, %s3278_s15  ;;  %1019 = vrot.lane.b32.xlu1 %v4015_v56, %s3276_s17 }
 0x1d8   : > { %1277 = vst.msk [vmem:[#allocation3 + $0x40] sm:$0xff] %vm1268_vm6, %v1189_v60 }
 0x1d9   : > { %v809_v61 = vpop.permute.xlu2 %808  ;;  %v1380_v62 = vpop.permute.xlu1 %1379  ;;  %v2272_v2 = vld [vmem:[#allocation3 + $0x28] sm:$0xff] }
 0x1da   : > { %894 = vst.msk [vmem:[#allocation3 + $0x58] sm:$0xff] %vm882_vm4, %v809_v61  ;;  %3003 = vmatmul.msk.f32.gmra.mxu1 %vm2308_vm13, %v2272_v2  ;;  %v747_v61 = vld [vmem:[#allocation2 + $0x129] sm:$0xff] }
 0x1db   : > { %1469 = vst.msk [vmem:[#allocation3 + $0x38] sm:$0xff] %vm1461_vm7, %v1380_v62 }
 0x1dc   : > { %1662 = vst.msk [vmem:[#allocation3 + $0x38] sm:$0xff] %vm1654_vm8, %v1573_v42 }
 0x1dd   : > { %1023 = vrot.lane.b32.xlu0 %v4024_v3, %s3276_s17 }
 0x1df   : > { %v1000_v5 = vpop.permute.xlu0 %999  ;;  %2152 = vrot.lane.b32.xlu2 %v3828_v37, %s3282_s23  ;;  %830 = vrot.lane.b32.xlu1 %v4028_v4, %s3275_s12 }
 0x1e1   : > { %v1193_v9 = vpop.permute.xlu2 %1192  ;;  %v807_v11 = vpop.permute.xlu1 %806 }
 0x1e2   : > { %893 = vst.msk [vmem:[#allocation3 + $0x50] sm:$0xff] %vm882_vm4, %v807_v11 }
 0x1e3   : > { %1086 = vst.msk [vmem:[#allocation3 + $0x50] sm:$0xff] %vm1075_vm5, %v1000_v5 }
 0x1e4   : > { %1279 = vst.msk [vmem:[#allocation3 + $0x50] sm:$0xff] %vm1268_vm6, %v1193_v9  ;;  %v4083_v9 = vld [vmem:[#allocation2 + $0x139] sm:$0xff] }
 0x1e5   : > { %834 = vrot.lane.b32.xlu0 %v4037_v12, %s3275_s12  ;;  %v2426_v24 = vpop.f32.mrf.mxu1 }
 0x1e6   : > { %v2427_v26 = vadd.f32 %v4042_v17, %v2426_v24 }
 0x1e7   : > { %v2151_v29 = vpop.permute.xlu0 %2150  ;;  %832 = vrot.lane.b32.xlu2 %v4046_v20, %s3275_s12  ;;  %1025 = vrot.lane.b32.xlu1 %v4048_v21, %s3276_s17 }
 0x1e8   : > { %v2522_v39 = vmax.f32 %v2427_v26, 0.0 }
 0x1e9   : > { %v1004_v40 = vpop.permute.xlu2 %1003  ;;  %v1765_v42 = vpop.permute.xlu1 %1764 }
 0x1ea   : > { %1855 = vst.msk [vmem:[#allocation3 + $0x30] sm:$0xff] %vm1848_vm10, %v1765_v42  ;;  %3031 = vmatmul.msk.f32.vlgmr.msra.gmra.mxu2 %vm579_vm1, %v2522_v39 }
 0x1eb   : > { %2048 = vst.msk [vmem:[#allocation3 + $0x30] sm:$0xff] %vm2041_vm11, %v1958_v52 }
 0x1ec   : > { %2241 = vst.msk [vmem:[#allocation3 + $0x30] sm:$0xff] %vm2234_vm12, %v2151_v29 }
 0x1ed   : > { %1029 = vrot.lane.b32.xlu0 %v940_v22, %s3276_s17 }
 0x1ef   : > { %v811_v47 = vpop.permute.xlu0 %810  ;;  %1027 = vrot.lane.b32.xlu2 %v4065_v43, %s3276_s17  ;;  %1214 = vrot.lane.b32.xlu1 %v3971_v32, %s3278_s15 }
 0x1f0   : > { %895 = vst.msk [vmem:[#allocation3 + $0x60] sm:$0xff] %vm882_vm4, %v811_v47 }
 0x1f1   : > { %1088 = vst.msk [vmem:[#allocation3 + $0x60] sm:$0xff] %vm1075_vm5, %v1004_v40  ;;  %v815_v55 = vpop.permute.xlu2 %814  ;;  %v1002_v60 = vpop.permute.xlu1 %1001 }
 0x1f2   : > { %897 = vst.msk [vmem:[#allocation3 + $0x70] sm:$0xff] %vm882_vm4, %v815_v55 }
 0x1f3   : > { %1087 = vst.msk [vmem:[#allocation3 + $0x58] sm:$0xff] %vm1075_vm5, %v1002_v60  ;;  %v2273_v52 = vld [vmem:[#allocation3 + $0x30] sm:$0xff] }
 0x1f4   : > { %3004 = vmatmul.msk.f32.gmra.mxu1 %vm2308_vm13, %v2273_v52 }
 0x1f5   : > { %1381 = vrot.lane.b32.xlu0 %v3783_v23, %s3277_s19 }
 0x1f7   : > { %v1006_v62 = vpop.permute.xlu0 %1005  ;;  %1768 = vrot.lane.b32.xlu2 %v3770_v15, %s3281_s21  ;;  %836 = vrot.lane.b32.xlu1 %v747_v61, %s3275_s12 }
 0x1f9   : > { %v1010_v2 = vpop.permute.xlu2 %1009  ;;  %v1191_v5 = vpop.permute.xlu1 %1190 }
 0x1fa   : > { %1278 = vst.msk [vmem:[#allocation3 + $0x48] sm:$0xff] %vm1268_vm6, %v1191_v5 }
 0x1fd   : > { %1961 = vrot.lane.b32.xlu0 %v3813_v33, %s3280_s9 }
 0x1ff   : > { %v1195_v11 = vpop.permute.xlu0 %1194  ;;  %838 = vrot.lane.b32.xlu2 %v4083_v9, %s3275_s12  ;;  %1574 = vrot.lane.b32.xlu1 %v3779_v16, %s3279_s20  ;;  %v4099_v16 = vld [vmem:[#allocation2 + $0x13a] sm:$0xff] }
 0x200   : > { %1280 = vst.msk [vmem:[#allocation3 + $0x58] sm:$0xff] %vm1268_vm6, %v1195_v11 }
 0x201   : > { %v2429_v15 = vpop.f32.mrf.mxu1  ;;  %v1199_v23 = vpop.permute.xlu2 %1198 }
 0x202   : > { %v2430_v24 = vadd.f32 %v4042_v17, %v2429_v15  ;;  %v813_v26 = vpop.permute.xlu1 %812 }
 0x203   : > { %896 = vst.msk [vmem:[#allocation3 + $0x68] sm:$0xff] %vm882_vm4, %v813_v26  ;;  %v329_v26 = vld [vmem:[%s3416_s16 + $0xf0] sm:$0xff] }
 0x204   : > { %v2523_v29 = vmax.f32 %v2430_v24, 0.0  ;;  %1089 = vst.msk [vmem:[#allocation3 + $0x68] sm:$0xff] %vm1075_vm5, %v1006_v62  ;;  %2995 = vmatmul.msk.f32.gmra.mxu3 %vm337_vm0, %v329_v26  ;;  %v4261_v26 = vld [vmem:[#allocation2 + $0x152] sm:$0xff] }
 0x205   : > { %1282 = vst.msk [vmem:[#allocation3 + $0x68] sm:$0xff] %vm1268_vm6, %v1199_v23  ;;  %1576 = vrot.lane.b32.xlu0 %v3828_v37, %s3279_s20 }
 0x206   : > { %3032 = vmatmul.msk.f32.gmra.mxu2 %vm579_vm1, %v2523_v29 }
 0x207   : > { %v817_v39 = vpop.permute.xlu0 %816  ;;  %1383 = vrot.lane.b32.xlu2 %v3826_v36, %s3277_s19  ;;  %1031 = vrot.lane.b32.xlu1 %v4099_v16, %s3276_s17 }
 0x208   : > { %898 = vst.msk [vmem:[#allocation3 + $0x78] sm:$0xff] %vm882_vm4, %v817_v39 }
 0x209   : > { %1091 = vst.msk [vmem:[#allocation3 + $0x78] sm:$0xff] %vm1075_vm5, %v1010_v2  ;;  %v821_v40 = vpop.permute.xlu2 %820 }
 0x20a   : > { %900 = vst.msk [vmem:[#allocation3 + $0x88] sm:$0xff] %vm882_vm4, %v821_v40  ;;  %v1197_v42 = vpop.permute.xlu1 %1196 }
 0x20b   : > { %1281 = vst.msk [vmem:[#allocation3 + $0x60] sm:$0xff] %vm1268_vm6, %v1197_v42 }
 0x20d   : > { %2156 = vrot.lane.b32.xlu0 %v3842_v41, %s3282_s23 }
 0x20f   : > { %v1201_v37 = vpop.permute.xlu0 %1200  ;;  %1963 = vrot.lane.b32.xlu2 %v3859_v45, %s3280_s9  ;;  %2154 = vrot.lane.b32.xlu1 %v3863_v46, %s3282_s23 }
 0x211   : > { %v1205_v36 = vpop.permute.xlu2 %1204 }
 0x212   : > { %v1008_v22 = vpop.permute.xlu1 %1007 }
 0x213   : > { %1090 = vst.msk [vmem:[#allocation3 + $0x70] sm:$0xff] %vm1075_vm5, %v1008_v22 }
 0x214   : > { %1283 = vst.msk [vmem:[#allocation3 + $0x70] sm:$0xff] %vm1268_vm6, %v1201_v37 }
 0x215   : > { %1772 = vrot.lane.b32.xlu0 %v3805_v30, %s3281_s21 }
 0x217   : > { %v1012_v47 = vpop.permute.xlu0 %1011  ;;  %1578 = vrot.lane.b32.xlu2 %v3863_v46, %s3279_s20  ;;  %1770 = vrot.lane.b32.xlu1 %v3774_v19, %s3281_s21 }
 0x219   : > { %v1016_v55 = vpop.permute.xlu2 %1015 }
 0x21a   : > { %v819_v60 = vpop.permute.xlu1 %818 }
 0x21b   : > { %899 = vst.msk [vmem:[#allocation3 + $0x80] sm:$0xff] %vm882_vm4, %v819_v60 }
 0x21c   : > { %1092 = vst.msk [vmem:[#allocation3 + $0x80] sm:$0xff] %vm1075_vm5, %v1012_v47 }
 0x21d   : > { %1285 = vst.msk [vmem:[#allocation3 + $0x80] sm:$0xff] %vm1268_vm6, %v1205_v36  ;;  %1387 = vrot.lane.b32.xlu0 %v3859_v45, %s3277_s19 }
 0x21f   : > { %v823_v52 = vpop.permute.xlu0 %822  ;;  %2158 = vrot.lane.b32.xlu2 %v3897_v59, %s3282_s23  ;;  %1385 = vrot.lane.b32.xlu1 %v3813_v33, %s3277_s19 }
 0x220   : > { %901 = vst.msk [vmem:[#allocation3 + $0x90] sm:$0xff] %vm882_vm4, %v823_v52 }
 0x221   : > { %1094 = vst.msk [vmem:[#allocation3 + $0x90] sm:$0xff] %vm1075_vm5, %v1016_v55  ;;  %v827_v19 = vpop.permute.xlu2 %826 }
 0x222   : > { %903 = vst.msk [vmem:[#allocation3 + $0xa0] sm:$0xff] %vm882_vm4, %v827_v19  ;;  %v1014_v30 = vpop.permute.xlu1 %1013 }
 0x223   : > { %1093 = vst.msk [vmem:[#allocation3 + $0x88] sm:$0xff] %vm1075_vm5, %v1014_v30 }
 0x225   : > { %1967 = vrot.lane.b32.xlu0 %v3870_v50, %s3280_s9 }
 0x227   : > { %v1018_v45 = vpop.permute.xlu0 %1017  ;;  %1774 = vrot.lane.b32.xlu2 %v3815_v34, %s3281_s21  ;;  %1965 = vrot.lane.b32.xlu1 %v3874_v51, %s3280_s9  ;;  %v2432_v33 = vpop.f32.mrf.mxu1 }
 0x228   : > { %v2433_v46 = vadd.f32 %v4042_v17, %v2432_v33 }
 0x229   : > { %v1022_v61 = vpop.permute.xlu2 %1021 }
 0x22a   : > { %v2524_v62 = vmax.f32 %v2433_v46, 0.0  ;;  %v1203_v2 = vpop.permute.xlu1 %1202 }
 0x22b   : > { %1284 = vst.msk [vmem:[#allocation3 + $0x78] sm:$0xff] %vm1268_vm6, %v1203_v2 }
 0x22c   : > { %3033 = vmatmul.msk.f32.gmra.mxu2 %vm579_vm1, %v2524_v62  ;;  %v4229_v62 = vld [vmem:[%s4829_s6] ss:$0 sm:$0xff] }
 0x22d   : > { %1582 = vrot.lane.b32.xlu0 %v3897_v59, %s3279_s20 }
 0x22f   : > { %v1207_v5 = vpop.permute.xlu0 %1206  ;;  %1389 = vrot.lane.b32.xlu2 %v3874_v51, %s3277_s19  ;;  %1580 = vrot.lane.b32.xlu1 %v3842_v41, %s3279_s20 }
 0x230   : > { %1286 = vst.msk [vmem:[#allocation3 + $0x88] sm:$0xff] %vm1268_vm6, %v1207_v5  ;;  %v3139_v5 = vld [vmem:[%s3416_s16] sm:$0xff] }
 0x231   : > { %v1211_v34 = vpop.permute.xlu2 %1210  ;;  %v2435_v11 = vpop.f32.mrf.mxu1 }
 0x232   : > { %v825_v15 = vpop.permute.xlu1 %824  ;;  %v2436_v23 = vadd.f32 %v4042_v17, %v2435_v11 }
 0x233   : > { %902 = vst.msk [vmem:[#allocation3 + $0x98] sm:$0xff] %vm882_vm4, %v825_v15 }
 0x234   : > { %1095 = vst.msk [vmem:[#allocation3 + $0x98] sm:$0xff] %vm1075_vm5, %v1018_v45  ;;  %v2525_v59 = vmax.f32 %v2436_v23, 0.0 }
 0x235   : > { %1288 = vst.msk [vmem:[#allocation3 + $0x98] sm:$0xff] %vm1268_vm6, %v1211_v34  ;;  %2162 = vrot.lane.b32.xlu0 %v3905_v0, %s3282_s23 }
 0x236   : > { %3034 = vmatmul.msk.f32.gmra.mxu2 %vm579_vm1, %v2525_v59 }
 0x237   : > { %v1767_v41 = vpop.permute.xlu0 %1766  ;;  %1969 = vrot.lane.b32.xlu2 %v3907_v1, %s3280_s9  ;;  %2160 = vrot.lane.b32.xlu1 %v3893_v58, %s3282_s23 }
 0x238   : > { %1856 = vst.msk [vmem:[#allocation3 + $0x38] sm:$0xff] %vm1848_vm10, %v1767_v41 }
 0x239   : > { %v2153_v51 = vpop.permute.xlu2 %2152 }
 0x23a   : > { %v1960_v24 = vpop.permute.xlu1 %1959 }
 0x23b   : > { %2049 = vst.msk [vmem:[#allocation3 + $0x38] sm:$0xff] %vm2041_vm11, %v1960_v24 }
 0x23c   : > { %2242 = vst.msk [vmem:[#allocation3 + $0x38] sm:$0xff] %vm2234_vm12, %v2153_v51 }
 0x23d   : > { %1778 = vrot.lane.b32.xlu0 %v3853_v63, %s3281_s21 }
 0x23f   : > { %v829_v29 = vpop.permute.xlu0 %828  ;;  %1584 = vrot.lane.b32.xlu2 %v3893_v58, %s3279_s20  ;;  %1776 = vrot.lane.b32.xlu1 %v3822_v35, %s3281_s21  ;;  %v330_v58 = vld [vmem:[%s3416_s16 + $0xf8] sm:$0xff] }
 0x240   : > { %904 = vst.msk [vmem:[#allocation3 + $0xa8] sm:$0xff] %vm882_vm4, %v829_v29  ;;  %2996 = vmatmul.msk.f32.gmra.mxu3 %vm337_vm0, %v330_v58 }
 0x241   : > { %1097 = vst.msk [vmem:[#allocation3 + $0xa8] sm:$0xff] %vm1075_vm5, %v1022_v61  ;;  %v833_v39 = vpop.permute.xlu2 %832 }
 0x242   : > { %906 = vst.msk [vmem:[#allocation3 + $0xb8] sm:$0xff] %vm882_vm4, %v833_v39  ;;  %v1209_v40 = vpop.permute.xlu1 %1208 }
 0x243   : > { %1287 = vst.msk [vmem:[#allocation3 + $0x90] sm:$0xff] %vm1268_vm6, %v1209_v40  ;;  %v2274_v63 = vld [vmem:[#allocation3 + $0x38] sm:$0xff] }
 0x244   : > { %3005 = vmatmul.msk.f32.gmra.mxu1 %vm2308_vm13, %v2274_v63  ;;  %v4268_v40 = vld [vmem:[#allocation2 + $0x141] sm:$0xff] }
 0x245   : > { %1393 = vrot.lane.b32.xlu0 %v3907_v1, %s3277_s19 }
 0x247   : > { %v1213_v35 = vpop.permute.xlu0 %1212  ;;  %2164 = vrot.lane.b32.xlu2 %v3923_v8, %s3282_s23  ;;  %1391 = vrot.lane.b32.xlu1 %v3870_v50, %s3277_s19 }
 0x249   : > { %v2438_v42 = vpop.f32.mrf.mxu1  ;;  %v1028_v37 = vpop.permute.xlu2 %1027 }
 0x24a   : > { %v2439_v36 = vadd.f32 %v4042_v17, %v2438_v42  ;;  %v1020_v22 = vpop.permute.xlu1 %1019 }
 0x24b   : > { %1096 = vst.msk [vmem:[#allocation3 + $0xa0] sm:$0xff] %vm1075_vm5, %v1020_v22  ;;  %v3140_v22 = vld [vmem:[%s3416_s16 + $0x8] sm:$0xff] }
 0x24c   : > { %v2526_v47 = vmax.f32 %v2439_v36, 0.0  ;;  %1289 = vst.msk [vmem:[#allocation3 + $0xa0] sm:$0xff] %vm1268_vm6, %v1213_v35 }
 0x24d   : > { %1973 = vrot.lane.b32.xlu0 %v3917_v6, %s3280_s9 }
 0x24e   : > { %3035 = vmatmul.msk.f32.gmra.mxu2 %vm579_vm1, %v2526_v47 }
 0x24f   : > { %v1024_v1 = vpop.permute.xlu0 %1023  ;;  %1780 = vrot.lane.b32.xlu2 %v3882_v53, %s3281_s21  ;;  %1971 = vrot.lane.b32.xlu1 %v3921_v7, %s3280_s9 }
 0x251   : > { %v1769_v50 = vpop.permute.xlu2 %1768 }
 0x252   : > { %v831_v55 = vpop.permute.xlu1 %830 }
 0x253   : > { %905 = vst.msk [vmem:[#allocation3 + $0xb0] sm:$0xff] %vm882_vm4, %v831_v55 }
 0x254   : > { %1098 = vst.msk [vmem:[#allocation3 + $0xb0] sm:$0xff] %vm1075_vm5, %v1024_v1  ;;  %v4284_v1 = vld [vmem:[#allocation2 + $0x142] sm:$0xff] }
 0x255   : > { %1588 = vrot.lane.b32.xlu0 %v3923_v8, %s3279_s20 }
 0x257   : > { %v835_v60 = vpop.permute.xlu0 %834  ;;  %1395 = vrot.lane.b32.xlu2 %v3921_v7, %s3277_s19  ;;  %1586 = vrot.lane.b32.xlu1 %v3905_v0, %s3279_s20  ;;  %v2441_v53 = vpop.f32.mrf.mxu1 }
 0x258   : > { %907 = vst.msk [vmem:[#allocation3 + $0xc0] sm:$0xff] %vm882_vm4, %v835_v60  ;;  %v2442_v52 = vadd.f32 %v4042_v17, %v2441_v53 }
 0x259   : > { %1100 = vst.msk [vmem:[#allocation3 + $0xc0] sm:$0xff] %vm1075_vm5, %v1028_v37  ;;  %v839_v19 = vpop.permute.xlu2 %838 }
 0x25a   : > { %v2527_v30 = vmax.f32 %v2442_v52, 0.0  ;;  %909 = vst.msk [vmem:[#allocation3 + $0xd0] sm:$0xff] %vm882_vm4, %v839_v19  ;;  %v1026_v45 = vpop.permute.xlu1 %1025  ;;  %v4295_v52 = vld [vmem:[#allocation2 + $0x159] sm:$0xff] }
 0x25b   : > { %1099 = vst.msk [vmem:[#allocation3 + $0xb8] sm:$0xff] %vm1075_vm5, %v1026_v45 }
 0x25c   : > { %3036 = vmatmul.msk.f32.gmra.mxu2 %vm579_vm1, %v2527_v30 }
 0x25d   : > { %2168 = vrot.lane.b32.xlu0 %v3939_v14, %s3282_s23 }
 0x25f   : > { %v1030_v0 = vpop.permute.xlu0 %1029  ;;  %1975 = vrot.lane.b32.xlu2 %v3958_v25, %s3280_s9  ;;  %2166 = vrot.lane.b32.xlu1 %v3962_v27, %s3282_s23 }
 0x261   : > { %v1384_v7 = vpop.permute.xlu2 %1383 }
 0x262   : > { %1471 = vst.msk [vmem:[#allocation3 + $0x48] sm:$0xff] %vm1461_vm7, %v1384_v7  ;;  %v1215_v8 = vpop.permute.xlu1 %1214 }
 0x263   : > { %1290 = vst.msk [vmem:[#allocation3 + $0xa8] sm:$0xff] %vm1268_vm6, %v1215_v8 }
 0x265   : > { %1590 = vrot.lane.b32.xlu0 %v3962_v27, %s3279_s20 }
 0x267   : > { %v1382_v33 = vpop.permute.xlu0 %1381  ;;  %1220 = vrot.lane.b32.xlu2 %v4057_v31, %s3278_s15  ;;  %1782 = vrot.lane.b32.xlu1 %v3884_v54, %s3281_s21 }
 0x268   : > { %1470 = vst.msk [vmem:[#allocation3 + $0x40] sm:$0xff] %vm1461_vm7, %v1382_v33 }
 0x269   : > { %v1964_v46 = vpop.permute.xlu2 %1963 }
 0x26a   : > { %v837_v61 = vpop.permute.xlu1 %836 }
 0x26b   : > { %908 = vst.msk [vmem:[#allocation3 + $0xc8] sm:$0xff] %vm882_vm4, %v837_v61 }
 0x26c   : > { %1101 = vst.msk [vmem:[#allocation3 + $0xc8] sm:$0xff] %vm1075_vm5, %v1030_v0  ;;  %v1713_v0 = vld [vmem:[#allocation2 + $0x158] sm:$0xff] }
 0x26d   : > { %1606 = vrot.lane.b32.xlu0 %v4099_v16, %s3279_s20  ;;  %v2675_v27 = vpop.f32.mrf.mxu2 }
 0x26e   : > { %v2676_v54 = vadd.f32 %v4229_v62, %v2675_v27 }
 0x26f   : > { %v1962_v2 = vpop.permute.xlu0 %1961  ;;  %1784 = vrot.lane.b32.xlu2 %v3931_v10, %s3281_s21  ;;  %1397 = vrot.lane.b32.xlu1 %v3917_v6, %s3277_s19  ;;  %v1712_v6 = vld [vmem:[#allocation2 + $0x150] sm:$0xff] }
 0x270   : > { %v2771_v34 = vadd.f32 %v3139_v5, %v2676_v54  ;;  %v4325_v54 = vld [vmem:[#allocation2 + $0x168] sm:$0xff] }
 0x271   : > { %v1579_v11 = vpop.permute.xlu2 %1578  ;;  %v2444_v15 = vpop.f32.mrf.mxu1 }
 0x272   : > { %v2803_v23 = vmax.f32 %v2771_v34, 0.0  ;;  %v1575_v59 = vpop.permute.xlu1 %1574  ;;  %v2445_v41 = vadd.f32 %v4042_v17, %v2444_v15 }
 0x273   : > { %1663 = vst.msk [vmem:[#allocation3 + $0x40] sm:$0xff] %vm1654_vm8, %v1575_v59 }
 0x274   : > { %2835 = vst.msk [vmem:[%s4245_s18] sm:$0xff] %vm337_vm0, %v2803_v23  ;;  %v2528_v10 = vmax.f32 %v2445_v41, 0.0 }
 0x275   : > { %1857 = vst.msk [vmem:[#allocation3 + $0x40] sm:$0xff] %vm1848_vm10, %v1769_v50  ;;  %2170 = vrot.lane.b32.xlu0 %v4015_v56, %s3282_s23 }
 0x276   : > { %2050 = vst.msk [vmem:[#allocation3 + $0x40] sm:$0xff] %vm2041_vm11, %v1962_v2  ;;  %3037 = vmatmul.msk.f32.gmra.mxu2 %vm579_vm1, %v2528_v10  ;;  %v4346_v10 = vld [vmem:[#allocation2 + $0x169] sm:$0xff] }
 0x277   : > { %v1577_v16 = vpop.permute.xlu0 %1576  ;;  %1800 = vrot.lane.b32.xlu2 %v1712_v6, %s3281_s21  ;;  %1413 = vrot.lane.b32.xlu1 %v4083_v9, %s3277_s19 }
 0x278   : > { %1664 = vst.msk [vmem:[#allocation3 + $0x48] sm:$0xff] %vm1654_vm8, %v1577_v16 }
 0x279   : > { %v2159_v51 = vpop.permute.xlu2 %2158 }
 0x27a   : > { %v1032_v24 = vpop.permute.xlu1 %1031 }
 0x27b   : > { %1102 = vst.msk [vmem:[#allocation3 + $0xd0] sm:$0xff] %vm1075_vm5, %v1032_v24 }
 0x27d   : > { %1399 = vrot.lane.b32.xlu0 %v3958_v25, %s3277_s19  ;;  %v1905_v25 = vld [vmem:[#allocation2 + $0x151] sm:$0xff] }
 0x27f   : > { %v2157_v29 = vpop.permute.xlu0 %2156  ;;  %2186 = vrot.lane.b32.xlu2 %v4261_v26, %s3282_s23  ;;  %1977 = vrot.lane.b32.xlu1 %v3975_v38, %s3280_s9 }
 0x281   : > { %v1775_v39 = vpop.permute.xlu2 %1774 }
 0x282   : > { %v2155_v9 = vpop.permute.xlu1 %2154 }
 0x283   : > { %2243 = vst.msk [vmem:[#allocation3 + $0x40] sm:$0xff] %vm2234_vm12, %v2155_v9 }
 0x285   : > { %1415 = vrot.lane.b32.xlu0 %v4268_v40, %s3277_s19 }
 0x287   : > { %v1773_v63 = vpop.permute.xlu0 %1772  ;;  %1592 = vrot.lane.b32.xlu2 %v3939_v14, %s3279_s20  ;;  %1993 = vrot.lane.b32.xlu1 %v1905_v25, %s3280_s9 }
 0x289   : > { %v2678_v58 = vpop.f32.mrf.mxu2  ;;  %v1390_v35 = vpop.permute.xlu2 %1389 }
 0x28a   : > { %v2679_v42 = vadd.f32 %v4229_v62, %v2678_v58  ;;  %1474 = vst.msk [vmem:[#allocation3 + $0x60] sm:$0xff] %vm1461_vm7, %v1390_v35  ;;  %v1771_v37 = vpop.permute.xlu1 %1770  ;;  %v2275_v36 = vld [vmem:[#allocation3 + $0x40] sm:$0xff] }
 0x28b   : > { %1858 = vst.msk [vmem:[#allocation3 + $0x48] sm:$0xff] %vm1848_vm10, %v1771_v37  ;;  %3006 = vmatmul.msk.f32.gmra.mxu1 %vm2308_vm13, %v2275_v36  ;;  %v541_v36 = vpop.f32.mrf.mxu3 }
 0x28c   : > { %v2772_v47 = vadd.f32 %v3140_v22, %v2679_v42  ;;  %2051 = vst.msk [vmem:[#allocation3 + $0x48] sm:$0xff] %vm2041_vm11, %v1964_v46 }
 0x28d   : > { %2244 = vst.msk [vmem:[#allocation3 + $0x48] sm:$0xff] %vm2234_vm12, %v2157_v29  ;;  %1979 = vrot.lane.b32.xlu0 %v3992_v57, %s3280_s9 }
 0x28e   : > { %v2804_v14 = vmax.f32 %v2772_v47, 0.0 }
 0x28f   : > { %v1388_v50 = vpop.permute.xlu0 %1387  ;;  %1608 = vrot.lane.b32.xlu2 %v4284_v1, %s3279_s20  ;;  %1222 = vrot.lane.b32.xlu1 %v3799_v28, %s3278_s15 }
 0x290   : > { %2836 = vst.msk [vmem:[%s4245_s18 + $0x8] sm:$0xff] %vm337_vm0, %v2804_v14 }
 0x291   : > { %1473 = vst.msk [vmem:[#allocation3 + $0x58] sm:$0xff] %vm1461_vm7, %v1388_v50  ;;  %v1970_v55 = vpop.permute.xlu2 %1969 }
 0x292   : > { %v1386_v60 = vpop.permute.xlu1 %1385 }
 0x293   : > { %1472 = vst.msk [vmem:[#allocation3 + $0x50] sm:$0xff] %vm1461_vm7, %v1386_v60 }
 0x294   : > { %1665 = vst.msk [vmem:[#allocation3 + $0x50] sm:$0xff] %vm1654_vm8, %v1579_v11  ;;  %v2276_v53 = vld [vmem:[#allocation3 + $0x48] sm:$0xff]  ;;  %v3141_v11 = vld [vmem:[%s3416_s16 + $0x10] sm:$0xff] }
 0x295   : > { %1859 = vst.msk [vmem:[#allocation3 + $0x50] sm:$0xff] %vm1848_vm10, %v1773_v63  ;;  %3007 = vmatmul.msk.f32.gmra.mxu1 %vm2308_vm13, %v2276_v53  ;;  %1995 = vrot.lane.b32.xlu0 %v4295_v52, %s3280_s9 }
 0x297   : > { %v1968_v19 = vpop.permute.xlu0 %1967  ;;  %2172 = vrot.lane.b32.xlu2 %v3995_v44, %s3282_s23  ;;  %1786 = vrot.lane.b32.xlu1 %v3934_v13, %s3281_s21 }
 0x299   : > { %v1585_v30 = vpop.permute.xlu2 %1584 }
 0x29a   : > { %v1966_v45 = vpop.permute.xlu1 %1965 }
 0x29b   : > { %2052 = vst.msk [vmem:[#allocation3 + $0x50] sm:$0xff] %vm2041_vm11, %v1966_v45 }
 0x29c   : > { %2245 = vst.msk [vmem:[#allocation3 + $0x50] sm:$0xff] %vm2234_vm12, %v2159_v51 }
 0x29d   : > { %1224 = vrot.lane.b32.xlu0 %v1712_v6, %s3278_s15 }
 0x29f   : > { %v1583_v7 = vpop.permute.xlu0 %1582  ;;  %1401 = vrot.lane.b32.xlu2 %v3975_v38, %s3277_s19  ;;  %1802 = vrot.lane.b32.xlu1 %v1713_v0, %s3281_s21  ;;  %v2099_v38 = vld [vmem:[#allocation2 + $0x15a] sm:$0xff] }
 0x2a0   : > { %1667 = vst.msk [vmem:[#allocation3 + $0x60] sm:$0xff] %vm1654_vm8, %v1583_v7 }
 0x2a1   : > { %v4312_v8 = vpop.permute.xlu2 %2164 }
 0x2a2   : > { %v1581_v13 = vpop.permute.xlu1 %1580 }
 0x2a3   : > { %1666 = vst.msk [vmem:[#allocation3 + $0x58] sm:$0xff] %vm1654_vm8, %v1581_v13  ;;  %v2277_v33 = vld [vmem:[#allocation3 + $0x50] sm:$0xff] }
 0x2a4   : > { %1860 = vst.msk [vmem:[#allocation3 + $0x58] sm:$0xff] %vm1848_vm10, %v1775_v39  ;;  %3008 = vmatmul.msk.f32.gmra.mxu1 %vm2308_vm13, %v2277_v33  ;;  %v3142_v39 = vld [vmem:[%s3416_s16 + $0x18] sm:$0xff] }
 0x2a5   : > { %2053 = vst.msk [vmem:[#allocation3 + $0x58] sm:$0xff] %vm2041_vm11, %v1968_v19  ;;  %1788 = vrot.lane.b32.xlu0 %v3943_v18, %s3281_s21 }
 0x2a7   : > { %v2163_v46 = vpop.permute.xlu0 %2162  ;;  %1417 = vrot.lane.b32.xlu2 %v1905_v25, %s3277_s19  ;;  %2188 = vrot.lane.b32.xlu1 %v2099_v38, %s3282_s23 }
 0x2a9   : > { %v4322_v61 = vpop.permute.xlu2 %1780 }
 0x2aa   : > { %v2161_v27 = vpop.permute.xlu1 %2160 }
 0x2ab   : > { %2246 = vst.msk [vmem:[#allocation3 + $0x58] sm:$0xff] %vm2234_vm12, %v2161_v27 }
 0x2ad   : > { %1804 = vrot.lane.b32.xlu0 %v4325_v54, %s3281_s21 }
 0x2af   : > { %v1779_v2 = vpop.permute.xlu0 %1778  ;;  %1981 = vrot.lane.b32.xlu2 %v4028_v4, %s3280_s9  ;;  %1594 = vrot.lane.b32.xlu1 %v4015_v56, %s3279_s20  ;;  %v2681_v18 = vpop.f32.mrf.mxu2  ;;  %v4339_v56 = vld [vmem:[#allocation2 + $0x16a] sm:$0xff] }
 0x2b0   : > { %v2682_v5 = vadd.f32 %v4229_v62, %v2681_v18 }
 0x2b1   : > { %v1396_v34 = vpop.permute.xlu2 %1395 }
 0x2b2   : > { %v2773_v15 = vadd.f32 %v3141_v11, %v2682_v5  ;;  %1477 = vst.msk [vmem:[#allocation3 + $0x78] sm:$0xff] %vm1461_vm7, %v1396_v34  ;;  %v1777_v23 = vpop.permute.xlu1 %1776  ;;  %v2278_v59 = vld [vmem:[#allocation3 + $0x58] sm:$0xff]  ;;  %v3145_v11 = vld [vmem:[%s3416_s16 + $0x28] sm:$0xff] }
 0x2b3   : > { %1861 = vst.msk [vmem:[#allocation3 + $0x60] sm:$0xff] %vm1848_vm10, %v1777_v23  ;;  %3009 = vmatmul.msk.f32.gmra.mxu1 %vm2308_vm13, %v2278_v59 }
 0x2b4   : > { %v2805_v41 = vmax.f32 %v2773_v15, 0.0  ;;  %2054 = vst.msk [vmem:[#allocation3 + $0x60] sm:$0xff] %vm2041_vm11, %v1970_v55 }
 0x2b5   : > { %2247 = vst.msk [vmem:[#allocation3 + $0x60] sm:$0xff] %vm2234_vm12, %v2163_v46  ;;  %2190 = vrot.lane.b32.xlu0 %v4339_v56, %s3282_s23  ;;  %v4403_v46 = vld [vmem:[#allocation2 + $0x172] sm:$0xff] }
 0x2b6   : > { %2837 = vst.msk [vmem:[%s4245_s18 + $0x10] sm:$0xff] %vm337_vm0, %v2805_v41 }
 0x2b7   : > { %v1394_v6 = vpop.permute.xlu0 %1393  ;;  %1997 = vrot.lane.b32.xlu2 %v4346_v10, %s3280_s9  ;;  %1610 = vrot.lane.b32.xlu1 %v4261_v26, %s3279_s20 }
 0x2b8   : > { %1476 = vst.msk [vmem:[#allocation3 + $0x70] sm:$0xff] %vm1461_vm7, %v1394_v6 }
 0x2b9   : > { %v4353_v16 = vpop.permute.xlu2 %1975  ;;  %v2684_v51 = vpop.f32.mrf.mxu2 }
 0x2ba   : > { %v1392_v24 = vpop.permute.xlu1 %1391  ;;  %v2685_v29 = vadd.f32 %v4229_v62, %v2684_v51 }
 0x2bb   : > { %1475 = vst.msk [vmem:[#allocation3 + $0x68] sm:$0xff] %vm1461_vm7, %v1392_v24 }
 0x2bc   : > { %1668 = vst.msk [vmem:[#allocation3 + $0x68] sm:$0xff] %vm1654_vm8, %v1585_v30  ;;  %v2774_v9 = vadd.f32 %v3142_v39, %v2685_v29  ;;  %v2279_v25 = vld [vmem:[#allocation3 + $0x60] sm:$0xff] }
 0x2bd   : > { %1862 = vst.msk [vmem:[#allocation3 + $0x68] sm:$0xff] %vm1848_vm10, %v1779_v2  ;;  %3010 = vmatmul.msk.f32.gmra.mxu1 %vm2308_vm13, %v2279_v25  ;;  %1596 = vrot.lane.b32.xlu0 %v3995_v44, %s3279_s20  ;;  %v3143_v44 = vld [vmem:[%s4825_s2] ss:$0 sm:$0xff] }
 0x2be   : > { %v2806_v26 = vmax.f32 %v2774_v9, 0.0  ;;  %v542_v22 = vadd.f32 %v3143_v44, %v541_v36 }
 0x2bf   : > { %v1974_v63 = vpop.permute.xlu0 %1973  ;;  %1226 = vrot.lane.b32.xlu2 %v1713_v0, %s3278_s15  ;;  %2174 = vrot.lane.b32.xlu1 %v4024_v3, %s3282_s23 }
 0x2c0   : > { %2838 = vst.msk [vmem:[%s4245_s18 + $0x18] sm:$0xff] %vm337_vm0, %v2806_v26  ;;  %v577_v14 = vmax.f32 %v542_v22, 0.0 }
 0x2c1   : > { %v2447_v58 = vpop.f32.mrf.mxu1  ;;  %v1221_v35 = vpop.permute.xlu2 %1220 }
 0x2c2   : > { %v2448_v42 = vadd.f32 %v4042_v17, %v2447_v58  ;;  %1293 = vst.msk [vmem:[#allocation3 + $0xc0] sm:$0xff] %vm1268_vm6, %v1221_v35  ;;  %v1972_v37 = vpop.permute.xlu1 %1971 }
 0x2c3   : > { %2055 = vst.msk [vmem:[#allocation3 + $0x68] sm:$0xff] %vm2041_vm11, %v1972_v37  ;;  %v544_v19 = vpop.f32.mrf.mxu3 }
 0x2c4   : > { %v2529_v47 = vmax.f32 %v2448_v42, 0.0  ;;  %2248 = vst.msk [vmem:[#allocation3 + $0x68] sm:$0xff] %vm2234_vm12, %v4312_v8 }
 0x2c5   : > { %1612 = vrot.lane.b32.xlu0 %v2099_v38, %s3279_s20  ;;  %656 = vst.msk [vmem:[#allocation2 + $0x181] sm:$0xff] %vm579_vm1, %v577_v14  ;;  %v4480_v14 = vld [vmem:[#allocation2 + $0x129] sm:$0xff] }
 0x2c6   : > { %3038 = vmatmul.msk.f32.gmra.mxu2 %vm579_vm1, %v2529_v47 }
 0x2c7   : > { %v1589_v50 = vpop.permute.xlu0 %1588  ;;  %1790 = vrot.lane.b32.xlu2 %v3971_v32, %s3281_s21  ;;  %1403 = vrot.lane.b32.xlu1 %v3992_v57, %s3277_s19  ;;  %v545_v32 = vadd.f32 %v3143_v44, %v544_v19  ;;  %v4391_v57 = vld [vmem:[#allocation2 + $0x170] sm:$0xff] }
 0x2c8   : > { %1670 = vst.msk [vmem:[#allocation3 + $0x78] sm:$0xff] %vm1654_vm8, %v1589_v50  ;;  %v1515_v50 = vld [vmem:[#allocation2 + $0x112] sm:$0xff] }
 0x2c9   : > { %v1785_v55 = vpop.permute.xlu2 %1784  ;;  %v578_v45 = vmax.f32 %v545_v32, 0.0 }
 0x2ca   : > { %v1587_v60 = vpop.permute.xlu1 %1586 }
 0x2cb   : > { %1669 = vst.msk [vmem:[#allocation3 + $0x70] sm:$0xff] %vm1654_vm8, %v1587_v60  ;;  %v2280_v53 = vld [vmem:[#allocation3 + $0x68] sm:$0xff] }
 0x2cc   : > { %1863 = vst.msk [vmem:[#allocation3 + $0x70] sm:$0xff] %vm1848_vm10, %v4322_v61  ;;  %3011 = vmatmul.msk.f32.gmra.mxu1 %vm2308_vm13, %v2280_v53  ;;  %v4450_v51 = vld [vmem:[#allocation2 + $0x180] sm:$0xff] }
 0x2cd   : > { %2056 = vst.msk [vmem:[#allocation3 + $0x70] sm:$0xff] %vm2041_vm11, %v1974_v63  ;;  %2176 = vrot.lane.b32.xlu0 %v4048_v21, %s3282_s23  ;;  %v3144_v21 = vld [vmem:[%s3416_s16 + $0x20] sm:$0xff]  ;;  %v3146_v63 = vld [vmem:[%s3416_s16 + $0x30] sm:$0xff] }
 0x2ce   : > { %657 = vst.msk [vmem:[#allocation2 + $0x189] sm:$0xff] %vm579_vm1, %v578_v45 }
 0x2cf   : > { %v2169_v30 = vpop.permute.xlu0 %2168  ;;  %1806 = vrot.lane.b32.xlu2 %v4391_v57, %s3281_s21  ;;  %1419 = vrot.lane.b32.xlu1 %v4295_v52, %s3277_s19 }
 0x2d1   : > { %v2687_v0 = vpop.f32.mrf.mxu2  ;;  %v1801_v7 = vpop.permute.xlu2 %1800 }
 0x2d2   : > { %v2688_v8 = vadd.f32 %v4229_v62, %v2687_v0  ;;  %v2167_v13 = vpop.permute.xlu1 %2166 }
 0x2d3   : > { %2249 = vst.msk [vmem:[#allocation3 + $0x70] sm:$0xff] %vm2234_vm12, %v2167_v13 }
 0x2d4   : > { %v2775_v33 = vadd.f32 %v3144_v21, %v2688_v8 }
 0x2d5   : > { %1405 = vrot.lane.b32.xlu0 %v4028_v4, %s3277_s19  ;;  %v1908_v4 = vld [vmem:[#allocation2 + $0x171] sm:$0xff]  ;;  %v4465_v42 = vld [vmem:[#allocation2 + $0x182] sm:$0xff] }
 0x2d6   : > { %v2807_v38 = vmax.f32 %v2775_v33, 0.0  ;;  %v4475_v47 = vld [vmem:[#allocation2 + $0x188] sm:$0xff] }
 0x2d7   : > { %v1591_v52 = vpop.permute.xlu0 %1590  ;;  %2192 = vrot.lane.b32.xlu2 %v4403_v46, %s3282_s23  ;;  %1983 = vrot.lane.b32.xlu1 %v4046_v20, %s3280_s9  ;;  %v4494_v45 = vld [vmem:[#allocation2 + $0x189] sm:$0xff] }
 0x2d8   : > { %2839 = vst.msk [vmem:[%s4245_s18 + $0x20] sm:$0xff] %vm337_vm0, %v2807_v38 }
 0x2d9   : > { %v2187_v61 = vpop.permute.xlu2 %2186 }
 0x2da   : > { %v1783_v27 = vpop.permute.xlu1 %1782  ;;  %v2281_v2 = vld [vmem:[#allocation3 + $0x70] sm:$0xff] }
 0x2db   : > { %1864 = vst.msk [vmem:[#allocation3 + $0x78] sm:$0xff] %vm1848_vm10, %v1783_v27  ;;  %3012 = vmatmul.msk.f32.gmra.mxu1 %vm2308_vm13, %v2281_v2 }
 0x2dc   : > { %2057 = vst.msk [vmem:[#allocation3 + $0x78] sm:$0xff] %vm2041_vm11, %v4353_v16  ;;  %v4435_v16 = vld [vmem:[#allocation2 + $0x181] sm:$0xff] }
 0x2dd   : > { %2250 = vst.msk [vmem:[#allocation3 + $0x78] sm:$0xff] %vm2234_vm12, %v2169_v30  ;;  %1421 = vrot.lane.b32.xlu0 %v4346_v10, %s3277_s19  ;;  %v4488_v30 = vld [vmem:[#allocation2 + $0x18a] sm:$0xff] }
 0x2df   : > { %v1607_v20 = vpop.permute.xlu0 %1606  ;;  %1598 = vrot.lane.b32.xlu2 %v4024_v3, %s3279_s20  ;;  %1999 = vrot.lane.b32.xlu1 %v1908_v4, %s3280_s9  ;;  %v2690_v18 = vpop.f32.mrf.mxu2 }
 0x2e0   : > { %v2691_v5 = vadd.f32 %v4229_v62, %v2690_v18 }
 0x2e1   : > { %v1593_v34 = vpop.permute.xlu2 %1592 }
 0x2e2   : > { %v2776_v15 = vadd.f32 %v3145_v11, %v2691_v5  ;;  %v1398_v23 = vpop.permute.xlu1 %1397 }
 0x2e3   : > { %1478 = vst.msk [vmem:[#allocation3 + $0x80] sm:$0xff] %vm1461_vm7, %v1398_v23 }
 0x2e4   : > { %v2808_v59 = vmax.f32 %v2776_v15, 0.0  ;;  %1671 = vst.msk [vmem:[#allocation3 + $0x80] sm:$0xff] %vm1654_vm8, %v1591_v52  ;;  %v2282_v41 = vld [vmem:[#allocation3 + $0x78] sm:$0xff]  ;;  %v1718_v15 = vld [vmem:[#allocation2 + $0x198] sm:$0xff] }
 0x2e5   : > { %1865 = vst.msk [vmem:[#allocation3 + $0x80] sm:$0xff] %vm1848_vm10, %v1785_v55  ;;  %3013 = vmatmul.msk.f32.gmra.mxu1 %vm2308_vm13, %v2282_v41  ;;  %1985 = vrot.lane.b32.xlu0 %v4037_v12, %s3280_s9 }
 0x2e6   : > { %2840 = vst.msk [vmem:[%s4245_s18 + $0x28] sm:$0xff] %vm337_vm0, %v2808_v59 }
 0x2e7   : > { %v2171_v3 = vpop.permute.xlu0 %2170  ;;  %1614 = vrot.lane.b32.xlu2 %v4339_v56, %s3279_s20  ;;  %1228 = vrot.lane.b32.xlu1 %v4325_v54, %s3278_s15 }
 0x2e9   : > { %v1609_v10 = vpop.permute.xlu2 %1608 }
 0x2ea   : > { %v1414_v6 = vpop.permute.xlu1 %1413 }
 0x2eb   : > { %1486 = vst.msk [vmem:[#allocation3 + $0xc0] sm:$0xff] %vm1461_vm7, %v1414_v6 }
 0x2ec   : > { %1679 = vst.msk [vmem:[#allocation3 + $0xc0] sm:$0xff] %vm1654_vm8, %v1607_v20 }
 0x2ed   : > { %1873 = vst.msk [vmem:[#allocation3 + $0xc0] sm:$0xff] %vm1848_vm10, %v1801_v7  ;;  %2001 = vrot.lane.b32.xlu0 %v4435_v16, %s3280_s9 }
 0x2ef   : > { %v1400_v12 = vpop.permute.xlu0 %1399  ;;  %2178 = vrot.lane.b32.xlu2 %v4065_v43, %s3282_s23  ;;  %1792 = vrot.lane.b32.xlu1 %v4003_v48, %s3281_s21  ;;  %v1322_v43 = vld [vmem:[#allocation2 + $0x111] sm:$0xff] }
 0x2f0   : > { %1479 = vst.msk [vmem:[#allocation3 + $0x88] sm:$0xff] %vm1461_vm7, %v1400_v12  ;;  %v4542_v12 = vld [vmem:[%s4827_s4] ss:$0 sm:$0xff] }
 0x2f1   : > { %1672 = vst.msk [vmem:[#allocation3 + $0x88] sm:$0xff] %vm1654_vm8, %v1593_v34  ;;  %v2173_v54 = vpop.permute.xlu2 %2172 }
 0x2f2   : > { %v1978_v56 = vpop.permute.xlu1 %1977 }
 0x2f3   : > { %2058 = vst.msk [vmem:[#allocation3 + $0x80] sm:$0xff] %vm2041_vm11, %v1978_v56 }
 0x2f4   : > { %2251 = vst.msk [vmem:[#allocation3 + $0x80] sm:$0xff] %vm2234_vm12, %v2171_v3  ;;  %v2104_v3 = vld [vmem:[#allocation2 + $0x19a] sm:$0xff] }
 0x2f5   : > { %1230 = vrot.lane.b32.xlu0 %v4391_v57, %s3278_s15 }
 0x2f7   : > { %v1416_v24 = vpop.permute.xlu0 %1415  ;;  %1407 = vrot.lane.b32.xlu2 %v1322_v43, %s3277_s19  ;;  %1808 = vrot.lane.b32.xlu1 %v4450_v51, %s3281_s21 }
 0x2f9   : > { %v1402_v29 = vpop.permute.xlu2 %1401  ;;  %v2693_v39 = vpop.f32.mrf.mxu2 }
 0x2fa   : > { %1480 = vst.msk [vmem:[#allocation3 + $0x90] sm:$0xff] %vm1461_vm7, %v1402_v29  ;;  %v1994_v9 = vpop.permute.xlu1 %1993  ;;  %v2694_v25 = vadd.f32 %v4229_v62, %v2693_v39  ;;  %v2096_v39 = vld [vmem:[#allocation2 + $0x13a] sm:$0xff] }
 0x2fb   : > { %2066 = vst.msk [vmem:[#allocation3 + $0xc0] sm:$0xff] %vm2041_vm11, %v1994_v9  ;;  %v2283_v26 = vld [vmem:[#allocation3 + $0x80] sm:$0xff] }
 0x2fc   : > { %2259 = vst.msk [vmem:[#allocation3 + $0xc0] sm:$0xff] %vm2234_vm12, %v2187_v61  ;;  %v2777_v58 = vadd.f32 %v3146_v63, %v2694_v25  ;;  %3014 = vmatmul.msk.f32.gmra.mxu1 %vm2308_vm13, %v2283_v26  ;;  %v4510_v61 = vld [vmem:[#allocation2 + $0x12a] sm:$0xff] }
 0x2fd   : > { %1794 = vrot.lane.b32.xlu0 %v4006_v49, %s3281_s21 }
 0x2fe   : > { %v2809_v35 = vmax.f32 %v2777_v58, 0.0 }
 0x2ff   : > { %v1980_v37 = vpop.permute.xlu0 %1979  ;;  %1423 = vrot.lane.b32.xlu2 %v1908_v4, %s3277_s19  ;;  %2194 = vrot.lane.b32.xlu1 %v4465_v42, %s3282_s23 }
 0x300   : > { %2841 = vst.msk [vmem:[%s4245_s18 + $0x30] sm:$0xff] %vm337_vm0, %v2809_v35 }
 0x301   : > { %v1418_v36 = vpop.permute.xlu2 %1417 }
 0x302   : > { %v1223_v44 = vpop.permute.xlu1 %1222 }
 0x303   : > { %1294 = vst.msk [vmem:[#allocation3 + $0xc8] sm:$0xff] %vm1268_vm6, %v1223_v44  ;;  %v2291_v22 = vld [vmem:[#allocation3 + $0xc0] sm:$0xff]  ;;  %v1719_v44 = vld [vmem:[#allocation2 + $0x1a0] sm:$0xff] }
 0x304   : > { %1487 = vst.msk [vmem:[#allocation3 + $0xc8] sm:$0xff] %vm1461_vm7, %v1416_v24  ;;  %3022 = vmatmul.msk.f32.vlgmr.msrb.gmra.mxu3 %vm2308_vm13, %v2291_v22 }
 0x305   : > { %1680 = vst.msk [vmem:[#allocation3 + $0xc8] sm:$0xff] %vm1654_vm8, %v1609_v10  ;;  %1810 = vrot.lane.b32.xlu0 %v4475_v47, %s3281_s21  ;;  %v1911_v10 = vld [vmem:[#allocation2 + $0x199] sm:$0xff] }
 0x307   : > { %v1996_v55 = vpop.permute.xlu0 %1995  ;;  %1987 = vrot.lane.b32.xlu2 %v4480_v14, %s3280_s9  ;;  %1600 = vrot.lane.b32.xlu1 %v1515_v50, %s3279_s20 }
 0x308   : > { %v2450_v60 = vpop.f32.mrf.mxu1 }
 0x309   : > { %v2451_v53 = vadd.f32 %v4042_v17, %v2450_v60  ;;  %v1982_v19 = vpop.permute.xlu2 %1981  ;;  %v2105_v60 = vld [vmem:[#allocation2 + $0x1a2] sm:$0xff] }
 0x30a   : > { %v1787_v32 = vpop.permute.xlu1 %1786 }
 0x30b   : > { %v2530_v57 = vmax.f32 %v2451_v53, 0.0  ;;  %1866 = vst.msk [vmem:[#allocation3 + $0x88] sm:$0xff] %vm1848_vm10, %v1787_v32  ;;  %v3148_v53 = vld [vmem:[%s3416_s16 + $0x38] sm:$0xff] }
 0x30c   : > { %2059 = vst.msk [vmem:[#allocation3 + $0x88] sm:$0xff] %vm2041_vm11, %v1980_v37  ;;  %v1912_v32 = vld [vmem:[#allocation2 + $0x1a1] sm:$0xff] }
 0x30d   : > { %2252 = vst.msk [vmem:[#allocation3 + $0x88] sm:$0xff] %vm2234_vm12, %v2173_v54  ;;  %3039 = vmatmul.msk.f32.gmra.mxu2 %vm579_vm1, %v2530_v57  ;;  %2196 = vrot.lane.b32.xlu0 %v4488_v30, %s3282_s23 }
 0x30f   : > { %v1225_v0 = vpop.permute.xlu0 %1224  ;;  %2003 = vrot.lane.b32.xlu2 %v4494_v45, %s3280_s9  ;;  %1616 = vrot.lane.b32.xlu1 %v4403_v46, %s3279_s20  ;;  %v1323_v46 = vld [vmem:[#allocation2 + $0x121] sm:$0xff] }
 0x310   : > { %1295 = vst.msk [vmem:[#allocation3 + $0xd0] sm:$0xff] %vm1268_vm6, %v1225_v0 }
 0x311   : > { %1488 = vst.msk [vmem:[#allocation3 + $0xd0] sm:$0xff] %vm1461_vm7, %v1418_v36  ;;  %v1998_v7 = vpop.permute.xlu2 %1997 }
 0x312   : > { %v1803_v8 = vpop.permute.xlu1 %1802  ;;  %v2453_v13 = vpop.f32.mrf.mxu1 }
 0x313   : > { %1874 = vst.msk [vmem:[#allocation3 + $0xc8] sm:$0xff] %vm1848_vm10, %v1803_v8  ;;  %v2454_v21 = vadd.f32 %v4042_v17, %v2453_v13 }
 0x314   : > { %2067 = vst.msk [vmem:[#allocation3 + $0xc8] sm:$0xff] %vm2041_vm11, %v1996_v55  ;;  %v2284_v33 = vld [vmem:[#allocation3 + $0x88] sm:$0xff] }
 0x315   : > { %v2531_v38 = vmax.f32 %v2454_v21, 0.0  ;;  %3015 = vmatmul.msk.f32.gmra.mxu1 %vm2308_vm13, %v2284_v33  ;;  %1232 = vrot.lane.b32.xlu0 %v4450_v51, %s3278_s15 }
 0x317   : > { %3040 = vmatmul.msk.f32.gmra.mxu2 %vm579_vm1, %v2531_v38  ;;  %v1789_v52 = vpop.permute.xlu0 %1788  ;;  %1409 = vrot.lane.b32.xlu2 %v1323_v46, %s3277_s19 }
 0x318   : > { %2180 = vrot.lane.b32.xlu1 %v4510_v61, %s3282_s23 }
 0x319   : > { %v1227_v27 = vpop.permute.xlu2 %1226 }
 0x31a   : > { %1296 = vst.msk [vmem:[#allocation3 + $0xd8] sm:$0xff] %vm1268_vm6, %v1227_v27  ;;  %v2189_v2 = vpop.permute.xlu1 %2188 }
 0x31b   : > { %2260 = vst.msk [vmem:[#allocation3 + $0xc8] sm:$0xff] %vm2234_vm12, %v2189_v2 }
 0x31d   : > { %1796 = vrot.lane.b32.xlu0 %v4057_v31, %s3281_s21 }
 0x31f   : > { %v1805_v4 = vpop.permute.xlu0 %1804  ;;  %1425 = vrot.lane.b32.xlu2 %v4435_v16, %s3277_s19 }
 0x320   : > { %1216 = vrot.lane.b32.xlu1 %v4003_v48, %s3278_s15  ;;  %v1903_v48 = vld [vmem:[#allocation2 + $0x139] sm:$0xff] }
 0x321   : > { %v2456_v20 = vpop.f32.mrf.mxu1  ;;  %v1791_v18 = vpop.permute.xlu2 %1790 }
 0x322   : > { %v2457_v5 = vadd.f32 %v4042_v17, %v2456_v20  ;;  %v1595_v34 = vpop.permute.xlu1 %1594  ;;  %v2292_v11 = vld [vmem:[#allocation3 + $0xc8] sm:$0xff]  ;;  %v1516_v17 = vld [vmem:[#allocation2 + $0x122] sm:$0xff] }
 0x323   : > { %1673 = vst.msk [vmem:[#allocation3 + $0x90] sm:$0xff] %vm1654_vm8, %v1595_v34  ;;  %3023 = vmatmul.msk.f32.gmra.mxu3 %vm2308_vm13, %v2292_v11 }
 0x324   : > { %v2532_v23 = vmax.f32 %v2457_v5, 0.0  ;;  %1867 = vst.msk [vmem:[#allocation3 + $0x90] sm:$0xff] %vm1848_vm10, %v1789_v52 }
 0x325   : > { %2060 = vst.msk [vmem:[#allocation3 + $0x90] sm:$0xff] %vm2041_vm11, %v1982_v19  ;;  %1812 = vrot.lane.b32.xlu0 %v1718_v15, %s3281_s21 }
 0x326   : > { %3041 = vmatmul.msk.f32.gmra.mxu2 %vm579_vm1, %v2532_v23 }
 0x327   : > { %v2191_v31 = vpop.permute.xlu0 %2190  ;;  %1989 = vrot.lane.b32.xlu2 %v1903_v48, %s3280_s9 }
 0x328   : > { %1602 = vrot.lane.b32.xlu1 %v1516_v17, %s3279_s20 }
 0x329   : > { %v1807_v59 = vpop.permute.xlu2 %1806 }
 0x32a   : > { %v1611_v41 = vpop.permute.xlu1 %1610 }
 0x32b   : > { %1681 = vst.msk [vmem:[#allocation3 + $0xd0] sm:$0xff] %vm1654_vm8, %v1611_v41 }
 0x32c   : > { %1875 = vst.msk [vmem:[#allocation3 + $0xd0] sm:$0xff] %vm1848_vm10, %v1805_v4 }
 0x32d   : > { %2068 = vst.msk [vmem:[#allocation3 + $0xd0] sm:$0xff] %vm2041_vm11, %v1998_v7  ;;  %2198 = vrot.lane.b32.xlu0 %v2104_v3, %s3282_s23 }
 0x32e   : > { %2261 = vst.msk [vmem:[#allocation3 + $0xd0] sm:$0xff] %vm2234_vm12, %v2191_v31 }
 0x32f   : > { %v1597_v6 = vpop.permute.xlu0 %1596  ;;  %2005 = vrot.lane.b32.xlu2 %v1911_v10, %s3280_s9 }
 0x330   : > { %1618 = vrot.lane.b32.xlu1 %v4465_v42, %s3279_s20  ;;  %v2459_v16 = vpop.f32.mrf.mxu1 }
 0x331   : > { %v2460_v54 = vadd.f32 %v4542_v12, %v2459_v16  ;;  %v4545_v56 = vpop.permute.xlu2 %2192 }
 0x332   : > { %v2175_v51 = vpop.permute.xlu1 %2174 }
 0x333   : > { %v2533_v43 = vmax.f32 %v2460_v54, 0.0  ;;  %2253 = vst.msk [vmem:[#allocation3 + $0x90] sm:$0xff] %vm2234_vm12, %v2175_v51 }
 0x335   : > { %3042 = vmatmul.msk.f32.gmra.mxu2 %vm579_vm1, %v2533_v43  ;;  %1234 = vrot.lane.b32.xlu0 %v4475_v47, %s3278_s15  ;;  %v2293_v24 = vld [vmem:[#allocation3 + $0xd0] sm:$0xff] }
 0x336   : > { %3024 = vmatmul.msk.f32.gmra.mxu3 %vm2308_vm13, %v2293_v24 }
 0x337   : > { %v1613_v29 = vpop.permute.xlu0 %1612  ;;  %1411 = vrot.lane.b32.xlu2 %v4480_v14, %s3277_s19 }
 0x338   : > { %2182 = vrot.lane.b32.xlu1 %v2096_v39, %s3282_s23 }
 0x339   : > { %v1599_v9 = vpop.permute.xlu2 %1598 }
 0x33a   : > { %v1404_v25 = vpop.permute.xlu1 %1403  ;;  %v2462_v26 = vpop.f32.mrf.mxu1  ;;  %v2285_v63 = vld [vmem:[#allocation3 + $0x90] sm:$0xff] }
 0x33b   : > { %1481 = vst.msk [vmem:[#allocation3 + $0x98] sm:$0xff] %vm1461_vm7, %v1404_v25  ;;  %v2463_v58 = vadd.f32 %v4542_v12, %v2462_v26  ;;  %3016 = vmatmul.msk.f32.gmra.mxu1 %vm2308_vm13, %v2285_v63  ;;  %v3149_v63 = vld [vmem:[%s3416_s16 + $0x40] sm:$0xff] }
 0x33c   : > { %1674 = vst.msk [vmem:[#allocation3 + $0x98] sm:$0xff] %vm1654_vm8, %v1597_v6 }
 0x33d   : > { %1868 = vst.msk [vmem:[#allocation3 + $0x98] sm:$0xff] %vm1848_vm10, %v1791_v18  ;;  %v2534_v35 = vmax.f32 %v2463_v58, 0.0  ;;  %1798 = vrot.lane.b32.xlu0 %v3799_v28, %s3281_s21 }
 0x33f   : > { %3043 = vmatmul.msk.f32.gmra.mxu2 %vm579_vm1, %v2534_v35  ;;  %v2177_v42 = vpop.permute.xlu0 %2176  ;;  %1427 = vrot.lane.b32.xlu2 %v4494_v45, %s3277_s19 }
 0x340   : > { %1218 = vrot.lane.b32.xlu1 %v4006_v49, %s3278_s15  ;;  %s3224_s15 = scalar_lea.hbm %s4830_s7, 512 }
 0x341   : > { %v1615_v37 = vpop.permute.xlu2 %1614 }
 0x342   : > { %v1420_v36 = vpop.permute.xlu1 %1419 }
 0x343   : > { %1489 = vst.msk [vmem:[#allocation3 + $0xd8] sm:$0xff] %vm1461_vm7, %v1420_v36 }
 0x344   : > { %1682 = vst.msk [vmem:[#allocation3 + $0xd8] sm:$0xff] %vm1654_vm8, %v1613_v29 }
 0x345   : > { %1876 = vst.msk [vmem:[#allocation3 + $0xd8] sm:$0xff] %vm1848_vm10, %v1807_v59  ;;  %1814 = vrot.lane.b32.xlu0 %v1719_v44, %s3281_s21 }
 0x347   : > { %v1406_v28 = vpop.permute.xlu0 %1405  ;;  %1991 = vrot.lane.b32.xlu2 %v4268_v40, %s3280_s9 }
 0x348   : > { %1482 = vst.msk [vmem:[#allocation3 + $0xa0] sm:$0xff] %vm1461_vm7, %v1406_v28  ;;  %1604 = vrot.lane.b32.xlu1 %v4510_v61, %s3279_s20 }
 0x349   : > { %1675 = vst.msk [vmem:[#allocation3 + $0xa0] sm:$0xff] %vm1654_vm8, %v1599_v9  ;;  %v2465_v49 = vpop.f32.mrf.mxu1  ;;  %v2696_v22 = vpop.f32.mrf.mxu2 }
 0x34a   : > { %v2466_v47 = vadd.f32 %v4542_v12, %v2465_v49  ;;  %v2697_v14 = vadd.f32 %v4229_v62, %v2696_v22  ;;  %v2179_v50 = vpop.permute.xlu2 %2178  ;;  %v1984_v55 = vpop.permute.xlu1 %1983 }
 0x34b   : > { %2061 = vst.msk [vmem:[#allocation3 + $0x98] sm:$0xff] %vm2041_vm11, %v1984_v55 }
 0x34c   : > { %v2535_v40 = vmax.f32 %v2466_v47, 0.0  ;;  %v2778_v19 = vadd.f32 %v3148_v53, %v2697_v14  ;;  %2254 = vst.msk [vmem:[#allocation3 + $0x98] sm:$0xff] %vm2234_vm12, %v2177_v42 }
 0x34d   : > { %2200 = vrot.lane.b32.xlu0 %v2105_v60, %s3282_s23 }
 0x34e   : > { %v2810_v57 = vmax.f32 %v2778_v19, 0.0  ;;  %3044 = vmatmul.msk.f32.gmra.mxu2 %vm579_vm1, %v2535_v40 }
 0x34f   : > { %v1422_v45 = vpop.permute.xlu0 %1421  ;;  %2007 = vrot.lane.b32.xlu2 %v1912_v32, %s3280_s9 }
 0x350   : > { %2842 = vst.msk [vmem:[%s4245_s18 + $0x38] sm:$0xff] %vm337_vm0, %v2810_v57  ;;  %1620 = vrot.lane.b32.xlu1 %v4488_v30, %s3279_s20  ;;  %s3069_s20 = sshll.u32 %s3345_s28, 8  ;;  %s2868_s28 = scalar_lea.sflag [#allocation6], %s3410_s22 }
 0x352   : > { %v1408_v0 = vpop.permute.xlu2 %1407  ;;  %v2000_v7 = vpop.permute.xlu1 %1999 }
 0x353   : > { %1483 = vst.msk [vmem:[#allocation3 + $0xa8] sm:$0xff] %vm1461_vm7, %v1408_v0  ;;  %v2286_v8 = vld [vmem:[#allocation3 + $0x98] sm:$0xff] }
 0x354   : > { %2069 = vst.msk [vmem:[#allocation3 + $0xd8] sm:$0xff] %vm2041_vm11, %v2000_v7  ;;  %3017 = vmatmul.msk.f32.gmra.mxu1 %vm2308_vm13, %v2286_v8  ;;  %v3151_v7 = vld [vmem:[%s3416_s16 + $0x50] sm:$0xff] }
 0x355   : > { %2262 = vst.msk [vmem:[#allocation3 + $0xd8] sm:$0xff] %vm2234_vm12, %v4545_v56 }
 0x357   : > { %v1986_v13 = vpop.permute.xlu0 %1985 }
 0x358   : > { %2184 = vrot.lane.b32.xlu1 %v4284_v1, %s3282_s23  ;;  %v2468_v21 = vpop.f32.mrf.mxu1  ;;  %s2879_s23 = scalar_lea.hbm %s4830_s7, %s3069_s20 }
 0x359   : > { %v2469_v33 = vadd.f32 %v4542_v12, %v2468_v21  ;;  %s2882_s10 = sshll.u32 %s2879_s23, 4  ;;  %s2883_s10 = int_to_ptr.hbm [resolvable:$true] %s2882_s10 }
 0x35a   : > { %v1424_v30 = vpop.permute.xlu2 %1423  ;;  %v1229_v38 = vpop.permute.xlu1 %1228  ;;  %s3218_s29 = sshra.s32 %s2883_s10, 4  ;;  %s3219_s29 = int_to_ptr.hbm [resolvable:$true] %s3218_s29 }
 0x35b   : > { %v2536_v46 = vmax.f32 %v2469_v33, 0.0  ;;  %1297 = vst.msk [vmem:[#allocation3 + $0xe0] sm:$0xff] %vm1268_vm6, %v1229_v38  ;;  %s3220_s8 = scalar_lea.hbm %s3219_s29, 256  ;;  %p3225_p0 = scmp.lt.s32.totalorder %s3219_s29, %s4830_s7 }
 0x35c   : > { %1490 = vst.msk [vmem:[#allocation3 + $0xe0] sm:$0xff] %vm1461_vm7, %v1422_v45  ;;  %v2294_v52 = vld [vmem:[#allocation3 + $0xd8] sm:$0xff]  ;;  %p3221_p6 = scmp.ne.s32.totalorder %s3219_s29, %s3220_s8  ;;  %p3226_p1 = scmp.lt.s32.totalorder %s3224_s15, %s3220_s8 }
 0x35d   : > { %1683 = vst.msk [vmem:[#allocation3 + $0xe0] sm:$0xff] %vm1654_vm8, %v1615_v37  ;;  %3025 = vmatmul.msk.f32.gmra.mxu3 %vm2308_vm13, %v2294_v52  ;;  %3045 = vmatmul.msk.f32.gmra.mxu2 %vm579_vm1, %v2536_v46 }
 0x35e   : > { %p3222_p9 = pnand %p3221_p6, %p3374_p11  ;;  %p3227_p3 = por %p3226_p1, %p3225_p0 }
 0x35f   : > { %v2002_v61 = vpop.permute.xlu0 %2001 }
 0x360   : > { %p3223_p13 = pneg %p3222_p9 }
 0x362   : > { %v1988_v27 = vpop.permute.xlu2 %1987  ;;  %v1793_v1 = vpop.permute.xlu1 %1792  ;;  %p3228_p4 = pnand %p3227_p3, %p3223_p13 }
 0x363   : > { %1869 = vst.msk [vmem:[#allocation3 + $0xa0] sm:$0xff] %vm1848_vm10, %v1793_v1  ;;  %v2471_v2 = vpop.f32.mrf.mxu1 }
 0x364   : > { %2062 = vst.msk [vmem:[#allocation3 + $0xa0] sm:$0xff] %vm2041_vm11, %v1986_v13  ;;  %v2472_v4 = vadd.f32 %v4542_v12, %v2471_v2 }
 0x365   : > { %2255 = vst.msk [vmem:[#allocation3 + $0xa0] sm:$0xff] %vm2234_vm12, %v2179_v50  ;;  %v3150_v50 = vld [vmem:[%s3416_s16 + $0x48] sm:$0xff] }
 0x366   : > { %v2537_v20 = vmax.f32 %v2472_v4, 0.0 }
 0x367   : > { %v1231_v18 = vpop.permute.xlu0 %1230 }
 0x368   : > { %3046 = vmatmul.msk.f32.gmra.mxu2 %vm579_vm1, %v2537_v20  ;;  %1298 = vst.msk [vmem:[#allocation3 + $0xe8] sm:$0xff] %vm1268_vm6, %v1231_v18  ;;  %v3153_v18 = vld [vmem:[%s3416_s16 + $0x58] sm:$0xff] }
 0x369   : > { %1491 = vst.msk [vmem:[#allocation3 + $0xe8] sm:$0xff] %vm1461_vm7, %v1424_v30 }
 0x36a   : > { %v1809_v5 = vpop.permute.xlu1 %1808  ;;  %v2004_v34 = vpop.permute.xlu2 %2003 }
 0x36b   : > { %1877 = vst.msk [vmem:[#allocation3 + $0xe0] sm:$0xff] %vm1848_vm10, %v1809_v5 }
 0x36c   : > { %2070 = vst.msk [vmem:[#allocation3 + $0xe0] sm:$0xff] %vm2041_vm11, %v2002_v61  ;;  %v2287_v11 = vld [vmem:[#allocation3 + $0xa0] sm:$0xff] }
 0x36d   : > { %3018 = vmatmul.msk.f32.gmra.mxu1 %vm2308_vm13, %v2287_v11 }
 0x36f   : > { %v1795_v15 = vpop.permute.xlu0 %1794 }
 0x372   : > { %v2195_v23 = vpop.permute.xlu1 %2194  ;;  %v1410_v48 = vpop.permute.xlu2 %1409 }
 0x373   : > { %2263 = vst.msk [vmem:[#allocation3 + $0xe0] sm:$0xff] %vm2234_vm12, %v2195_v23 }
 0x377   : > { %v1811_v31 = vpop.permute.xlu0 %1810 }
 0x379   : > { %v2474_v17 = vpop.f32.mrf.mxu1 }
 0x37a   : > { %v2475_v59 = vadd.f32 %v4542_v12, %v2474_v17  ;;  %v1601_v41 = vpop.permute.xlu1 %1600  ;;  %v2295_v3 = vld [vmem:[#allocation3 + $0xe0] sm:$0xff]  ;;  %v1426_v16 = vpop.permute.xlu2 %1425 }
 0x37b   : > { %1676 = vst.msk [vmem:[#allocation3 + $0xa8] sm:$0xff] %vm1654_vm8, %v1601_v41  ;;  %3026 = vmatmul.msk.f32.gmra.mxu3 %vm2308_vm13, %v2295_v3 }
 0x37c   : > { %v2538_v10 = vmax.f32 %v2475_v59, 0.0  ;;  %1870 = vst.msk [vmem:[#allocation3 + $0xa8] sm:$0xff] %vm1848_vm10, %v1795_v15  ;;  %v3154_v59 = vld [vmem:[%s3416_s16 + $0x60] sm:$0xff] }
 0x37d   : > { %2063 = vst.msk [vmem:[#allocation3 + $0xa8] sm:$0xff] %vm2041_vm11, %v1988_v27  ;;  %v4662_v27 = vld [vmem:[%s4829_s6] ss:$0 sm:$0xff] }
 0x37e   : > { %3047 = vmatmul.msk.f32.gmra.mxu2 %vm579_vm1, %v2538_v10 }
 0x37f   : > { %v2197_v6 = vpop.permute.xlu0 %2196 }
 0x382   : > { %v1617_v54 = vpop.permute.xlu1 %1616  ;;  %v1990_v51 = vpop.permute.xlu2 %1989 }
 0x383   : > { %1684 = vst.msk [vmem:[#allocation3 + $0xe8] sm:$0xff] %vm1654_vm8, %v1617_v54 }
 0x384   : > { %1878 = vst.msk [vmem:[#allocation3 + $0xe8] sm:$0xff] %vm1848_vm10, %v1811_v31 }
 0x385   : > { %2071 = vst.msk [vmem:[#allocation3 + $0xe8] sm:$0xff] %vm2041_vm11, %v2004_v34 }
 0x386   : > { %2264 = vst.msk [vmem:[#allocation3 + $0xe8] sm:$0xff] %vm2234_vm12, %v2197_v6 }
 0x387   : > { %v1233_v56 = vpop.permute.xlu0 %1232  ;;  %v4675_v17 = vpop.f32.mrf.mxu3 }
 0x388   : > { %1299 = vst.msk [vmem:[#allocation3 + $0xf0] sm:$0xff] %vm1268_vm6, %v1233_v56 }
 0x389   : > { %1492 = vst.msk [vmem:[#allocation3 + $0xf0] sm:$0xff] %vm1461_vm7, %v1426_v16 }
 0x38a   : > { %v2181_v43 = vpop.permute.xlu1 %2180  ;;  %v2006_v42 = vpop.permute.xlu2 %2005 }
 0x38b   : > { %2256 = vst.msk [vmem:[#allocation3 + $0xa8] sm:$0xff] %vm2234_vm12, %v2181_v43 }
 0x38d   : > { %v2296_v24 = vld [vmem:[#allocation3 + $0xe8] sm:$0xff] }
 0x38e   : > { %3027 = vmatmul.msk.f32.gmra.mxu3 %vm2308_vm13, %v2296_v24 }
 0x38f   : > { %v1797_v29 = vpop.permute.xlu0 %1796 }
 0x390   : > { %v2699_v39 = vpop.f32.mrf.mxu2 }
 0x391   : > { %v2700_v9 = vadd.f32 %v4229_v62, %v2699_v39 }
 0x392   : > { %v1217_v25 = vpop.permute.xlu1 %1216  ;;  %v2288_v26 = vld [vmem:[#allocation3 + $0xa8] sm:$0xff]  ;;  %v2477_v35 = vpop.f32.mrf.mxu1 }
 0x393   : > { %v2779_v58 = vadd.f32 %v3149_v63, %v2700_v9  ;;  %1291 = vst.msk [vmem:[#allocation3 + $0xb0] sm:$0xff] %vm1268_vm6, %v1217_v25  ;;  %3019 = vmatmul.msk.f32.gmra.mxu1 %vm2308_vm13, %v2288_v26  ;;  %v2478_v37 = vadd.f32 %v4542_v12, %v2477_v35  ;;  %v1412_v14 = vpop.permute.xlu2 %1411  ;;  %v3155_v25 = vld [vmem:[%s3416_s16 + $0x68] sm:$0xff] }
 0x394   : > { %1484 = vst.msk [vmem:[#allocation3 + $0xb0] sm:$0xff] %vm1461_vm7, %v1410_v48 }
 0x395   : > { %v2811_v36 = vmax.f32 %v2779_v58, 0.0  ;;  %v2539_v44 = vmax.f32 %v2478_v37, 0.0 }
 0x397   : > { %2843 = vst.msk [vmem:[%s4245_s18 + $0x40] sm:$0xff] %vm337_vm0, %v2811_v36  ;;  %v1813_v28 = vpop.permute.xlu0 %1812  ;;  %3048 = vmatmul.msk.f32.gmra.mxu2 %vm579_vm1, %v2539_v44 }
 0x39a   : > { %v1603_v49 = vpop.permute.xlu1 %1602  ;;  %v2702_v22 = vpop.f32.mrf.mxu2 }
 0x39b   : > { %1677 = vst.msk [vmem:[#allocation3 + $0xb0] sm:$0xff] %vm1654_vm8, %v1603_v49  ;;  %v2703_v47 = vadd.f32 %v4229_v62, %v2702_v22  ;;  %v1428_v32 = vpop.permute.xlu2 %1427  ;;  %v3156_v49 = vld [vmem:[%s3416_s16 + $0x70] sm:$0xff] }
 0x39c   : > { %1871 = vst.msk [vmem:[#allocation3 + $0xb0] sm:$0xff] %vm1848_vm10, %v1797_v29 }
 0x39d   : > { %2064 = vst.msk [vmem:[#allocation3 + $0xb0] sm:$0xff] %vm2041_vm11, %v1990_v51  ;;  %v2780_v55 = vadd.f32 %v3150_v50, %v2703_v47 }
 0x39f   : > { %v2199_v60 = vpop.permute.xlu0 %2198  ;;  %v2812_v40 = vmax.f32 %v2780_v55, 0.0 }
 0x3a1   : > { %2844 = vst.msk [vmem:[%s4245_s18 + $0x48] sm:$0xff] %vm337_vm0, %v2812_v40 }
 0x3a2   : > { %v1619_v53 = vpop.permute.xlu1 %1618 }
 0x3a3   : > { %1685 = vst.msk [vmem:[#allocation3 + $0xf0] sm:$0xff] %vm1654_vm8, %v1619_v53  ;;  %v1992_v52 = vpop.permute.xlu2 %1991 }
 0x3a4   : > { %1879 = vst.msk [vmem:[#allocation3 + $0xf0] sm:$0xff] %vm1848_vm10, %v1813_v28 }
 0x3a5   : > { %2072 = vst.msk [vmem:[#allocation3 + $0xf0] sm:$0xff] %vm2041_vm11, %v2006_v42 }
 0x3a6   : > { %2265 = vst.msk [vmem:[#allocation3 + $0xf0] sm:$0xff] %vm2234_vm12, %v2199_v60  ;;  %v2501_v6 = vpop.f32.mrf.mxu3 }
 0x3a7   : > { %v1235_v19 = vpop.permute.xlu0 %1234  ;;  %v2502_v54 = vadd.f32 %v4542_v12, %v2501_v6 }
 0x3a8   : > { %1300 = vst.msk [vmem:[#allocation3 + $0xf8] sm:$0xff] %vm1268_vm6, %v1235_v19  ;;  %v3157_v19 = vld [vmem:[%s3416_s16 + $0x78] sm:$0xff] }
 0x3a9   : > { %1493 = vst.msk [vmem:[#allocation3 + $0xf8] sm:$0xff] %vm1461_vm7, %v1428_v32  ;;  %v2705_v57 = vpop.f32.mrf.mxu2  ;;  %v2547_v39 = vmax.f32 %v2502_v54, 0.0 }
 0x3aa   : > { %v2706_v45 = vadd.f32 %v4229_v62, %v2705_v57  ;;  %v2183_v0 = vpop.permute.xlu1 %2182 }
 0x3ab   : > { %2257 = vst.msk [vmem:[#allocation3 + $0xb0] sm:$0xff] %vm2234_vm12, %v2183_v0  ;;  %v2008_v11 = vpop.permute.xlu2 %2007 }
 0x3ac   : > { %v2781_v8 = vadd.f32 %v3151_v7, %v2706_v45 }
 0x3ad   : > { %v2297_v13 = vld [vmem:[#allocation3 + $0xf0] sm:$0xff] }
 0x3ae   : > { %v2813_v21 = vmax.f32 %v2781_v8, 0.0  ;;  %3028 = vmatmul.msk.f32.gmra.mxu3 %vm2308_vm13, %v2297_v13 }
 0x3af   : > { %v1799_v33 = vpop.permute.xlu0 %1798 }
 0x3b0   : > { %2845 = vst.msk [vmem:[%s4245_s18 + $0x50] sm:$0xff] %vm337_vm0, %v2813_v21  ;;  %v3158_v21 = vld [vmem:[%s3416_s16 + $0x80] sm:$0xff] }
 0x3b2   : > { %v1219_v30 = vpop.permute.xlu1 %1218  ;;  %v2289_v38 = vld [vmem:[#allocation3 + $0xb0] sm:$0xff] }
 0x3b3   : > { %1292 = vst.msk [vmem:[#allocation3 + $0xb8] sm:$0xff] %vm1268_vm6, %v1219_v30  ;;  %3020 = vmatmul.msk.f32.gmra.mxu1 %vm2308_vm13, %v2289_v38 }
 0x3b4   : > { %1485 = vst.msk [vmem:[#allocation3 + $0xb8] sm:$0xff] %vm1461_vm7, %v1412_v14 }
 0x3b7   : > { %v1815_v2 = vpop.permute.xlu0 %1814 }
 0x3b8   : > { %v2480_v62 = vpop.f32.mrf.mxu1  ;;  %v2708_v46 = vpop.f32.mrf.mxu2 }
 0x3b9   : > { %v2481_v61 = vadd.f32 %v4542_v12, %v2480_v62  ;;  %v2709_v1 = vadd.f32 %v4662_v27, %v2708_v46  ;;  %v2504_v63 = vpop.f32.mrf.mxu3 }
 0x3ba   : > { %v1605_v4 = vpop.permute.xlu1 %1604  ;;  %v2505_v35 = vadd.f32 %v4542_v12, %v2504_v63 }
 0x3bb   : > { %v2540_v20 = vmax.f32 %v2481_v61, 0.0  ;;  %v2782_v5 = vadd.f32 %v3153_v18, %v2709_v1  ;;  %1678 = vst.msk [vmem:[#allocation3 + $0xb8] sm:$0xff] %vm1654_vm8, %v1605_v4 }
 0x3bc   : > { %1872 = vst.msk [vmem:[#allocation3 + $0xb8] sm:$0xff] %vm1848_vm10, %v1799_v33  ;;  %v2548_v42 = vmax.f32 %v2505_v35, 0.0 }
 0x3bd   : > { %v2814_v34 = vmax.f32 %v2782_v5, 0.0  ;;  %2065 = vst.msk [vmem:[#allocation3 + $0xb8] sm:$0xff] %vm2041_vm11, %v1992_v52  ;;  %3049 = vmatmul.msk.f32.gmra.mxu2 %vm579_vm1, %v2540_v20  ;;  %v3159_v20 = vld [vmem:[%s3416_s16 + $0x88] sm:$0xff] }
 0x3bf   : > { %2846 = vst.msk [vmem:[%s4245_s18 + $0x58] sm:$0xff] %vm337_vm0, %v2814_v34  ;;  %v2201_v31 = vpop.permute.xlu0 %2200 }
 0x3c2   : > { %v1621_v15 = vpop.permute.xlu1 %1620  ;;  %v2711_v23 = vpop.f32.mrf.mxu2 }
 0x3c3   : > { %1686 = vst.msk [vmem:[#allocation3 + $0xf8] sm:$0xff] %vm1654_vm8, %v1621_v15  ;;  %v2712_v48 = vadd.f32 %v4662_v27, %v2711_v23 }
 0x3c4   : > { %1880 = vst.msk [vmem:[#allocation3 + $0xf8] sm:$0xff] %vm1848_vm10, %v1815_v2 }
 0x3c5   : > { %v2783_v41 = vadd.f32 %v3154_v59, %v2712_v48  ;;  %2073 = vst.msk [vmem:[#allocation3 + $0xf8] sm:$0xff] %vm2041_vm11, %v2008_v11 }
 0x3c6   : > { %2266 = vst.msk [vmem:[#allocation3 + $0xf8] sm:$0xff] %vm2234_vm12, %v2201_v31 }
 0x3c7   : > { %v2815_v3 = vmax.f32 %v2783_v41, 0.0 }
 0x3c9   : > { %2847 = vst.msk [vmem:[%s4245_s18 + $0x60] sm:$0xff] %vm337_vm0, %v2815_v3  ;;  %v3160_v3 = vld [vmem:[%s3416_s16 + $0x90] sm:$0xff] }
 0x3ca   : > { %v2185_v10 = vpop.permute.xlu1 %2184 }
 0x3cb   : > { %2258 = vst.msk [vmem:[#allocation3 + $0xb8] sm:$0xff] %vm2234_vm12, %v2185_v10 }
 0x3cd   : > { %v2298_v16 = vld [vmem:[#allocation3 + $0xf8] sm:$0xff] }
 0x3ce   : > { %3029 = vmatmul.msk.f32.gmra.mxu3 %vm2308_vm13, %v2298_v16 }
 0x3d1   : > { %v2483_v56 = vpop.f32.mrf.mxu1  ;;  %v2714_v51 = vpop.f32.mrf.mxu2 }
 0x3d2   : > { %v2484_v43 = vadd.f32 %v4542_v12, %v2483_v56  ;;  %v2715_v24 = vadd.f32 %v4662_v27, %v2714_v51  ;;  %v2290_v29 = vld [vmem:[#allocation3 + $0xb8] sm:$0xff] }
 0x3d3   : > { %3021 = vmatmul.msk.f32.gmra.mxu1 %vm2308_vm13, %v2290_v29  ;;  %v2499_v29 = vadd.f32 %v4542_v12, %v4675_v17 }
 0x3d4   : > { %v2541_v9 = vmax.f32 %v2484_v43, 0.0  ;;  %v2784_v26 = vadd.f32 %v3155_v25, %v2715_v24 }
 0x3d5   : > { %v2546_v63 = vmax.f32 %v2499_v29, 0.0 }
 0x3d6   : > { %v2816_v58 = vmax.f32 %v2784_v26, 0.0  ;;  %3050 = vmatmul.msk.f32.gmra.mxu2 %vm579_vm1, %v2541_v9  ;;  %3056 = vmatmul.msk.f32.vlgmr.msra.gmra.mxu3 %vm579_vm1, %v2547_v39 }
 0x3d8   : > { %2848 = vst.msk [vmem:[%s4245_s18 + $0x68] sm:$0xff] %vm337_vm0, %v2816_v58  ;;  %v3161_v58 = vld [vmem:[%s3416_s16 + $0x98] sm:$0xff] }
 0x3de   : > { %3057 = vmatmul.msk.f32.gmra.mxu3 %vm579_vm1, %v2548_v42  ;;  %v3162_v42 = vld [vmem:[%s3416_s16 + $0xc8] sm:$0xff] }
 0x3e0   : > { %v2507_v37 = vpop.f32.mrf.mxu3  ;;  %v2717_v36 = vpop.f32.mrf.mxu2 }
 0x3e1   : > { %v2508_v44 = vadd.f32 %v4542_v12, %v2507_v37  ;;  %v2718_v28 = vadd.f32 %v4662_v27, %v2717_v36 }
 0x3e3   : > { %v2785_v22 = vadd.f32 %v3156_v49, %v2718_v28  ;;  %v2549_v47 = vmax.f32 %v2508_v44, 0.0  ;;  %v3163_v28 = vld [vmem:[%s3416_s16 + $0xd0] sm:$0xff] }
 0x3e5   : > { %v2817_v14 = vmax.f32 %v2785_v22, 0.0 }
 0x3e6   : > { %3058 = vmatmul.msk.f32.gmra.mxu3 %vm579_vm1, %v2549_v47 }
 0x3e7   : > { %2849 = vst.msk [vmem:[%s4245_s18 + $0x70] sm:$0xff] %vm337_vm0, %v2817_v14 }
 0x3ea   : > { %v2486_v50 = vpop.f32.mrf.mxu1 }
 0x3eb   : > { %v2487_v55 = vadd.f32 %v4542_v12, %v2486_v50  ;;  %v2720_v60 = vpop.f32.mrf.mxu2  ;;  %v3164_v50 = vld [vmem:[%s3416_s16 + $0xd8] sm:$0xff] }
 0x3ec   : > { %v2721_v40 = vadd.f32 %v4662_v27, %v2720_v60 }
 0x3ed   : > { %v2542_v53 = vmax.f32 %v2487_v55, 0.0 }
 0x3ee   : > { %v2786_v32 = vadd.f32 %v3157_v19, %v2721_v40  ;;  %v3165_v19 = vld [vmem:[%s3416_s16 + $0xa0] sm:$0xff] }
 0x3ef   : > { %3051 = vmatmul.msk.f32.gmra.mxu2 %vm579_vm1, %v2542_v53 }
 0x3f0   : > { %v2818_v57 = vmax.f32 %v2786_v32, 0.0 }
 0x3f2   : > { %2850 = vst.msk [vmem:[%s4245_s18 + $0x78] sm:$0xff] %vm337_vm0, %v2818_v57 }
 0x3fe   : > { %v2510_v45 = vpop.f32.mrf.mxu3 }
 0x3ff   : > { %v2511_v0 = vadd.f32 %v4542_v12, %v2510_v45 }
 0x401   : > { %v2550_v7 = vmax.f32 %v2511_v0, 0.0  ;;  %v2723_v8 = vpop.f32.mrf.mxu2 }
 0x402   : > { %v2724_v13 = vadd.f32 %v4662_v27, %v2723_v8 }
 0x403   : > { %3059 = vmatmul.msk.f32.gmra.mxu3 %vm579_vm1, %v2550_v7  ;;  %v3166_v7 = vld [vmem:[%s3416_s16 + $0xe0] sm:$0xff] }
 0x404   : > { %v2787_v33 = vadd.f32 %v3158_v21, %v2724_v13 }
 0x406   : > { %v2819_v30 = vmax.f32 %v2787_v33, 0.0 }
 0x408   : > { %2851 = vst.msk [vmem:[%s4245_s18 + $0x80] sm:$0xff] %vm337_vm0, %v2819_v30 }
 0x410   : > { %v2489_v38 = vpop.f32.mrf.mxu1 }
 0x411   : > { %v2490_v62 = vadd.f32 %v4542_v12, %v2489_v38  ;;  %v2513_v46 = vpop.f32.mrf.mxu3 }
 0x412   : > { %v2514_v52 = vadd.f32 %v4542_v12, %v2513_v46 }
 0x413   : > { %v2543_v61 = vmax.f32 %v2490_v62, 0.0  ;;  %v3167_v62 = vld [vmem:[%s3416_s16 + $0xa8] sm:$0xff] }
 0x414   : > { %v2551_v1 = vmax.f32 %v2514_v52, 0.0  ;;  %v3168_v52 = vld [vmem:[%s3416_s16 + $0xe8] sm:$0xff] }
 0x415   : > { %3052 = vmatmul.msk.f32.gmra.mxu2 %vm579_vm1, %v2543_v61 }
 0x416   : > { %3060 = vmatmul.msk.f32.gmra.mxu3 %vm579_vm1, %v2551_v1 }
 0x41a   : > { %v2726_v2 = vpop.f32.mrf.mxu2 }
 0x41b   : > { %v2727_v4 = vadd.f32 %v4662_v27, %v2726_v2 }
 0x41d   : > { %v2788_v18 = vadd.f32 %v3159_v20, %v2727_v4 }
 0x41f   : > { %v2820_v5 = vmax.f32 %v2788_v18, 0.0 }
 0x421   : > { %2852 = vst.msk [vmem:[%s4245_s18 + $0x88] sm:$0xff] %vm337_vm0, %v2820_v5 }
 0x430   : > { %v2492_v34 = vpop.f32.mrf.mxu1 }
 0x431   : > { %v2493_v11 = vadd.f32 %v4542_v12, %v2492_v34  ;;  %v2516_v15 = vpop.f32.mrf.mxu3  ;;  %v3169_v34 = vld [vmem:[%s3416_s16 + $0xb0] sm:$0xff] }
 0x432   : > { %v2517_v23 = vadd.f32 %v4542_v12, %v2516_v15  ;;  %v3170_v15 = vld [vmem:[%s3416_s16 + $0xf0] sm:$0xff] }
 0x433   : > { %v2544_v48 = vmax.f32 %v2493_v11, 0.0 }
 0x434   : > { %v2552_v31 = vmax.f32 %v2517_v23, 0.0 }
 0x435   : > { %3053 = vmatmul.msk.f32.gmra.mxu2 %vm579_vm1, %v2544_v48 }
 0x436   : > { %3061 = vmatmul.msk.f32.gmra.mxu3 %vm579_vm1, %v2552_v31 }
 0x440   : > { %v2729_v59 = vpop.f32.mrf.mxu2 }
 0x441   : > { %v2730_v41 = vadd.f32 %v4662_v27, %v2729_v59 }
 0x443   : > { %v2789_v10 = vadd.f32 %v3160_v3, %v2730_v41 }
 0x445   : > { %v2821_v6 = vmax.f32 %v2789_v10, 0.0 }
 0x447   : > { %2853 = vst.msk [vmem:[%s4245_s18 + $0x90] sm:$0xff] %vm337_vm0, %v2821_v6  ;;  %v3171_v6 = vld [vmem:[%s3416_s16 + $0xb8] sm:$0xff] }
 0x450   : > { %v2495_v16 = vpop.f32.mrf.mxu1 }
 0x451   : > { %v2496_v54 = vadd.f32 %v4542_v12, %v2495_v16  ;;  %v2519_v56 = vpop.f32.mrf.mxu3 }
 0x452   : > { %v2520_v51 = vadd.f32 %v4542_v12, %v2519_v56 }
 0x453   : > { %v2545_v43 = vmax.f32 %v2496_v54, 0.0  ;;  %v3172_v54 = vld [vmem:[%s3416_s16 + $0xf8] sm:$0xff] }
 0x454   : > { %v2553_v24 = vmax.f32 %v2520_v51, 0.0 }
 0x455   : > { %3054 = vmatmul.msk.f32.gmra.mxu2 %vm579_vm1, %v2545_v43 }
 0x456   : > { %3062 = vmatmul.msk.f32.gmra.mxu3 %vm579_vm1, %v2553_v24 }
 0x459   : > { %v2732_v39 = vpop.f32.mrf.mxu2  ;;  %v2750_v9 = vpop.f32.mrf.mxu3 }
 0x45a   : > { %v2733_v25 = vadd.f32 %v4662_v27, %v2732_v39  ;;  %v2751_v26 = vadd.f32 %v4662_v27, %v2750_v9  ;;  %v3173_v39 = vld [vmem:[%s3416_s16 + $0xc0] sm:$0xff] }
 0x45c   : > { %v2790_v35 = vadd.f32 %v3161_v58, %v2733_v25  ;;  %v2796_v37 = vadd.f32 %v3162_v42, %v2751_v26 }
 0x45d   : > { %3055 = vmatmul.msk.f32.gmra.mxu2 %vm579_vm1, %v2546_v63 }
 0x45e   : > { %v2822_v36 = vmax.f32 %v2790_v35, 0.0  ;;  %v2828_v44 = vmax.f32 %v2796_v37, 0.0 }
 0x460   : > { %2854 = vst.msk [vmem:[%s4245_s18 + $0x98] sm:$0xff] %vm337_vm0, %v2822_v36 }
 0x461   : > { %2860 = vst.msk [vmem:[%s4245_s18 + $0xc8] sm:$0xff] %vm337_vm0, %v2828_v44  ;;  %v2753_v12 = vpop.f32.mrf.mxu3 }
 0x462   : > { %v2754_v17 = vadd.f32 %v4662_v27, %v2753_v12 }
 0x464   : > { %v2797_v49 = vadd.f32 %v3163_v28, %v2754_v17 }
 0x466   : > { %v2829_v22 = vmax.f32 %v2797_v49, 0.0 }
 0x468   : > { %2861 = vst.msk [vmem:[%s4245_s18 + $0xd0] sm:$0xff] %vm337_vm0, %v2829_v22 }
 0x469   : > { %v2756_v47 = vpop.f32.mrf.mxu3 }
 0x46a   : > { %v2757_v14 = vadd.f32 %v4662_v27, %v2756_v47 }
 0x46c   : > { %v2798_v55 = vadd.f32 %v3164_v50, %v2757_v14 }
 0x46e   : > { %v2830_v60 = vmax.f32 %v2798_v55, 0.0 }
 0x470   : > { %2862 = vst.msk [vmem:[%s4245_s18 + $0xd8] sm:$0xff] %vm337_vm0, %v2830_v60 }
 0x472   : > { %v2735_v40 = vpop.f32.mrf.mxu2 }
 0x473   : > { %v2736_v53 = vadd.f32 %v4662_v27, %v2735_v40 }
 0x475   : > { %v2791_v32 = vadd.f32 %v3165_v19, %v2736_v53 }
 0x477   : > { %v2823_v57 = vmax.f32 %v2791_v32, 0.0 }
 0x479   : > { %2855 = vst.msk [vmem:[%s4245_s18 + $0xa0] sm:$0xff] %vm337_vm0, %v2823_v57 }
 0x486   : > { %v2759_v45 = vpop.f32.mrf.mxu3 }
 0x487   : > { %v2760_v0 = vadd.f32 %v4662_v27, %v2759_v45 }
 0x489   : > { %v2799_v8 = vadd.f32 %v3166_v7, %v2760_v0 }
 0x48b   : > { %v2831_v13 = vmax.f32 %v2799_v8, 0.0 }
 0x48d   : > { %2863 = vst.msk [vmem:[%s4245_s18 + $0xe0] sm:$0xff] %vm337_vm0, %v2831_v13 }
 0x498   : > { %v2738_v21 = vpop.f32.mrf.mxu2 }
 0x499   : > { %v2739_v33 = vadd.f32 %v4662_v27, %v2738_v21  ;;  %v2762_v30 = vpop.f32.mrf.mxu3 }
 0x49a   : > { %v2763_v38 = vadd.f32 %v4662_v27, %v2762_v30 }
 0x49b   : > { %v2792_v46 = vadd.f32 %v3167_v62, %v2739_v33 }
 0x49c   : > { %v2800_v61 = vadd.f32 %v3168_v52, %v2763_v38 }
 0x49d   : > { %v2824_v1 = vmax.f32 %v2792_v46, 0.0 }
 0x49e   : > { %v2832_v2 = vmax.f32 %v2800_v61, 0.0 }
 0x49f   : > { %2856 = vst.msk [vmem:[%s4245_s18 + $0xa8] sm:$0xff] %vm337_vm0, %v2824_v1 }
 0x4a0   : > { %2864 = vst.msk [vmem:[%s4245_s18 + $0xe8] sm:$0xff] %vm337_vm0, %v2832_v2 }
 0x4b8   : > { %v2741_v4 = vpop.f32.mrf.mxu2 }
 0x4b9   : > { %v2742_v20 = vadd.f32 %v4662_v27, %v2741_v4  ;;  %v2765_v18 = vpop.f32.mrf.mxu3 }
 0x4ba   : > { %v2766_v5 = vadd.f32 %v4662_v27, %v2765_v18 }
 0x4bb   : > { %v2793_v11 = vadd.f32 %v3169_v34, %v2742_v20 }
 0x4bc   : > { %v2801_v23 = vadd.f32 %v3170_v15, %v2766_v5 }
 0x4bd   : > { %v2825_v48 = vmax.f32 %v2793_v11, 0.0 }
 0x4be   : > { %v2833_v31 = vmax.f32 %v2801_v23, 0.0 }
 0x4bf   : > { %2857 = vst.msk [vmem:[%s4245_s18 + $0xb0] sm:$0xff] %vm337_vm0, %v2825_v48 }
 0x4c0   : > { %2865 = vst.msk [vmem:[%s4245_s18 + $0xf0] sm:$0xff] %vm337_vm0, %v2833_v31 }
 0x4d8   : > { %v2744_v59 = vpop.f32.mrf.mxu2 }
 0x4d9   : > { %v2745_v41 = vadd.f32 %v4662_v27, %v2744_v59  ;;  %v2768_v3 = vpop.f32.mrf.mxu3 }
 0x4da   : > { %v2769_v10 = vadd.f32 %v4662_v27, %v2768_v3 }
 0x4db   : > { %v2794_v16 = vadd.f32 %v3171_v6, %v2745_v41 }
 0x4dc   : > { %v2802_v56 = vadd.f32 %v3172_v54, %v2769_v10 }
 0x4dd   : > { %v2826_v51 = vmax.f32 %v2794_v16, 0.0 }
 0x4de   : > { %v2834_v43 = vmax.f32 %v2802_v56, 0.0 }
 0x4df   : > { %2858 = vst.msk [vmem:[%s4245_s18 + $0xb8] sm:$0xff] %vm337_vm0, %v2826_v51 }
 0x4e0   : > { %v2747_v24 = vpop.f32.mrf.mxu2  ;;  %2866 = vst.msk [vmem:[%s4245_s18 + $0xf8] sm:$0xff] %vm337_vm0, %v2834_v43 }
 0x4e1   : > { %v2748_v29 = vadd.f32 %v4662_v27, %v2747_v24 }
 0x4e3   : > { %v2795_v9 = vadd.f32 %v3173_v39, %v2748_v29 }
 0x4e5   : > { %v2827_v25 = vmax.f32 %v2795_v9, 0.0 }
 0x4e7   : > { %2859 = vst.msk [vmem:[%s4245_s18 + $0xc0] sm:$0xff] %vm337_vm0, %v2827_v25 }
 0x4e8   : > { %3231 = shalt.err (!%p3228_p4)
}
 0x4e9   : > { %s3283_s22 = smov 128  }
 0x4ea   : > { %3080 = dma.vmem_to_hbm [thread:$0]  (%p3374_p11), %s2881_s11, 4096, %s2883_s10, %s2868_s28, %s3283_s22, %s3283_s22, %s3276_s17  }
 0x4eb PF: > { %s2897_s18 = sand.u32 1, %s3258_s24   ;;  %p4837_p7 = scmp.ge.s32.totalorder %s3270_s27, 2 }
 0x4ec   : > { %s2898_s9 = scalar_lea.sflag [#allocation6], %s2897_s18 }
 0x4ed   : > { %p3087_p5 = pnand %p4837_p7, %p3378_p12 }
 0x4ef   : > { %p3088_p8 = pneg %p3087_p5 }
 0x4f1   : > { %3253 = dma.done.wait (%p3088_p8), %s2898_s9, 4096  }
 0x4f2   : > { %3255 = vsyncadd (%p3088_p8), %s2898_s9, 4294963200  ;;  %s4838_s21 = sld [smem:[#allocation10_spill]]  ;;  %p20_p10 = scmp.ge.s32.totalorder %s3349_s30, 4  }
 0x4f3   : > { %s4839_s24 = smov %s3262_s25  ;;  %s4840_s25 = smov %s3266_s26 }
 0x4f4   : > { %s4842_s27 = smov %s3349_s30  ;;  %22 = sbr.rel (!%p20_p10) target bundleno = 5 (0x5), region = 96 }
 0x4f8   : > { %s4841_s26 = smov %s4838_s21 }
 0x4f9   :  { %2904 = vsyncpa [#allocation5], 1 }
 0x4fa   :  { %2906 = vsyncpa [#allocation5 + $0x1], 1 }
 0x4fb   :  { %2907 = vsyncpa [#allocation6], 1 }
 0x4fc   :  { %2909 = vsyncpa [#allocation6 + $0x1], 1 }

</bundles_post_ra>
